<compile_context>
chip_gen: v7x
topology: tpu7x:2x2x1
jax: 0.10.0
libtpu: 0.0.40
codegen_flags: <defaults>
</compile_context>

<pallas_src>
import functools

import jax
import jax.numpy as jnp
from jax.experimental import pallas as pl
from jax.experimental.pallas import tpu as pltpu


# ---------------------------------------------------------------------------
# Fused kernel: depthwise conv + pointwise 1x1 + BatchNorm(batch stats) + ReLU
# Grid: (N,) sequential ("arbitrary"); output block + stats are carried.
# ---------------------------------------------------------------------------
def _dsc_fused_kernel(x_ref, dww_ref, dwb_ref, pww_ref, pwb_ref, g_ref, b_ref,
                      out_ref, xp_ref, ssum_ref, ssq_ref,
                      *, K, S, P, Ho, Wo, eps, use_mxu):
    n = pl.program_id(0)
    num_n = pl.num_programs(0)
    H = x_ref.shape[1]
    W = x_ref.shape[2]
    Cin = x_ref.shape[3]

    # ---- one-time init (scratch persists across the sequential batch loop) --
    @pl.when(n == 0)
    def _init():
        xp_ref[...] = jnp.zeros_like(xp_ref)      # zero the padded borders once
        ssum_ref[...] = jnp.zeros_like(ssum_ref)
        ssq_ref[...] = jnp.zeros_like(ssq_ref)

    # ---- in-kernel zero padding: write this batch element's interior --------
    xp_ref[P:P + H, P:P + W, :] = x_ref[0]        # borders stay zero

    # ---- depthwise conv: 9 shifted reads of the resident padded tile --------
    dww = dww_ref[...]                            # (K*K, Cin)
    acc = jnp.zeros((Ho, Wo, Cin), jnp.float32)
    for ky in range(K):
        for kx in range(K):
            if S == 1:
                patch = xp_ref[ky:ky + Ho, kx:kx + Wo, :]
            else:
                raw = xp_ref[ky:ky + (Ho - 1) * S + 1,
                             kx:kx + (Wo - 1) * S + 1, :]
                patch = jax.lax.slice(raw, (0, 0, 0), raw.shape,
                                      strides=(S, S, 1))
            acc = acc + patch * dww[ky * K + kx]
    acc = acc + dwb_ref[0]                        # (Cin,) broadcast

    # ---- pointwise 1x1 conv --------------------------------------------------
    acc2d = acc.reshape(Ho * Wo, Cin)
    pww = pww_ref[...]                            # (Cin, Cout)
    if use_mxu:
        # default precision (not HIGHEST), f32 accumulation on the MXU
        y2d = jnp.dot(acc2d, pww, preferred_element_type=jnp.float32)
    else:
        # tiny contraction: exact-f32 unrolled FMA on the VPU
        y2d = acc2d[:, 0:1] * pww[0:1, :]
        for c in range(1, Cin):
            y2d = y2d + acc2d[:, c:c + 1] * pww[c:c + 1, :]
    y2d = y2d + pwb_ref[0]                        # (Cout,) broadcast

    # lane-dense, NCHW-compatible layout: (Cout, Ho*Wo)
    y_t = y2d.T
    out_ref[n] = y_t

    # ---- BatchNorm batch statistics (per-channel running sums) ---------------
    ssum_ref[...] += jnp.sum(y_t, axis=1, keepdims=True)        # (Cout, 1)
    ssq_ref[...] += jnp.sum(y_t * y_t, axis=1, keepdims=True)   # (Cout, 1)

    # ---- finalize: normalize + affine + ReLU on the resident output ----------
    @pl.when(n == num_n - 1)
    def _finalize():
        inv_cnt = 1.0 / float(out_ref.shape[0] * Ho * Wo)
        mean = ssum_ref[...] * inv_cnt                           # (Cout, 1)
        var = ssq_ref[...] * inv_cnt - mean * mean               # biased (train)
        scale = g_ref[...] * jax.lax.rsqrt(var + eps)            # (Cout, 1)
        shift = b_ref[...] - mean * scale                        # (Cout, 1)
        y = out_ref[...]                                         # (N, Cout, Ho*Wo)
        out_ref[...] = jnp.maximum(y * scale[None, :, :] + shift[None, :, :],
                                   0.0)
    # TODO(synk): BatchNorm running-mean/var buffers (momentum update) are not
    # produced; only the train-mode normalization itself is computed.


# ---------------------------------------------------------------------------
# Wrapper: PyTorch-style NCHW in / NCHW out.
# ---------------------------------------------------------------------------
def depth_sep_conv(x_nchw, dw_w, dw_b, pw_w, pw_b, gamma, beta,
                   *, kernel_size, stride, padding, eps=1e-5):
    N, C, H, W = x_nchw.shape
    K, S, P = kernel_size, stride, padding
    Ho = (H + 2 * P - K) // S + 1
    Wo = (W + 2 * P - K) // S + 1
    Cout = pw_w.shape[0]
    Hp, Wp = H + 2 * P, W + 2 * P

    # NCHW -> NHWC (channels on lanes for the depthwise taps).
    # TODO(synk): fold this input transpose into the kernel for huge inputs.
    x = jnp.transpose(x_nchw, (0, 2, 3, 1)).astype(jnp.float32)

    # PyTorch weight layouts -> kernel layouts.
    dww = jnp.transpose(dw_w[:, 0, :, :], (1, 2, 0)).reshape(K * K, C)
    dww = dww.astype(jnp.float32)                               # (K*K, C)
    dwb2 = dw_b.reshape(1, C).astype(jnp.float32)               # (1, C)
    pww = jnp.transpose(pw_w[:, :, 0, 0], (1, 0)).astype(jnp.float32)  # (C, Cout)
    pwb2 = pw_b.reshape(1, Cout).astype(jnp.float32)            # (1, Cout)
    g2 = gamma.reshape(Cout, 1).astype(jnp.float32)             # (Cout, 1)
    b2 = beta.reshape(Cout, 1).astype(jnp.float32)              # (Cout, 1)

    use_mxu = C >= 64   # tiny contractions stay on the VPU (exact f32)

    kernel = functools.partial(_dsc_fused_kernel, K=K, S=S, P=P,
                               Ho=Ho, Wo=Wo, eps=eps, use_mxu=use_mxu)

    # Output block index is constant across the grid -> whole output stays
    # resident in VMEM and is written back to HBM exactly once (after the
    # BN/ReLU finalize).  Weight specs have constant index_maps -> one DMA.
    # TODO(synk): tile the output / use a two-pass stats reduction when
    # N*Cout*Ho*Wo no longer fits VMEM (v7x: 64 MiB physical).
    out_flat = pl.pallas_call(
        kernel,
        out_shape=jax.ShapeDtypeStruct((N, Cout, Ho * Wo), jnp.float32),
        grid_spec=pltpu.PrefetchScalarGridSpec(
            num_scalar_prefetch=0,
            grid=(N,),
            in_specs=[
                pl.BlockSpec((1, H, W, C), lambda n: (n, 0, 0, 0)),
                pl.BlockSpec((K * K, C), lambda n: (0, 0)),
                pl.BlockSpec((1, C), lambda n: (0, 0)),
                pl.BlockSpec((C, Cout), lambda n: (0, 0)),
                pl.BlockSpec((1, Cout), lambda n: (0, 0)),
                pl.BlockSpec((Cout, 1), lambda n: (0, 0)),
                pl.BlockSpec((Cout, 1), lambda n: (0, 0)),
            ],
            out_specs=pl.BlockSpec((N, Cout, Ho * Wo), lambda n: (0, 0, 0)),
            scratch_shapes=[
                pltpu.VMEM((Hp, Wp, C), jnp.float32),   # padded input tile
                pltpu.VMEM((Cout, 1), jnp.float32),     # per-channel sum
                pltpu.VMEM((Cout, 1), jnp.float32),     # per-channel sum of sq.
            ],
        ),
        compiler_params=pltpu.CompilerParams(
            # "arbitrary": output block and BN stats are carried sequentially
            # across the batch axis (fused BN reduction must stay on one core).
            dimension_semantics=("arbitrary",),
            vmem_limit_bytes=32 * 1024 * 1024,
        ),
    )(x, dww, dwb2, pww, pwb2, g2, b2)

    # (N, Cout, Ho*Wo) is already channel-major: free reshape to NCHW.
    return out_flat.reshape(N, Cout, Ho, Wo)


# ---------------------------------------------------------------------------
# Pure-JAX reference (correctness check only).
# ---------------------------------------------------------------------------
def _reference(x_nchw, dw_w, dw_b, pw_w, pw_b, gamma, beta,
               *, kernel_size, stride, padding, eps=1e-5):
    C = x_nchw.shape[1]
    dw = jax.lax.conv_general_dilated(
        x_nchw, dw_w, window_strides=(stride, stride),
        padding=[(padding, padding), (padding, padding)],
        dimension_numbers=('NCHW', 'OIHW', 'NCHW'),
        feature_group_count=C,
        precision=jax.lax.Precision.HIGHEST)
    dw = dw + dw_b[None, :, None, None]
    pw = jax.lax.conv_general_dilated(
        dw, pw_w, window_strides=(1, 1), padding=[(0, 0), (0, 0)],
        dimension_numbers=('NCHW', 'OIHW', 'NCHW'),
        precision=jax.lax.Precision.HIGHEST)
    pw = pw + pw_b[None, :, None, None]
    mean = jnp.mean(pw, axis=(0, 2, 3), keepdims=True)
    var = jnp.mean((pw - mean) ** 2, axis=(0, 2, 3), keepdims=True)
    y = (pw - mean) / jnp.sqrt(var + eps)
    y = y * gamma[None, :, None, None] + beta[None, :, None, None]
    return jnp.maximum(y, 0.0)


if __name__ == "__main__":
    # Small config consistent with DepthSepConv(in=8, out=16, k=3, s=1, p=1).
    N, Cin, H, W = 2, 8, 16, 16
    Cout, K, S, P = 16, 3, 1, 1

    key = jax.random.PRNGKey(0)
    kx, kdw, kdb, kpw, kpb, kg, kb = jax.random.split(key, 7)

    x = jax.random.normal(kx, (N, Cin, H, W), jnp.float32)
    dw_w = 0.2 * jax.random.normal(kdw, (Cin, 1, K, K), jnp.float32)  # groups=Cin
    dw_b = 0.1 * jax.random.normal(kdb, (Cin,), jnp.float32)
    pw_w = 0.2 * jax.random.normal(kpw, (Cout, Cin, 1, 1), jnp.float32)
    pw_b = 0.1 * jax.random.normal(kpb, (Cout,), jnp.float32)
    gamma = 1.0 + 0.1 * jax.random.normal(kg, (Cout,), jnp.float32)
    beta = 0.1 * jax.random.normal(kb, (Cout,), jnp.float32)

    out = depth_sep_conv(x, dw_w, dw_b, pw_w, pw_b, gamma, beta,
                         kernel_size=K, stride=S, padding=P)
    out = jax.block_until_ready(out)

    ref = _reference(x, dw_w, dw_b, pw_w, pw_b, gamma, beta,
                     kernel_size=K, stride=S, padding=P)
    assert out.shape == (N, Cout, H, W), out.shape
    assert jnp.allclose(out, ref, atol=1e-3, rtol=1e-3), \
        float(jnp.max(jnp.abs(out - ref)))

    print("KERNEL_OK")
</pallas_src>

<mosaic_0001>
module attributes {stable_mosaic.version = 11 : i64} {
  func.func @_dsc_fused_kernel(%arg0: i32, %arg1: memref<1x16x16x8xf32, #tpu.memory_space<vmem>>, %arg2: memref<9x8xf32, #tpu.memory_space<vmem>>, %arg3: memref<1x8xf32, #tpu.memory_space<vmem>>, %arg4: memref<8x16xf32, #tpu.memory_space<vmem>>, %arg5: memref<1x16xf32, #tpu.memory_space<vmem>>, %arg6: memref<16x1xf32, #tpu.memory_space<vmem>>, %arg7: memref<16x1xf32, #tpu.memory_space<vmem>>, %arg8: memref<2x16x256xf32, #tpu.memory_space<vmem>>, %arg9: memref<18x18x8xf32, #tpu.memory_space<vmem>>, %arg10: memref<16x1xf32, #tpu.memory_space<vmem>>, %arg11: memref<16x1xf32, #tpu.memory_space<vmem>>) attributes {dimension_semantics = [#tpu.dimension_semantics<arbitrary>], iteration_bounds = array<i64: 2>, scalar_prefetch = 0 : i64, scratch_operands = 3 : i64, tpu.core_type = #tpu.core_type<tc>, window_params = [{transform_indices = @transform_0, window_bounds = array<i64: 1, 16, 16, 8>}, {pipeline_mode = #tpu.pipeline_mode<synchronous>, transform_indices = @transform_1, window_bounds = array<i64: 9, 8>}, {pipeline_mode = #tpu.pipeline_mode<synchronous>, transform_indices = @transform_2, window_bounds = array<i64: 1, 8>}, {pipeline_mode = #tpu.pipeline_mode<synchronous>, transform_indices = @transform_3, window_bounds = array<i64: 8, 16>}, {pipeline_mode = #tpu.pipeline_mode<synchronous>, transform_indices = @transform_4, window_bounds = array<i64: 1, 16>}, {pipeline_mode = #tpu.pipeline_mode<synchronous>, transform_indices = @transform_5, window_bounds = array<i64: 16, 1>}, {pipeline_mode = #tpu.pipeline_mode<synchronous>, transform_indices = @transform_6, window_bounds = array<i64: 16, 1>}, {pipeline_mode = #tpu.pipeline_mode<synchronous>, transform_indices = @transform_7, window_bounds = array<i64: 2, 16, 256>}]} {
    %c0_i32 = arith.constant 0 : i32
    %0 = arith.cmpi eq, %arg0, %c0_i32 : i32
    %1 = arith.extui %0 : i1 to i32
    %c0_i32_0 = arith.constant 0 : i32
    %2 = arith.cmpi ne, %1, %c0_i32_0 : i32
    scf.if %2 {
      %cst_53 = arith.constant 0.000000e+00 : f32
      %149 = vector.broadcast %cst_53 : f32 to vector<18x18x8xf32>
      %c0_54 = arith.constant 0 : index
      %c0_55 = arith.constant 0 : index
      %c0_56 = arith.constant 0 : index
      %150 = vector.load %arg9[%c0_54, %c0_55, %c0_56] : memref<18x18x8xf32, #tpu.memory_space<vmem>>, vector<18x18x8xf32>
      tpu.vector_store %arg9[%c0_54, %c0_55, %c0_56], %149 {strides = array<i32>} : memref<18x18x8xf32, #tpu.memory_space<vmem>>, vector<18x18x8xf32>,
      %cst_57 = arith.constant 0.000000e+00 : f32
      %151 = vector.broadcast %cst_57 : f32 to vector<16x1xf32>
      %c0_58 = arith.constant 0 : index
      %c0_59 = arith.constant 0 : index
      %152 = vector.load %arg10[%c0_58, %c0_59] : memref<16x1xf32, #tpu.memory_space<vmem>>, vector<16x1xf32>
      tpu.vector_store %arg10[%c0_58, %c0_59], %151 {strides = array<i32>} : memref<16x1xf32, #tpu.memory_space<vmem>>, vector<16x1xf32>,
      %cst_60 = arith.constant 0.000000e+00 : f32
      %153 = vector.broadcast %cst_60 : f32 to vector<16x1xf32>
      %c0_61 = arith.constant 0 : index
      %c0_62 = arith.constant 0 : index
      %154 = vector.load %arg11[%c0_61, %c0_62] : memref<16x1xf32, #tpu.memory_space<vmem>>, vector<16x1xf32>
      tpu.vector_store %arg11[%c0_61, %c0_62], %153 {strides = array<i32>} : memref<16x1xf32, #tpu.memory_space<vmem>>, vector<16x1xf32>,
    } else {
    }
    %c0 = arith.constant 0 : index
    %c0_1 = arith.constant 0 : index
    %c0_2 = arith.constant 0 : index
    %c0_3 = arith.constant 0 : index
    %3 = vector.load %arg1[%c0, %c0_1, %c0_2, %c0_3] : memref<1x16x16x8xf32, #tpu.memory_space<vmem>>, vector<1x16x16x8xf32>
    %4 = vector.shape_cast %3 : vector<1x16x16x8xf32> to vector<16x16x8xf32>
    %c1 = arith.constant 1 : index
    %c1_4 = arith.constant 1 : index
    %c0_5 = arith.constant 0 : index
    %5 = vector.load %arg9[%c1, %c1_4, %c0_5] : memref<18x18x8xf32, #tpu.memory_space<vmem>>, vector<16x16x8xf32>
    tpu.vector_store %arg9[%c1, %c1_4, %c0_5], %4 {strides = array<i32>} : memref<18x18x8xf32, #tpu.memory_space<vmem>>, vector<16x16x8xf32>,
    %c0_6 = arith.constant 0 : index
    %c0_7 = arith.constant 0 : index
    %6 = vector.load %arg2[%c0_6, %c0_7] : memref<9x8xf32, #tpu.memory_space<vmem>>, vector<9x8xf32>
    %cst = arith.constant 0.000000e+00 : f32
    %7 = vector.broadcast %cst : f32 to vector<16x16x8xf32>
    %c0_8 = arith.constant 0 : index
    %c0_9 = arith.constant 0 : index
    %c0_10 = arith.constant 0 : index
    %8 = vector.load %arg9[%c0_8, %c0_9, %c0_10] : memref<18x18x8xf32, #tpu.memory_space<vmem>>, vector<16x16x8xf32>
    %9 = vector.extract_strided_slice %6 {offsets = [0, 0], sizes = [1, 8], strides = [1, 1]} : vector<9x8xf32> to vector<1x8xf32>
    %10 = vector.shape_cast %9 : vector<1x8xf32> to vector<8xf32>
    %11 = vector.shape_cast %10 : vector<8xf32> to vector<1x1x8xf32>
    %12 = vector.broadcast %11 : vector<1x1x8xf32> to vector<16x16x8xf32>
    %13 = arith.mulf %8, %12 : vector<16x16x8xf32>
    %14 = arith.addf %7, %13 : vector<16x16x8xf32>
    %c0_11 = arith.constant 0 : index
    %c1_12 = arith.constant 1 : index
    %c0_13 = arith.constant 0 : index
    %15 = vector.load %arg9[%c0_11, %c1_12, %c0_13] : memref<18x18x8xf32, #tpu.memory_space<vmem>>, vector<16x16x8xf32>
    %16 = vector.extract_strided_slice %6 {offsets = [1, 0], sizes = [1, 8], strides = [1, 1]} : vector<9x8xf32> to vector<1x8xf32>
    %17 = vector.shape_cast %16 : vector<1x8xf32> to vector<8xf32>
    %18 = vector.shape_cast %17 : vector<8xf32> to vector<1x1x8xf32>
    %19 = vector.broadcast %18 : vector<1x1x8xf32> to vector<16x16x8xf32>
    %20 = arith.mulf %15, %19 : vector<16x16x8xf32>
    %21 = arith.addf %14, %20 : vector<16x16x8xf32>
    %c0_14 = arith.constant 0 : index
    %c2 = arith.constant 2 : index
    %c0_15 = arith.constant 0 : index
    %22 = vector.load %arg9[%c0_14, %c2, %c0_15] : memref<18x18x8xf32, #tpu.memory_space<vmem>>, vector<16x16x8xf32>
    %23 = vector.extract_strided_slice %6 {offsets = [2, 0], sizes = [1, 8], strides = [1, 1]} : vector<9x8xf32> to vector<1x8xf32>
    %24 = vector.shape_cast %23 : vector<1x8xf32> to vector<8xf32>
    %25 = vector.shape_cast %24 : vector<8xf32> to vector<1x1x8xf32>
    %26 = vector.broadcast %25 : vector<1x1x8xf32> to vector<16x16x8xf32>
    %27 = arith.mulf %22, %26 : vector<16x16x8xf32>
    %28 = arith.addf %21, %27 : vector<16x16x8xf32>
    %c1_16 = arith.constant 1 : index
    %c0_17 = arith.constant 0 : index
    %c0_18 = arith.constant 0 : index
    %29 = vector.load %arg9[%c1_16, %c0_17, %c0_18] : memref<18x18x8xf32, #tpu.memory_space<vmem>>, vector<16x16x8xf32>
    %30 = vector.extract_strided_slice %6 {offsets = [3, 0], sizes = [1, 8], strides = [1, 1]} : vector<9x8xf32> to vector<1x8xf32>
    %31 = vector.shape_cast %30 : vector<1x8xf32> to vector<8xf32>
    %32 = vector.shape_cast %31 : vector<8xf32> to vector<1x1x8xf32>
    %33 = vector.broadcast %32 : vector<1x1x8xf32> to vector<16x16x8xf32>
    %34 = arith.mulf %29, %33 : vector<16x16x8xf32>
    %35 = arith.addf %28, %34 : vector<16x16x8xf32>
    %c1_19 = arith.constant 1 : index
    %c1_20 = arith.constant 1 : index
    %c0_21 = arith.constant 0 : index
    %36 = vector.load %arg9[%c1_19, %c1_20, %c0_21] : memref<18x18x8xf32, #tpu.memory_space<vmem>>, vector<16x16x8xf32>
    %37 = vector.extract_strided_slice %6 {offsets = [4, 0], sizes = [1, 8], strides = [1, 1]} : vector<9x8xf32> to vector<1x8xf32>
    %38 = vector.shape_cast %37 : vector<1x8xf32> to vector<8xf32>
    %39 = vector.shape_cast %38 : vector<8xf32> to vector<1x1x8xf32>
    %40 = vector.broadcast %39 : vector<1x1x8xf32> to vector<16x16x8xf32>
    %41 = arith.mulf %36, %40 : vector<16x16x8xf32>
    %42 = arith.addf %35, %41 : vector<16x16x8xf32>
    %c1_22 = arith.constant 1 : index
    %c2_23 = arith.constant 2 : index
    %c0_24 = arith.constant 0 : index
    %43 = vector.load %arg9[%c1_22, %c2_23, %c0_24] : memref<18x18x8xf32, #tpu.memory_space<vmem>>, vector<16x16x8xf32>
    %44 = vector.extract_strided_slice %6 {offsets = [5, 0], sizes = [1, 8], strides = [1, 1]} : vector<9x8xf32> to vector<1x8xf32>
    %45 = vector.shape_cast %44 : vector<1x8xf32> to vector<8xf32>
    %46 = vector.shape_cast %45 : vector<8xf32> to vector<1x1x8xf32>
    %47 = vector.broadcast %46 : vector<1x1x8xf32> to vector<16x16x8xf32>
    %48 = arith.mulf %43, %47 : vector<16x16x8xf32>
    %49 = arith.addf %42, %48 : vector<16x16x8xf32>
    %c2_25 = arith.constant 2 : index
    %c0_26 = arith.constant 0 : index
    %c0_27 = arith.constant 0 : index
    %50 = vector.load %arg9[%c2_25, %c0_26, %c0_27] : memref<18x18x8xf32, #tpu.memory_space<vmem>>, vector<16x16x8xf32>
    %51 = vector.extract_strided_slice %6 {offsets = [6, 0], sizes = [1, 8], strides = [1, 1]} : vector<9x8xf32> to vector<1x8xf32>
    %52 = vector.shape_cast %51 : vector<1x8xf32> to vector<8xf32>
    %53 = vector.shape_cast %52 : vector<8xf32> to vector<1x1x8xf32>
    %54 = vector.broadcast %53 : vector<1x1x8xf32> to vector<16x16x8xf32>
    %55 = arith.mulf %50, %54 : vector<16x16x8xf32>
    %56 = arith.addf %49, %55 : vector<16x16x8xf32>
    %c2_28 = arith.constant 2 : index
    %c1_29 = arith.constant 1 : index
    %c0_30 = arith.constant 0 : index
    %57 = vector.load %arg9[%c2_28, %c1_29, %c0_30] : memref<18x18x8xf32, #tpu.memory_space<vmem>>, vector<16x16x8xf32>
    %58 = vector.extract_strided_slice %6 {offsets = [7, 0], sizes = [1, 8], strides = [1, 1]} : vector<9x8xf32> to vector<1x8xf32>
    %59 = vector.shape_cast %58 : vector<1x8xf32> to vector<8xf32>
    %60 = vector.shape_cast %59 : vector<8xf32> to vector<1x1x8xf32>
    %61 = vector.broadcast %60 : vector<1x1x8xf32> to vector<16x16x8xf32>
    %62 = arith.mulf %57, %61 : vector<16x16x8xf32>
    %63 = arith.addf %56, %62 : vector<16x16x8xf32>
    %c2_31 = arith.constant 2 : index
    %c2_32 = arith.constant 2 : index
    %c0_33 = arith.constant 0 : index
    %64 = vector.load %arg9[%c2_31, %c2_32, %c0_33] : memref<18x18x8xf32, #tpu.memory_space<vmem>>, vector<16x16x8xf32>
    %65 = vector.extract_strided_slice %6 {offsets = [8, 0], sizes = [1, 8], strides = [1, 1]} : vector<9x8xf32> to vector<1x8xf32>
    %66 = vector.shape_cast %65 : vector<1x8xf32> to vector<8xf32>
    %67 = vector.shape_cast %66 : vector<8xf32> to vector<1x1x8xf32>
    %68 = vector.broadcast %67 : vector<1x1x8xf32> to vector<16x16x8xf32>
    %69 = arith.mulf %64, %68 : vector<16x16x8xf32>
    %70 = arith.addf %63, %69 : vector<16x16x8xf32>
    %c0_34 = arith.constant 0 : index
    %c0_35 = arith.constant 0 : index
    %71 = vector.load %arg3[%c0_34, %c0_35] : memref<1x8xf32, #tpu.memory_space<vmem>>, vector<1x8xf32>
    %72 = vector.shape_cast %71 : vector<1x8xf32> to vector<8xf32>
    %73 = vector.shape_cast %72 : vector<8xf32> to vector<1x1x8xf32>
    %74 = vector.broadcast %73 : vector<1x1x8xf32> to vector<16x16x8xf32>
    %75 = arith.addf %70, %74 : vector<16x16x8xf32>
    %76 = vector.shape_cast %75 : vector<16x16x8xf32> to vector<256x8xf32>
    %c0_36 = arith.constant 0 : index
    %c0_37 = arith.constant 0 : index
    %77 = vector.load %arg4[%c0_36, %c0_37] : memref<8x16xf32, #tpu.memory_space<vmem>>, vector<8x16xf32>
    %78 = vector.extract_strided_slice %76 {offsets = [0, 0], sizes = [256, 1], strides = [1, 1]} : vector<256x8xf32> to vector<256x1xf32>
    %79 = vector.extract_strided_slice %77 {offsets = [0, 0], sizes = [1, 16], strides = [1, 1]} : vector<8x16xf32> to vector<1x16xf32>
    %80 = vector.broadcast %78 : vector<256x1xf32> to vector<256x16xf32>
    %81 = vector.broadcast %79 : vector<1x16xf32> to vector<256x16xf32>
    %82 = arith.mulf %80, %81 : vector<256x16xf32>
    %83 = vector.extract_strided_slice %76 {offsets = [0, 1], sizes = [256, 1], strides = [1, 1]} : vector<256x8xf32> to vector<256x1xf32>
    %84 = vector.extract_strided_slice %77 {offsets = [1, 0], sizes = [1, 16], strides = [1, 1]} : vector<8x16xf32> to vector<1x16xf32>
    %85 = vector.broadcast %83 : vector<256x1xf32> to vector<256x16xf32>
    %86 = vector.broadcast %84 : vector<1x16xf32> to vector<256x16xf32>
    %87 = arith.mulf %85, %86 : vector<256x16xf32>
    %88 = arith.addf %82, %87 : vector<256x16xf32>
    %89 = vector.extract_strided_slice %76 {offsets = [0, 2], sizes = [256, 1], strides = [1, 1]} : vector<256x8xf32> to vector<256x1xf32>
    %90 = vector.extract_strided_slice %77 {offsets = [2, 0], sizes = [1, 16], strides = [1, 1]} : vector<8x16xf32> to vector<1x16xf32>
    %91 = vector.broadcast %89 : vector<256x1xf32> to vector<256x16xf32>
    %92 = vector.broadcast %90 : vector<1x16xf32> to vector<256x16xf32>
    %93 = arith.mulf %91, %92 : vector<256x16xf32>
    %94 = arith.addf %88, %93 : vector<256x16xf32>
    %95 = vector.extract_strided_slice %76 {offsets = [0, 3], sizes = [256, 1], strides = [1, 1]} : vector<256x8xf32> to vector<256x1xf32>
    %96 = vector.extract_strided_slice %77 {offsets = [3, 0], sizes = [1, 16], strides = [1, 1]} : vector<8x16xf32> to vector<1x16xf32>
    %97 = vector.broadcast %95 : vector<256x1xf32> to vector<256x16xf32>
    %98 = vector.broadcast %96 : vector<1x16xf32> to vector<256x16xf32>
    %99 = arith.mulf %97, %98 : vector<256x16xf32>
    %100 = arith.addf %94, %99 : vector<256x16xf32>
    %101 = vector.extract_strided_slice %76 {offsets = [0, 4], sizes = [256, 1], strides = [1, 1]} : vector<256x8xf32> to vector<256x1xf32>
    %102 = vector.extract_strided_slice %77 {offsets = [4, 0], sizes = [1, 16], strides = [1, 1]} : vector<8x16xf32> to vector<1x16xf32>
    %103 = vector.broadcast %101 : vector<256x1xf32> to vector<256x16xf32>
    %104 = vector.broadcast %102 : vector<1x16xf32> to vector<256x16xf32>
    %105 = arith.mulf %103, %104 : vector<256x16xf32>
    %106 = arith.addf %100, %105 : vector<256x16xf32>
    %107 = vector.extract_strided_slice %76 {offsets = [0, 5], sizes = [256, 1], strides = [1, 1]} : vector<256x8xf32> to vector<256x1xf32>
    %108 = vector.extract_strided_slice %77 {offsets = [5, 0], sizes = [1, 16], strides = [1, 1]} : vector<8x16xf32> to vector<1x16xf32>
    %109 = vector.broadcast %107 : vector<256x1xf32> to vector<256x16xf32>
    %110 = vector.broadcast %108 : vector<1x16xf32> to vector<256x16xf32>
    %111 = arith.mulf %109, %110 : vector<256x16xf32>
    %112 = arith.addf %106, %111 : vector<256x16xf32>
    %113 = vector.extract_strided_slice %76 {offsets = [0, 6], sizes = [256, 1], strides = [1, 1]} : vector<256x8xf32> to vector<256x1xf32>
    %114 = vector.extract_strided_slice %77 {offsets = [6, 0], sizes = [1, 16], strides = [1, 1]} : vector<8x16xf32> to vector<1x16xf32>
    %115 = vector.broadcast %113 : vector<256x1xf32> to vector<256x16xf32>
    %116 = vector.broadcast %114 : vector<1x16xf32> to vector<256x16xf32>
    %117 = arith.mulf %115, %116 : vector<256x16xf32>
    %118 = arith.addf %112, %117 : vector<256x16xf32>
    %119 = vector.extract_strided_slice %76 {offsets = [0, 7], sizes = [256, 1], strides = [1, 1]} : vector<256x8xf32> to vector<256x1xf32>
    %120 = vector.extract_strided_slice %77 {offsets = [7, 0], sizes = [1, 16], strides = [1, 1]} : vector<8x16xf32> to vector<1x16xf32>
    %121 = vector.broadcast %119 : vector<256x1xf32> to vector<256x16xf32>
    %122 = vector.broadcast %120 : vector<1x16xf32> to vector<256x16xf32>
    %123 = arith.mulf %121, %122 : vector<256x16xf32>
    %124 = arith.addf %118, %123 : vector<256x16xf32>
    %c0_38 = arith.constant 0 : index
    %c0_39 = arith.constant 0 : index
    %125 = vector.load %arg5[%c0_38, %c0_39] : memref<1x16xf32, #tpu.memory_space<vmem>>, vector<1x16xf32>
    %126 = vector.shape_cast %125 : vector<1x16xf32> to vector<16xf32>
    %127 = vector.shape_cast %126 : vector<16xf32> to vector<1x16xf32>
    %128 = vector.broadcast %127 : vector<1x16xf32> to vector<256x16xf32>
    %129 = arith.addf %124, %128 : vector<256x16xf32>
    %130 = tpu.transpose %129, [1, 0] : vector<256x16xf32> -> vector<16x256xf32>
    %131 = arith.index_cast %arg0 : i32 to index
    %c0_40 = arith.constant 0 : index
    %c0_41 = arith.constant 0 : index
    %132 = vector.load %arg8[%131, %c0_40, %c0_41] : memref<2x16x256xf32, #tpu.memory_space<vmem>>, vector<1x16x256xf32>
    %133 = vector.shape_cast %132 : vector<1x16x256xf32> to vector<16x256xf32>
    %134 = vector.shape_cast %130 : vector<16x256xf32> to vector<1x16x256xf32>
    tpu.vector_store %arg8[%131, %c0_40, %c0_41], %134 {strides = array<i32>} : memref<2x16x256xf32, #tpu.memory_space<vmem>>, vector<1x16x256xf32>,
    %c0_42 = arith.constant 0 : index
    %c0_43 = arith.constant 0 : index
    %135 = vector.load %arg10[%c0_42, %c0_43] : memref<16x1xf32, #tpu.memory_space<vmem>>, vector<16x1xf32>
    %cst_44 = arith.constant dense<0.000000e+00> : vector<16xf32>
    %136 = vector.multi_reduction <add>, %130, %cst_44 [1] : vector<16x256xf32> to vector<16xf32>
    %137 = vector.shape_cast %136 : vector<16xf32> to vector<16x1xf32>
    %138 = arith.addf %135, %137 : vector<16x1xf32>
    %c0_45 = arith.constant 0 : index
    %c0_46 = arith.constant 0 : index
    %139 = vector.load %arg10[%c0_45, %c0_46] : memref<16x1xf32, #tpu.memory_space<vmem>>, vector<16x1xf32>
    tpu.vector_store %arg10[%c0_45, %c0_46], %138 {strides = array<i32>} : memref<16x1xf32, #tpu.memory_space<vmem>>, vector<16x1xf32>,
    %c0_47 = arith.constant 0 : index
    %c0_48 = arith.constant 0 : index
    %140 = vector.load %arg11[%c0_47, %c0_48] : memref<16x1xf32, #tpu.memory_space<vmem>>, vector<16x1xf32>
    %141 = arith.mulf %130, %130 : vector<16x256xf32>
    %cst_49 = arith.constant dense<0.000000e+00> : vector<16xf32>
    %142 = vector.multi_reduction <add>, %141, %cst_49 [1] : vector<16x256xf32> to vector<16xf32>
    %143 = vector.shape_cast %142 : vector<16xf32> to vector<16x1xf32>
    %144 = arith.addf %140, %143 : vector<16x1xf32>
    %c0_50 = arith.constant 0 : index
    %c0_51 = arith.constant 0 : index
    %145 = vector.load %arg11[%c0_50, %c0_51] : memref<16x1xf32, #tpu.memory_space<vmem>>, vector<16x1xf32>
    tpu.vector_store %arg11[%c0_50, %c0_51], %144 {strides = array<i32>} : memref<16x1xf32, #tpu.memory_space<vmem>>, vector<16x1xf32>,
    %c1_i32 = arith.constant 1 : i32
    %146 = arith.cmpi eq, %arg0, %c1_i32 : i32
    %147 = arith.extui %146 : i1 to i32
    %c0_i32_52 = arith.constant 0 : i32
    %148 = arith.cmpi ne, %147, %c0_i32_52 : i32
    scf.if %148 {
      %c0_53 = arith.constant 0 : index
      %c0_54 = arith.constant 0 : index
      %149 = vector.load %arg10[%c0_53, %c0_54] : memref<16x1xf32, #tpu.memory_space<vmem>>, vector<16x1xf32>
      %cst_55 = arith.constant 0.001953125 : f32
      %150 = vector.broadcast %cst_55 : f32 to vector<16x1xf32>
      %151 = arith.mulf %149, %150 : vector<16x1xf32>
      %c0_56 = arith.constant 0 : index
      %c0_57 = arith.constant 0 : index
      %152 = vector.load %arg11[%c0_56, %c0_57] : memref<16x1xf32, #tpu.memory_space<vmem>>, vector<16x1xf32>
      %cst_58 = arith.constant 0.001953125 : f32
      %153 = vector.broadcast %cst_58 : f32 to vector<16x1xf32>
      %154 = arith.mulf %152, %153 : vector<16x1xf32>
      %155 = arith.mulf %151, %151 : vector<16x1xf32>
      %156 = arith.subf %154, %155 : vector<16x1xf32>
      %c0_59 = arith.constant 0 : index
      %c0_60 = arith.constant 0 : index
      %157 = vector.load %arg6[%c0_59, %c0_60] : memref<16x1xf32, #tpu.memory_space<vmem>>, vector<16x1xf32>
      %cst_61 = arith.constant 9.99999974E-6 : f32
      %158 = vector.broadcast %cst_61 : f32 to vector<16x1xf32>
      %159 = arith.addf %156, %158 : vector<16x1xf32>
      %160 = math.rsqrt %159 : vector<16x1xf32>
      %161 = arith.mulf %157, %160 : vector<16x1xf32>
      %c0_62 = arith.constant 0 : index
      %c0_63 = arith.constant 0 : index
      %162 = vector.load %arg7[%c0_62, %c0_63] : memref<16x1xf32, #tpu.memory_space<vmem>>, vector<16x1xf32>
      %163 = arith.mulf %151, %161 : vector<16x1xf32>
      %164 = arith.subf %162, %163 : vector<16x1xf32>
      %c0_64 = arith.constant 0 : index
      %c0_65 = arith.constant 0 : index
      %c0_66 = arith.constant 0 : index
      %165 = vector.load %arg8[%c0_64, %c0_65, %c0_66] : memref<2x16x256xf32, #tpu.memory_space<vmem>>, vector<2x16x256xf32>
      %166 = vector.shape_cast %161 : vector<16x1xf32> to vector<1x16x1xf32>
      %167 = vector.broadcast %166 : vector<1x16x1xf32> to vector<2x16x256xf32>
      %168 = arith.mulf %165, %167 : vector<2x16x256xf32>
      %169 = vector.shape_cast %164 : vector<16x1xf32> to vector<1x16x1xf32>
      %170 = vector.broadcast %169 : vector<1x16x1xf32> to vector<2x16x256xf32>
      %171 = arith.addf %168, %170 : vector<2x16x256xf32>
      %cst_67 = arith.constant 0.000000e+00 : f32
      %172 = vector.broadcast %cst_67 : f32 to vector<2x16x256xf32>
      %173 = arith.maximumf %171, %172 : vector<2x16x256xf32>
      %c0_68 = arith.constant 0 : index
      %c0_69 = arith.constant 0 : index
      %c0_70 = arith.constant 0 : index
      %174 = vector.load %arg8[%c0_68, %c0_69, %c0_70] : memref<2x16x256xf32, #tpu.memory_space<vmem>>, vector<2x16x256xf32>
      tpu.vector_store %arg8[%c0_68, %c0_69, %c0_70], %173 {strides = array<i32>} : memref<2x16x256xf32, #tpu.memory_space<vmem>>, vector<2x16x256xf32>,
    } else {
    }
    return
  }
  func.func @transform_0(%arg0: i32) -> (i32, i32, i32, i32) {
    %c0_i32 = arith.constant 0 : i32
    %c0_i32_0 = arith.constant 0 : i32
    %c0_i32_1 = arith.constant 0 : i32
    %c0_i32_2 = arith.constant 0 : i32
    return %arg0, %c0_i32, %c0_i32_0, %c0_i32_1 : i32, i32, i32, i32
  }
  func.func @transform_1(%arg0: i32) -> (i32, i32) {
    %c0_i32 = arith.constant 0 : i32
    %c0_i32_0 = arith.constant 0 : i32
    %c0_i32_1 = arith.constant 0 : i32
    return %c0_i32, %c0_i32_0 : i32, i32
  }
  func.func @transform_2(%arg0: i32) -> (i32, i32) {
    %c0_i32 = arith.constant 0 : i32
    %c0_i32_0 = arith.constant 0 : i32
    %c0_i32_1 = arith.constant 0 : i32
    return %c0_i32, %c0_i32_0 : i32, i32
  }
  func.func @transform_3(%arg0: i32) -> (i32, i32) {
    %c0_i32 = arith.constant 0 : i32
    %c0_i32_0 = arith.constant 0 : i32
    %c0_i32_1 = arith.constant 0 : i32
    return %c0_i32, %c0_i32_0 : i32, i32
  }
  func.func @transform_4(%arg0: i32) -> (i32, i32) {
    %c0_i32 = arith.constant 0 : i32
    %c0_i32_0 = arith.constant 0 : i32
    %c0_i32_1 = arith.constant 0 : i32
    return %c0_i32, %c0_i32_0 : i32, i32
  }
  func.func @transform_5(%arg0: i32) -> (i32, i32) {
    %c0_i32 = arith.constant 0 : i32
    %c0_i32_0 = arith.constant 0 : i32
    %c0_i32_1 = arith.constant 0 : i32
    return %c0_i32, %c0_i32_0 : i32, i32
  }
  func.func @transform_6(%arg0: i32) -> (i32, i32) {
    %c0_i32 = arith.constant 0 : i32
    %c0_i32_0 = arith.constant 0 : i32
    %c0_i32_1 = arith.constant 0 : i32
    return %c0_i32, %c0_i32_0 : i32, i32
  }
  func.func @transform_7(%arg0: i32) -> (i32, i32, i32) {
    %c0_i32 = arith.constant 0 : i32
    %c0_i32_0 = arith.constant 0 : i32
    %c0_i32_1 = arith.constant 0 : i32
    %c0_i32_2 = arith.constant 0 : i32
    return %c0_i32, %c0_i32_0, %c0_i32_1 : i32, i32, i32
  }
}

</mosaic_0001>

<bundles_post_ra>
// kernel: tpu_custom_call.1
= control target key start
LH: loop header
LB: loop body
LE: loop exit
PB: predicated region body
PF: predicated region fallthrough
CT: control target
= control target key end

     0   :  { %12 = vsyncpa [#allocation6], 0  ;;  %s3347_s24 = smov 0   ;;  %s5383_s0 = inlined_call_operand.vmem [shape: f32[2,16,16,8], index: 0, kind: input, shape index: {}]   ;;  %s5384_s1 = inlined_call_operand.vmem [shape: f32[9,8], index: 1, kind: input, shape index: {}]   ;;  %s5385_s2 = inlined_call_operand.vmem [shape: f32[1,8], index: 2, kind: input, shape index: {}]   ;;  %s5386_s3 = inlined_call_operand.vmem [shape: f32[8,16], index: 3, kind: input, shape index: {}]   ;;  %s5387_s4 = inlined_call_operand.vmem [shape: f32[1,16], index: 4, kind: input, shape index: {}]   ;;  %s5388_s5 = inlined_call_operand.vmem [shape: f32[16,1], index: 5, kind: input, shape index: {}]   ;;  %s5389_s6 = inlined_call_operand.vmem [shape: f32[16,1], index: 6, kind: input, shape index: {}]   ;;  %s5390_s7 = inlined_call_operand.hbm [shape: f32[2,16,256], index: 7, kind: output, shape index: {}]  }
   0x1 LB: > { %s3353_s25 = sadd.s32 4294967295, %s3292_s24   ;;  %p3189_p0 = scmp.ge.s32.totalorder %s3292_s24, 1  ;;  %s3292_s24 = sphi %s3347_s24, %s18_s24  }
   0x2   : > { %p233_p1 = scmp.lt.s32.totalorder %s3292_s24, 3 }
   0x4   : > { %p234_p2 = pnand %p3189_p0, %p233_p1 }
   0x6   : > { %237 = sbr.rel (%p234_p2) target bundleno = 1234 (0x4d2), region = 48 }
   0xd   : > { %p260_p3 = scmp.lt.s32.totalorder %s3353_s25, 1  ;;  %p3192_p4 = scmp.ne.s32.totalorder %s3353_s25, 0 }
   0xe   : > { %vm269_vm0 = vcmask (!%p3192_p4), 64512   ;;  %vm272_vm1 = vcmask (!%p3192_p4), 58368   ;;  %vm325_vm2 = vcmask (!%p3192_p4), 7168   ;;  %v3294_v0 = vmov (!%p3192_p4), 0.0  }
   0xf   : > { %s261_s26 = scalar_select %p260_p3, %s3353_s25, 1 }
  0x10   : > { %268 = sbr.rel (%p3192_p4) target bundleno = 45 (0x2d), region = 52  ;;  %270 = vst.msk [vmem:[#allocation2] sm:$0xff] (!%p3192_p4), %vm269_vm0, %v3294_v0  ;;  %271 = vst.msk [vmem:[#allocation2 + $0x8] sm:$0xff] (!%p3192_p4), %vm269_vm0, %v3294_v0 }
  0x11   : > { %s3203_s27 = sshll.u32 %s261_s26, 8  ;;  %274 = vst.msk [vmem:[#allocation2 + $0x18] sm:$0xff] (!%p3192_p4), %vm269_vm0, %v3294_v0  ;;  %275 = vst.msk [vmem:[#allocation2 + $0x20] sm:$0xff] (!%p3192_p4), %vm269_vm0, %v3294_v0 }
  0x12   : > { %s3362_s30 = scalar_lea.vmem %s5383_s0, %s3203_s27  ;;  %277 = vst.msk [vmem:[#allocation2 + $0x30] sm:$0xff] (!%p3192_p4), %vm269_vm0, %v3294_v0  ;;  %278 = vst.msk [vmem:[#allocation2 + $0x38] sm:$0xff] (!%p3192_p4), %vm269_vm0, %v3294_v0 }
  0x13   : > { %280 = vst.msk [vmem:[#allocation2 + $0x48] sm:$0xff] (!%p3192_p4), %vm269_vm0, %v3294_v0  ;;  %281 = vst.msk [vmem:[#allocation2 + $0x50] sm:$0xff] (!%p3192_p4), %vm269_vm0, %v3294_v0 }
  0x14   : > { %283 = vst.msk [vmem:[#allocation2 + $0x60] sm:$0xff] (!%p3192_p4), %vm269_vm0, %v3294_v0  ;;  %284 = vst.msk [vmem:[#allocation2 + $0x68] sm:$0xff] (!%p3192_p4), %vm269_vm0, %v3294_v0 }
  0x15   : > { %286 = vst.msk [vmem:[#allocation2 + $0x78] sm:$0xff] (!%p3192_p4), %vm269_vm0, %v3294_v0  ;;  %287 = vst.msk [vmem:[#allocation2 + $0x80] sm:$0xff] (!%p3192_p4), %vm269_vm0, %v3294_v0 }
  0x16   : > { %289 = vst.msk [vmem:[#allocation2 + $0x90] sm:$0xff] (!%p3192_p4), %vm269_vm0, %v3294_v0  ;;  %290 = vst.msk [vmem:[#allocation2 + $0x98] sm:$0xff] (!%p3192_p4), %vm269_vm0, %v3294_v0 }
  0x17   : > { %292 = vst.msk [vmem:[#allocation2 + $0xa8] sm:$0xff] %vm269_vm0, %v3294_v0  ;;  %293 = vst.msk [vmem:[#allocation2 + $0xb0] sm:$0xff] %vm269_vm0, %v3294_v0 }
  0x18   : > { %295 = vst.msk [vmem:[#allocation2 + $0xc0] sm:$0xff] %vm269_vm0, %v3294_v0  ;;  %296 = vst.msk [vmem:[#allocation2 + $0xc8] sm:$0xff] %vm269_vm0, %v3294_v0 }
  0x19   : > { %298 = vst.msk [vmem:[#allocation2 + $0xd8] sm:$0xff] %vm269_vm0, %v3294_v0  ;;  %299 = vst.msk [vmem:[#allocation2 + $0xe0] sm:$0xff] %vm269_vm0, %v3294_v0 }
  0x1a   : > { %301 = vst.msk [vmem:[#allocation2 + $0xf0] sm:$0xff] %vm269_vm0, %v3294_v0  ;;  %302 = vst.msk [vmem:[#allocation2 + $0xf8] sm:$0xff] %vm269_vm0, %v3294_v0 }
  0x1b   : > { %304 = vst.msk [vmem:[#allocation2 + $0x108] sm:$0xff] %vm269_vm0, %v3294_v0  ;;  %305 = vst.msk [vmem:[#allocation2 + $0x110] sm:$0xff] %vm269_vm0, %v3294_v0 }
  0x1c   : > { %307 = vst.msk [vmem:[#allocation2 + $0x120] sm:$0xff] %vm269_vm0, %v3294_v0  ;;  %308 = vst.msk [vmem:[#allocation2 + $0x128] sm:$0xff] %vm269_vm0, %v3294_v0 }
  0x1d   : > { %310 = vst.msk [vmem:[#allocation2 + $0x138] sm:$0xff] %vm269_vm0, %v3294_v0  ;;  %311 = vst.msk [vmem:[#allocation2 + $0x140] sm:$0xff] %vm269_vm0, %v3294_v0 }
  0x1e   : > { %313 = vst.msk [vmem:[#allocation2 + $0x150] sm:$0xff] %vm269_vm0, %v3294_v0  ;;  %314 = vst.msk [vmem:[#allocation2 + $0x158] sm:$0xff] %vm269_vm0, %v3294_v0 }
  0x1f   : > { %316 = vst.msk [vmem:[#allocation2 + $0x168] sm:$0xff] %vm269_vm0, %v3294_v0  ;;  %317 = vst.msk [vmem:[#allocation2 + $0x170] sm:$0xff] %vm269_vm0, %v3294_v0 }
  0x20   : > { %319 = vst.msk [vmem:[#allocation2 + $0x180] sm:$0xff] %vm269_vm0, %v3294_v0  ;;  %320 = vst.msk [vmem:[#allocation2 + $0x188] sm:$0xff] %vm269_vm0, %v3294_v0 }
  0x21   : > { %322 = vst.msk [vmem:[#allocation2 + $0x198] sm:$0xff] %vm269_vm0, %v3294_v0  ;;  %323 = vst.msk [vmem:[#allocation2 + $0x1a0] sm:$0xff] %vm269_vm0, %v3294_v0 }
  0x22   : > { %273 = vst.msk [vmem:[#allocation2 + $0x10] sm:$0x3] %vm272_vm1, %v3294_v0  ;;  %276 = vst.msk [vmem:[#allocation2 + $0x28] sm:$0x3] %vm272_vm1, %v3294_v0 }
  0x23   : > { %279 = vst.msk [vmem:[#allocation2 + $0x40] sm:$0x3] %vm272_vm1, %v3294_v0  ;;  %282 = vst.msk [vmem:[#allocation2 + $0x58] sm:$0x3] %vm272_vm1, %v3294_v0 }
  0x24   : > { %285 = vst.msk [vmem:[#allocation2 + $0x70] sm:$0x3] %vm272_vm1, %v3294_v0  ;;  %288 = vst.msk [vmem:[#allocation2 + $0x88] sm:$0x3] %vm272_vm1, %v3294_v0 }
  0x25   : > { %291 = vst.msk [vmem:[#allocation2 + $0xa0] sm:$0x3] %vm272_vm1, %v3294_v0  ;;  %294 = vst.msk [vmem:[#allocation2 + $0xb8] sm:$0x3] %vm272_vm1, %v3294_v0 }
  0x26   : > { %297 = vst.msk [vmem:[#allocation2 + $0xd0] sm:$0x3] %vm272_vm1, %v3294_v0  ;;  %300 = vst.msk [vmem:[#allocation2 + $0xe8] sm:$0x3] %vm272_vm1, %v3294_v0 }
  0x27   : > { %303 = vst.msk [vmem:[#allocation2 + $0x100] sm:$0x3] %vm272_vm1, %v3294_v0  ;;  %306 = vst.msk [vmem:[#allocation2 + $0x118] sm:$0x3] %vm272_vm1, %v3294_v0 }
  0x28   : > { %309 = vst.msk [vmem:[#allocation2 + $0x130] sm:$0x3] %vm272_vm1, %v3294_v0  ;;  %312 = vst.msk [vmem:[#allocation2 + $0x148] sm:$0x3] %vm272_vm1, %v3294_v0 }
  0x29   : > { %315 = vst.msk [vmem:[#allocation2 + $0x160] sm:$0x3] %vm272_vm1, %v3294_v0  ;;  %318 = vst.msk [vmem:[#allocation2 + $0x178] sm:$0x3] %vm272_vm1, %v3294_v0 }
  0x2a   : > { %321 = vst.msk [vmem:[#allocation2 + $0x190] sm:$0x3] %vm272_vm1, %v3294_v0  ;;  %324 = vst.msk [vmem:[#allocation2 + $0x1a8] sm:$0x3] %vm272_vm1, %v3294_v0 }
  0x2b   : > { %326 = vst.msk [vmem:[#allocation3] sm:$0xff] %vm325_vm2, %v3294_v0  ;;  %327 = vst.msk [vmem:[#allocation3 + $0x8] sm:$0xff] %vm325_vm2, %v3294_v0 }
  0x2c   : > { %328 = vst.msk [vmem:[#allocation4] sm:$0xff] %vm325_vm2, %v3294_v0  ;;  %329 = vst.msk [vmem:[#allocation4 + $0x8] sm:$0xff] %vm325_vm2, %v3294_v0 }
  0x2d PF: > { %v330_v1 = vld [vmem:[%s3362_s30] sm:$0xff]  ;;  %v331_v2 = vld [vmem:[%s3362_s30 + $0x8] sm:$0xff]  ;;  %v332_v3 = vld [vmem:[%s3362_s30 + $0x10] sm:$0xff]  ;;  %vm363_vm3 = vcmask 64512   ;;  %v430_v4 = vlaneseq  ;;  %v3295_v5 = vmov 0   ;;  %s3204_s22 = sshll.u32 %s3353_s25, 5 }
  0x2e   : > { %3232 = vset.pattern.permute.xlu0 %v3295_v5  ;;  %3233 = vset.pattern.permute.xlu1 %v3295_v5  ;;  %v333_v6 = vld [vmem:[%s3362_s30 + $0x18] sm:$0xff]  ;;  %364 = vst.msk [vmem:[#allocation2 + $0x19] sm:$0xff] %vm363_vm3, %v330_v1  ;;  %365 = vst.msk [vmem:[#allocation2 + $0x21] sm:$0xff] %vm363_vm3, %v331_v2  ;;  %v396_v7 = vld [vmem:[%s5384_s1] sm:$0xff]  ;;  %s3012_s23 = scalar_lea.vmem [#allocation5], %s3204_s22  ;;  %vm3027_vm4 = vcmask 7168  }
  0x2f   : > { %366 = vst.msk [vmem:[#allocation2 + $0x31] sm:$0xff] %vm363_vm3, %v332_v3  ;;  %367 = vst.msk [vmem:[#allocation2 + $0x39] sm:$0xff] %vm363_vm3, %v333_v6  ;;  %v3434_v8 = vshrl.u32 %v430_v4, 7  ;;  %v398_v9 = vld [vmem:[#allocation2] sm:$0xff]  ;;  %v335_v11 = vld [vmem:[%s3362_s30 + $0x28] sm:$0xff]  ;;  %p3198_p5 = scmp.ne.s32.totalorder %s3353_s25, 1 }
  0x30   : > { %v334_v10 = vld [vmem:[%s3362_s30 + $0x20] sm:$0xff]  ;;  %369 = vst.msk [vmem:[#allocation2 + $0x51] sm:$0xff] %vm363_vm3, %v335_v11  ;;  %v399_v22 = vld [vmem:[#allocation2 + $0x8] sm:$0xff]  ;;  %v336_v23 = vld [vmem:[%s3362_s30 + $0x30] sm:$0xff] }
  0x31   : > { %5418 = vst [vmem:[#allocation8_spill] sm:$0xff] %v3434_v8  ;;  %v5396_v12 = vsub.s32 0, %v3434_v8  ;;  %v498_v13 = vld [vmem:[#allocation2 + $0x1] sm:$0xff]  ;;  %v5398_v14 = vsub.s32 1, %v3434_v8  ;;  %v5397_v16 = vsub.s32 2, %v3434_v8  ;;  %v5395_v17 = vsub.s32 3, %v3434_v8 }
  0x32   : > { %v598_v15 = vld [vmem:[#allocation2 + $0x2] sm:$0xff]  ;;  %368 = vst.msk [vmem:[#allocation2 + $0x49] sm:$0xff] %vm363_vm3, %v334_v10  ;;  %v5394_v18 = vsub.s32 4, %v3434_v8  ;;  %v5393_v19 = vsub.s32 5, %v3434_v8  ;;  %v5392_v20 = vsub.s32 6, %v3434_v8  ;;  %v5391_v21 = vsub.s32 7, %v3434_v8 }
  0x33   : > { %v3451_v24 = vrot.slane %v396_v7, %v5396_v12  ;;  %v3455_v25 = vrot.slane %v396_v7, %v5398_v14  ;;  %v3459_v26 = vrot.slane %v396_v7, %v5397_v16  ;;  %v3463_v27 = vrot.slane %v396_v7, %v5395_v17  ;;  %v337_v28 = vld [vmem:[%s3362_s30 + $0x38] sm:$0xff]  ;;  %370 = vst.msk [vmem:[#allocation2 + $0x61] sm:$0xff] %vm363_vm3, %v336_v23  ;;  %v338_v29 = vld [vmem:[%s3362_s30 + $0x40] sm:$0xff]  ;;  %v339_v30 = vld [vmem:[%s3362_s30 + $0x48] sm:$0xff] }
  0x34   : > { %v3471_v31 = vrot.slane %v396_v7, %v5394_v18  ;;  %v3475_v32 = vrot.slane %v396_v7, %v5393_v19  ;;  %v3479_v33 = vrot.slane %v396_v7, %v5392_v20  ;;  %371 = vst.msk [vmem:[#allocation2 + $0x69] sm:$0xff] %vm363_vm3, %v337_v28  ;;  %372 = vst.msk [vmem:[#allocation2 + $0x79] sm:$0xff] %vm363_vm3, %v338_v29  ;;  %v340_v34 = vld [vmem:[%s3362_s30 + $0x50] sm:$0xff]  ;;  %v341_v35 = vld [vmem:[%s3362_s30 + $0x58] sm:$0xff] }
  0x35   : > { %373 = vst.msk [vmem:[#allocation2 + $0x81] sm:$0xff] %vm363_vm3, %v339_v30  ;;  %v342_v36 = vld [vmem:[%s3362_s30 + $0x60] sm:$0xff]  ;;  %v434_v37 = vmul.f32 %v3451_v24, %v398_v9  ;;  %v534_v38 = vmul.f32 %v3455_v25, %v498_v13  ;;  %v634_v39 = vmul.f32 %v3459_v26, %v598_v15  ;;  %v698_v40 = vld [vmem:[#allocation2 + $0x18] sm:$0xff]  ;;  %v3492_v43 = vrot.slane %v396_v7, %v5391_v21  ;;  %v3500_v44 = vld [vmem:[%s5384_s1 + $0x8] ss:$0 sm:$0xff] }
  0x36   : > { %v798_v41 = vld [vmem:[#allocation2 + $0x19] sm:$0xff]  ;;  %374 = vst.msk [vmem:[#allocation2 + $0x91] sm:$0xff] %vm363_vm3, %v340_v34  ;;  %375 = vst.msk [vmem:[#allocation2 + $0x99] sm:$0xff] %vm363_vm3, %v341_v35  ;;  %v999_v45 = vld [vmem:[#allocation2 + $0x30] sm:$0xff]  ;;  %v436_v46 = vmul.f32 %v698_v40, %v3451_v24  ;;  %v734_v48 = vmul.f32 %v3463_v27, %v698_v40  ;;  %v435_v51 = vmul.f32 %v3451_v24, %v399_v22 }
  0x37   : > { %v898_v42 = vld [vmem:[#allocation2 + $0x1a] sm:$0xff]  ;;  %376 = vst.msk [vmem:[#allocation2 + $0xa9] sm:$0xff] %vm363_vm3, %v342_v36  ;;  %v566_v47 = vadd.f32 %v534_v38, %v434_v37  ;;  %v834_v49 = vmul.f32 %v3471_v31, %v798_v41  ;;  %v1099_v50 = vld [vmem:[#allocation2 + $0x31] sm:$0xff]  ;;  %v499_v52 = vld [vmem:[#allocation2 + $0x9] sm:$0xff]  ;;  %v1035_v55 = vmul.f32 %v3479_v33, %v999_v45  ;;  %v536_v57 = vmul.f32 %v798_v41, %v3455_v25 }
  0x38   : > { %v599_v53 = vld [vmem:[#allocation2 + $0xa] sm:$0xff]  ;;  %v934_v54 = vmul.f32 %v3475_v32, %v898_v42  ;;  %v1199_v56 = vld [vmem:[#allocation2 + $0x32] sm:$0xff]  ;;  %v636_v58 = vmul.f32 %v898_v42, %v3459_v26  ;;  %v1135_v62 = vmul.f32 %v3492_v43, %v1099_v50  ;;  %v736_v0 = vmul.f32 %v999_v45, %v3463_v27  ;;  %v699_v6 = vld [vmem:[#allocation2 + $0x20] sm:$0xff] }
  0x39   : > { %v3510_v59 = vld [vmem:[#allocation2 + $0x48] sm:$0xff]  ;;  %v666_v61 = vadd.f32 %v634_v39, %v566_v47  ;;  %v3516_v63 = vmul.f32 %v3500_v44, %v1199_v56  ;;  %v568_v2 = vadd.f32 %v536_v57, %v436_v46  ;;  %v836_v3 = vmul.f32 %v1099_v50, %v3471_v31  ;;  %v3536_v30 = vld [vmem:[#allocation2 + $0x38] sm:$0xff] }
  0x3a   : > { %v3512_v60 = vld [vmem:[#allocation2 + $0x49] sm:$0xff]  ;;  %v535_v4 = vmul.f32 %v3455_v25, %v499_v52  ;;  %v635_v5 = vmul.f32 %v3459_v26, %v599_v53  ;;  %v799_v7 = vld [vmem:[#allocation2 + $0x21] sm:$0xff]  ;;  %v936_v10 = vmul.f32 %v1199_v56, %v3475_v32  ;;  %v1037_v11 = vmul.f32 %v3479_v33, %v3510_v59  ;;  %v3545_v47 = vld [vmem:[#allocation2 + $0x39] sm:$0xff] }
  0x3b   : > { %v3519_v1 = vld [vmem:[#allocation2 + $0x4a] sm:$0xff]  ;;  %v766_v9 = vadd.f32 %v734_v48, %v666_v61  ;;  %v3529_v13 = vmul.f32 %v3492_v43, %v3512_v60  ;;  %v899_v15 = vld [vmem:[#allocation2 + $0x22] sm:$0xff]  ;;  %v668_v22 = vadd.f32 %v636_v58, %v568_v2  ;;  %v735_v29 = vmul.f32 %v3463_v27, %v699_v6  ;;  %v3547_v48 = vld [vmem:[#allocation2 + $0x3a] sm:$0xff] }
  0x3c   : > { %v3533_v23 = vmul.f32 %v3500_v44, %v3519_v1  ;;  %v567_v28 = vadd.f32 %v535_v4, %v435_v51  ;;  %v835_v35 = vmul.f32 %v3471_v31, %v799_v7  ;;  %v437_v36 = vmul.f32 %v699_v6, %v3451_v24  ;;  %v3561_v2 = vld [vmem:[#allocation2 + $0x50] sm:$0xff]  ;;  %v343_v4 = vld [vmem:[%s3362_s30 + $0x68] sm:$0xff] }
  0x3d   : > { %v866_v34 = vadd.f32 %v834_v49, %v766_v9  ;;  %v537_v37 = vmul.f32 %v799_v7, %v3455_v25  ;;  %v768_v38 = vadd.f32 %v736_v0, %v668_v22  ;;  %v935_v40 = vmul.f32 %v3475_v32, %v899_v15  ;;  %v3570_v9 = vld [vmem:[#allocation2 + $0x51] sm:$0xff]  ;;  %377 = vst.msk [vmem:[#allocation2 + $0xb1] sm:$0xff] %vm363_vm3, %v343_v4 }
  0x3e   : > { %v667_v39 = vadd.f32 %v635_v5, %v567_v28  ;;  %v637_v41 = vmul.f32 %v899_v15, %v3459_v26  ;;  %v1036_v46 = vmul.f32 %v3479_v33, %v3536_v30  ;;  %v737_v51 = vmul.f32 %v3536_v30, %v3463_v27  ;;  %v3568_v5 = vld [vmem:[%s5385_s2] ss:$0 sm:$0xff]  ;;  %v345_v22 = vld [vmem:[%s3362_s30 + $0x78] sm:$0xff] }
  0x3f   : > { %v966_v42 = vadd.f32 %v934_v54, %v866_v34  ;;  %v569_v49 = vadd.f32 %v537_v37, %v437_v36  ;;  %v868_v52 = vadd.f32 %v836_v3, %v768_v38  ;;  %v3553_v57 = vmul.f32 %v3492_v43, %v3545_v47  ;;  %v346_v28 = vld [vmem:[%s3362_s30 + $0x80] sm:$0xff]  ;;  %379 = vst.msk [vmem:[#allocation2 + $0xc9] sm:$0xff] %vm363_vm3, %v345_v22  ;;  %v349_v36 = vld [vmem:[%s3362_s30 + $0x98] sm:$0xff]  ;;  %v359_v22 = vld [vmem:[%s3362_s30 + $0xe8] sm:$0xff] }
  0x40   : > { %v767_v53 = vadd.f32 %v735_v29, %v667_v39  ;;  %v3557_v54 = vmul.f32 %v3500_v44, %v3547_v48  ;;  %v837_v0 = vmul.f32 %v3545_v47, %v3471_v31  ;;  %v438_v3 = vmul.f32 %v999_v45, %v3451_v24  ;;  %v344_v45 = vld [vmem:[%s3362_s30 + $0x70] sm:$0xff]  ;;  %380 = vst.msk [vmem:[#allocation2 + $0xd9] sm:$0xff] %vm363_vm3, %v346_v28 }
  0x41   : > { %v1067_v58 = vadd.f32 %v1035_v55, %v966_v42  ;;  %v669_v61 = vadd.f32 %v637_v41, %v569_v49  ;;  %v968_v6 = vadd.f32 %v936_v10, %v868_v52  ;;  %v538_v55 = vmul.f32 %v1099_v50, %v3455_v25  ;;  %378 = vst.msk [vmem:[#allocation2 + $0xc1] sm:$0xff] %vm363_vm3, %v344_v45  ;;  %v347_v50 = vld [vmem:[%s3362_s30 + $0x88] sm:$0xff]  ;;  %v350_v41 = vld [vmem:[%s3362_s30 + $0xa0] sm:$0xff]  ;;  %v352_v49 = vld [vmem:[%s3362_s30 + $0xb0] sm:$0xff] }
  0x42   : > { %v867_v7 = vadd.f32 %v835_v35, %v767_v53  ;;  %v638_v15 = vmul.f32 %v1199_v56, %v3459_v26  ;;  %v937_v10 = vmul.f32 %v3547_v48, %v3475_v32  ;;  %v1038_v35 = vmul.f32 %v3479_v33, %v3561_v2  ;;  %v348_v56 = vld [vmem:[%s3362_s30 + $0x90] sm:$0xff]  ;;  %381 = vst.msk [vmem:[#allocation2 + $0xe1] sm:$0xff] %vm363_vm3, %v347_v50  ;;  %v351_v42 = vld [vmem:[%s3362_s30 + $0xa8] sm:$0xff]  ;;  %v353_v53 = vld [vmem:[%s3362_s30 + $0xb8] sm:$0xff] }
  0x43   : > { %v1167_v29 = vadd.f32 %v1135_v62, %v1067_v58  ;;  %v769_v34 = vadd.f32 %v737_v51, %v669_v61  ;;  %v1069_v62 = vadd.f32 %v1037_v11, %v968_v6  ;;  %v570_v38 = vadd.f32 %v538_v55, %v438_v3  ;;  %382 = vst.msk [vmem:[#allocation2 + $0xf1] sm:$0xff] %vm363_vm3, %v348_v56  ;;  %v354_v58 = vld [vmem:[%s3362_s30 + $0xc0] sm:$0xff]  ;;  %v355_v61 = vld [vmem:[%s3362_s30 + $0xc8] sm:$0xff]  ;;  %v356_v6 = vld [vmem:[%s3362_s30 + $0xd0] sm:$0xff] }
  0x44   : > { %v967_v37 = vadd.f32 %v935_v40, %v867_v7  ;;  %v738_v39 = vmul.f32 %v3510_v59, %v3463_v27  ;;  %383 = vst.msk [vmem:[#allocation2 + $0xf9] sm:$0xff] %vm363_vm3, %v349_v36  ;;  %v1138_v40 = vmul.f32 %v3492_v43, %v3570_v9  ;;  %v838_v52 = vmul.f32 %v3512_v60, %v3471_v31  ;;  %v357_v7 = vld [vmem:[%s3362_s30 + $0xd8] sm:$0xff]  ;;  %v358_v55 = vld [vmem:[%s3362_s30 + $0xe0] sm:$0xff]  ;;  %v360_v28 = vld [vmem:[%s3362_s30 + $0xf0] sm:$0xff] }
  0x45   : > { %v1267_v51 = vadd.f32 %v3516_v63, %v1167_v29  ;;  %v869_v11 = vadd.f32 %v837_v0, %v769_v34  ;;  %384 = vst.msk [vmem:[#allocation2 + $0x109] sm:$0xff] %vm363_vm3, %v350_v41  ;;  %385 = vst.msk [vmem:[#allocation2 + $0x111] sm:$0xff] %vm363_vm3, %v351_v42  ;;  %v1169_v63 = vadd.f32 %v3529_v13, %v1069_v62  ;;  %v361_v29 = vld [vmem:[%s3362_s30 + $0xf8] sm:$0xff]  ;;  %v1003_v62 = vld [vmem:[#allocation2 + $0x60] sm:$0xff] }
  0x46   : > { %386 = vst.msk [vmem:[#allocation2 + $0x121] sm:$0xff] %vm363_vm3, %v352_v49  ;;  %v1068_v0 = vadd.f32 %v1036_v46, %v967_v37  ;;  %v670_v3 = vadd.f32 %v638_v15, %v570_v38  ;;  %v938_v4 = vmul.f32 %v3519_v1, %v3475_v32  ;;  %387 = vst.msk [vmem:[#allocation2 + $0x129] sm:$0xff] %vm363_vm3, %v353_v53  ;;  %v1103_v41 = vld [vmem:[#allocation2 + $0x61] sm:$0xff] }
  0x47   : > { %388 = vst.msk [vmem:[#allocation2 + $0x139] sm:$0xff] %vm363_vm3, %v354_v58  ;;  %389 = vst.msk [vmem:[#allocation2 + $0x141] sm:$0xff] %vm363_vm3, %v355_v61  ;;  %v3617_v45 = vadd.f32 %v3568_v5, %v1267_v51  ;;  %v969_v13 = vadd.f32 %v937_v10, %v869_v11  ;;  %v439_v46 = vmul.f32 %v3536_v30, %v3451_v24  ;;  %v1202_v10 = vld [vmem:[#allocation2 + $0x52] sm:$0xff]  ;;  %v1203_v61 = vld [vmem:[#allocation2 + $0x62] sm:$0xff] }
  0x48   : > { %v539_v15 = vmul.f32 %v3545_v47, %v3455_v25  ;;  %390 = vst.msk [vmem:[#allocation2 + $0x151] sm:$0xff] %vm363_vm3, %v356_v6  ;;  %391 = vst.msk [vmem:[#allocation2 + $0x159] sm:$0xff] %vm363_vm3, %v357_v7  ;;  %v1269_v34 = vadd.f32 %v3533_v23, %v1169_v63  ;;  %v1168_v50 = vadd.f32 %v3553_v57, %v1068_v0  ;;  %v1004_v63 = vld [vmem:[#allocation2 + $0x68] sm:$0xff] }
  0x49   : > { %392 = vst.msk [vmem:[#allocation2 + $0x169] sm:$0xff] %vm363_vm3, %v358_v55  ;;  %v770_v56 = vadd.f32 %v738_v39, %v670_v3  ;;  %v639_v30 = vmul.f32 %v3547_v48, %v3459_v26  ;;  %393 = vst.msk [vmem:[#allocation2 + $0x171] sm:$0xff] %vm363_vm3, %v359_v22  ;;  %1341 = vperm.xlu0 %3232, %v3617_v45   ;;  %v1070_v47 = vadd.f32 %v1038_v35, %v969_v13  ;;  %v1104_v13 = vld [vmem:[#allocation2 + $0x69] sm:$0xff] }
  0x4a   : > { %394 = vst.msk [vmem:[#allocation2 + $0x181] sm:$0xff] %vm363_vm3, %v360_v28  ;;  %395 = vst.msk [vmem:[#allocation2 + $0x189] sm:$0xff] %vm363_vm3, %v361_v29  ;;  %v1238_v36 = vmul.f32 %v3500_v44, %v1202_v10  ;;  %v571_v23 = vadd.f32 %v539_v15, %v439_v46  ;;  %v739_v57 = vmul.f32 %v3561_v2, %v3463_v27 }
  0x4b   : > { %v3641_v37 = vadd.f32 %v3568_v5, %v1269_v34  ;;  %v1268_v48 = vadd.f32 %v3557_v54, %v1168_v50  ;;  %v870_v38 = vadd.f32 %v838_v52, %v770_v56  ;;  %v1039_v39 = vmul.f32 %v3479_v33, %v1003_v62  ;;  %v1204_v34 = vld [vmem:[#allocation2 + $0x6a] sm:$0xff]  ;;  %v1005_v56 = vld [vmem:[#allocation2 + $0x78] sm:$0xff] }
  0x4c   : > { %v1170_v42 = vadd.f32 %v1138_v40, %v1070_v47  ;;  %v1139_v49 = vmul.f32 %v3492_v43, %v1103_v41  ;;  %v671_v35 = vadd.f32 %v639_v30, %v571_v23  ;;  %v839_v51 = vmul.f32 %v3570_v9, %v3471_v31  ;;  %v1117_v18 = vld [vmem:[#allocation2 + $0x109] sm:$0xff] }
  0x4d   : > { %1351 = vperm.xlu1 %3233, %v3641_v37   ;;  %v3650_v11 = vadd.f32 %v3568_v5, %v1268_v48  ;;  %v970_v53 = vadd.f32 %v938_v4, %v870_v38  ;;  %v939_v58 = vmul.f32 %v1202_v10, %v3475_v32  ;;  %v440_v54 = vmul.f32 %v3510_v59, %v3451_v24 }
  0x4e   : > { %v1270_v52 = vadd.f32 %v1238_v36, %v1170_v42  ;;  %v771_v40 = vadd.f32 %v739_v57, %v671_v35  ;;  %v540_v0 = vmul.f32 %v3512_v60, %v3455_v25  ;;  %v640_v3 = vmul.f32 %v3519_v1, %v3459_v26 }
  0x4f   : > { %1346 = vperm.xlu0 %3232, %v3650_v11   ;;  %v1071_v6 = vadd.f32 %v1039_v39, %v970_v53  ;;  %v1239_v4 = vmul.f32 %v3500_v44, %v1203_v61  ;;  %v1040_v7 = vmul.f32 %v3479_v33, %v1004_v63  ;;  %v740_v15 = vmul.f32 %v1003_v62, %v3463_v27  ;;  %v1105_v39 = vld [vmem:[#allocation2 + $0x79] sm:$0xff] }
  0x50   : > { %v3663_v55 = vadd.f32 %v3568_v5, %v1270_v52  ;;  %v871_v59 = vadd.f32 %v839_v51, %v771_v40  ;;  %v572_v46 = vadd.f32 %v540_v0, %v440_v54  ;;  %v1140_v60 = vmul.f32 %v3492_v43, %v1104_v13  ;;  %v1205_v54 = vld [vmem:[#allocation2 + $0x7a] sm:$0xff] }
  0x51   : > { %v1171_v22 = vadd.f32 %v1139_v49, %v1071_v6  ;;  %v840_v1 = vmul.f32 %v1103_v41, %v3471_v31  ;;  %v441_v28 = vmul.f32 %v3561_v2, %v3451_v24  ;;  %v541_v30 = vmul.f32 %v3570_v9, %v3455_v25 }
  0x52   : > { %1356 = vperm.xlu1 %3233, %v3663_v55   ;;  %v971_v29 = vadd.f32 %v939_v58, %v871_v59  ;;  %v672_v50 = vadd.f32 %v640_v3, %v572_v46  ;;  %v641_v47 = vmul.f32 %v1202_v10, %v3459_v26  ;;  %v1240_v23 = vmul.f32 %v3500_v44, %v1204_v34 }
  0x53   : > { %v1271_v36 = vadd.f32 %v1239_v4, %v1171_v22  ;;  %v940_v57 = vmul.f32 %v1203_v61, %v3475_v32  ;;  %v1041_v48 = vmul.f32 %v3479_v33, %v1005_v56  ;;  %v573_v42 = vadd.f32 %v541_v30, %v441_v28  ;;  %v1206_v30 = vld [vmem:[#allocation2 + $0x82] sm:$0xff] }
  0x54   : > { %v1072_v38 = vadd.f32 %v1040_v7, %v971_v29  ;;  %v772_v2 = vadd.f32 %v740_v15, %v672_v50  ;;  %v741_v49 = vmul.f32 %v1004_v63, %v3463_v27  ;;  %v1141_v9 = vmul.f32 %v3492_v43, %v1105_v39  ;;  %v1106_v15 = vld [vmem:[#allocation2 + $0x81] sm:$0xff] }
  0x55   : > { %v3679_v35 = vadd.f32 %v3568_v5, %v1271_v36  ;;  %v841_v10 = vmul.f32 %v1104_v13, %v3471_v31  ;;  %v442_v51 = vmul.f32 %v1003_v62, %v3451_v24  ;;  %v673_v52 = vadd.f32 %v641_v47, %v573_v42  ;;  %v1006_v62 = vld [vmem:[#allocation2 + $0x80] sm:$0xff] }
  0x56   : > { %v1172_v53 = vadd.f32 %v1140_v60, %v1072_v38  ;;  %v872_v58 = vadd.f32 %v840_v1, %v772_v2  ;;  %v542_v40 = vmul.f32 %v1103_v41, %v3455_v25  ;;  %v1241_v0 = vmul.f32 %v3500_v44, %v1205_v54 }
  0x57   : > { %1361 = vperm.xlu0 %3232, %v3679_v35   ;;  %v941_v3 = vmul.f32 %v1204_v34, %v3475_v32  ;;  %v642_v6 = vmul.f32 %v1203_v61, %v3459_v26  ;;  %v742_v4 = vmul.f32 %v1005_v56, %v3463_v27  ;;  %v773_v46 = vadd.f32 %v741_v49, %v673_v52 }
  0x58   : > { %v1272_v7 = vadd.f32 %v1240_v23, %v1172_v53  ;;  %v972_v59 = vadd.f32 %v940_v57, %v872_v58  ;;  %v574_v22 = vadd.f32 %v542_v40, %v442_v51  ;;  %v1042_v60 = vmul.f32 %v3479_v33, %v1006_v62  ;;  %v1007_v57 = vld [vmem:[#allocation2 + $0x90] sm:$0xff] }
  0x59   : > { %v1142_v41 = vmul.f32 %v3492_v43, %v1106_v15  ;;  %v842_v1 = vmul.f32 %v1105_v39, %v3471_v31  ;;  %v443_v28 = vmul.f32 %v1004_v63, %v3451_v24  ;;  %v873_v50 = vadd.f32 %v841_v10, %v773_v46  ;;  %v1207_v10 = vld [vmem:[#allocation2 + $0x92] sm:$0xff] }
  0x5a   : > { %v3695_v29 = vadd.f32 %v3568_v5, %v1272_v7  ;;  %v1073_v61 = vadd.f32 %v1041_v48, %v972_v59  ;;  %v674_v47 = vadd.f32 %v642_v6, %v574_v22  ;;  %v1242_v36 = vmul.f32 %v3500_v44, %v1206_v30  ;;  %v1107_v48 = vld [vmem:[#allocation2 + $0x91] sm:$0xff] }
  0x5b   : > { %v942_v23 = vmul.f32 %v1205_v54, %v3475_v32  ;;  %v543_v38 = vmul.f32 %v1104_v13, %v3455_v25  ;;  %v643_v2 = vmul.f32 %v1204_v34, %v3459_v26  ;;  %v973_v63 = vadd.f32 %v941_v3, %v873_v50  ;;  %v1008_v50 = vld [vmem:[#allocation2 + $0x98] sm:$0xff] }
  0x5c   : > { %1366 = vperm.xlu1 %3233, %v3695_v29   ;;  %v1173_v42 = vadd.f32 %v1141_v9, %v1073_v61  ;;  %v774_v49 = vadd.f32 %v742_v4, %v674_v47  ;;  %v1043_v51 = vmul.f32 %v3479_v33, %v1007_v57  ;;  %v1143_v53 = vmul.f32 %v3492_v43, %v1107_v48 }
  0x5d   : > { %v1243_v58 = vmul.f32 %v3500_v44, %v1207_v10  ;;  %v575_v52 = vadd.f32 %v543_v38, %v443_v28  ;;  %v743_v40 = vmul.f32 %v1006_v62, %v3463_v27  ;;  %v1074_v13 = vadd.f32 %v1042_v60, %v973_v63 }
  0x5e   : > { %v1273_v6 = vadd.f32 %v1241_v0, %v1173_v42  ;;  %v874_v7 = vadd.f32 %v842_v1, %v774_v49  ;;  %v444_v34 = vmul.f32 %v1005_v56, %v3451_v24  ;;  %v843_v9 = vmul.f32 %v1106_v15, %v3471_v31  ;;  %v1108_v1 = vld [vmem:[#allocation2 + $0x99] sm:$0xff] }
  0x5f   : > { %v675_v59 = vadd.f32 %v643_v2, %v575_v52  ;;  %v544_v3 = vmul.f32 %v1105_v39, %v3455_v25  ;;  %v644_v4 = vmul.f32 %v1205_v54, %v3459_v26  ;;  %v1174_v22 = vadd.f32 %v1142_v41, %v1074_v13 }
  0x60   : > { %v3711_v46 = vadd.f32 %v3568_v5, %v1273_v6  ;;  %v974_v61 = vadd.f32 %v942_v23, %v874_v7  ;;  %v943_v28 = vmul.f32 %v1206_v30, %v3475_v32  ;;  %v1044_v60 = vmul.f32 %v3479_v33, %v1008_v50  ;;  %v1009_v7 = vld [vmem:[#allocation2 + $0xa8] sm:$0xff] }
  0x61   : > { %v775_v0 = vadd.f32 %v743_v40, %v675_v59  ;;  %v576_v56 = vadd.f32 %v544_v3, %v444_v34  ;;  %v744_v47 = vmul.f32 %v1007_v57, %v3463_v27  ;;  %v1274_v39 = vadd.f32 %v1242_v36, %v1174_v22  ;;  %v1109_v34 = vld [vmem:[#allocation2 + $0xa9] sm:$0xff] }
  0x62   : > { %1371 = vperm.xlu0 %3232, %v3711_v46   ;;  %v1075_v38 = vadd.f32 %v1043_v51, %v974_v61  ;;  %v1144_v54 = vmul.f32 %v3492_v43, %v1108_v1  ;;  %v844_v2 = vmul.f32 %v1107_v48, %v3471_v31  ;;  %v445_v42 = vmul.f32 %v1006_v62, %v3451_v24  ;;  %v1208_v51 = vld [vmem:[#allocation2 + $0x9a] sm:$0xff] }
  0x63   : > { %v875_v41 = vadd.f32 %v843_v9, %v775_v0  ;;  %v676_v23 = vadd.f32 %v644_v4, %v576_v56  ;;  %v545_v63 = vmul.f32 %v1106_v15, %v3455_v25  ;;  %v3722_v49 = vadd.f32 %v3568_v5, %v1274_v39 }
  0x64   : > { %v1175_v52 = vadd.f32 %v1143_v53, %v1075_v38  ;;  %v944_v40 = vmul.f32 %v1207_v10, %v3475_v32  ;;  %v645_v6 = vmul.f32 %v1206_v30, %v3459_v26  ;;  %v745_v9 = vmul.f32 %v1008_v50, %v3463_v27  ;;  %v1209_v38 = vld [vmem:[#allocation2 + $0xaa] sm:$0xff] }
  0x65   : > { %v975_v36 = vadd.f32 %v943_v28, %v875_v41  ;;  %v776_v13 = vadd.f32 %v744_v47, %v676_v23  ;;  %v577_v59 = vadd.f32 %v545_v63, %v445_v42  ;;  %1376 = vperm.xlu1 %3233, %v3722_v49   ;;  %v1244_v15 = vmul.f32 %v3500_v44, %v1208_v51  ;;  %v1110_v63 = vld [vmem:[#allocation2 + $0xb1] sm:$0xff] }
  0x66   : > { %v1275_v62 = vadd.f32 %v1243_v58, %v1175_v52  ;;  %v1045_v3 = vmul.f32 %v3479_v33, %v1009_v7  ;;  %v1145_v53 = vmul.f32 %v3492_v43, %v1109_v34  ;;  %v845_v61 = vmul.f32 %v1108_v1, %v3471_v31 }
  0x67   : > { %v1076_v4 = vadd.f32 %v1044_v60, %v975_v36  ;;  %v876_v22 = vadd.f32 %v844_v2, %v776_v13  ;;  %v677_v30 = vadd.f32 %v645_v6, %v577_v59  ;;  %v446_v0 = vmul.f32 %v1007_v57, %v3451_v24  ;;  %v1010_v60 = vld [vmem:[#allocation2 + $0xb0] sm:$0xff] }
  0x68   : > { %v3733_v28 = vadd.f32 %v3568_v5, %v1275_v62  ;;  %v546_v56 = vmul.f32 %v1107_v48, %v3455_v25  ;;  %v646_v58 = vmul.f32 %v1207_v10, %v3459_v26  ;;  %v945_v23 = vmul.f32 %v1208_v51, %v3475_v32 }
  0x69   : > { %v1176_v47 = vadd.f32 %v1144_v54, %v1076_v4  ;;  %v976_v39 = vadd.f32 %v944_v40, %v876_v22  ;;  %v777_v41 = vadd.f32 %v745_v9, %v677_v30  ;;  %v1245_v2 = vmul.f32 %v3500_v44, %v1209_v38  ;;  %v1210_v30 = vld [vmem:[#allocation2 + $0xb2] sm:$0xff] }
  0x6a   : > { %1381 = vperm.xlu0 %3232, %v3733_v28   ;;  %v1046_v42 = vmul.f32 %v3479_v33, %v1010_v60  ;;  %v578_v52 = vadd.f32 %v546_v56, %v446_v0  ;;  %v746_v57 = vmul.f32 %v1009_v7, %v3463_v27  ;;  %v1146_v54 = vmul.f32 %v3492_v43, %v1110_v63 }
  0x6b   : > { %v1276_v48 = vadd.f32 %v1244_v15, %v1176_v47  ;;  %v1077_v6 = vadd.f32 %v1045_v3, %v976_v39  ;;  %v877_v10 = vadd.f32 %v845_v61, %v777_v41  ;;  %v846_v36 = vmul.f32 %v1109_v34, %v3471_v31  ;;  %v1011_v61 = vld [vmem:[#allocation2 + $0xc0] sm:$0xff] }
  0x6c   : > { %v678_v40 = vadd.f32 %v646_v58, %v578_v52  ;;  %v447_v13 = vmul.f32 %v1008_v50, %v3451_v24  ;;  %v547_v59 = vmul.f32 %v1108_v1, %v3455_v25  ;;  %v647_v22 = vmul.f32 %v1208_v51, %v3459_v26 }
  0x6d   : > { %v3748_v9 = vadd.f32 %v3568_v5, %v1276_v48  ;;  %v1177_v62 = vadd.f32 %v1145_v53, %v1077_v6  ;;  %v977_v4 = vadd.f32 %v945_v23, %v877_v10  ;;  %v946_v3 = vmul.f32 %v1209_v38, %v3475_v32  ;;  %v1111_v53 = vld [vmem:[#allocation2 + $0xc1] sm:$0xff] }
  0x6e   : > { %v778_v15 = vadd.f32 %v746_v57, %v678_v40  ;;  %v579_v0 = vadd.f32 %v547_v59, %v447_v13  ;;  %v747_v56 = vmul.f32 %v1010_v60, %v3463_v27  ;;  %v1246_v1 = vmul.f32 %v3500_v44, %v1210_v30  ;;  %v1211_v6 = vld [vmem:[#allocation2 + $0xc2] sm:$0xff] }
  0x6f   : > { %1386 = vperm.xlu1 %3233, %v3748_v9   ;;  %v1277_v50 = vadd.f32 %v1245_v2, %v1177_v62  ;;  %v1078_v58 = vadd.f32 %v1046_v42, %v977_v4  ;;  %v1047_v47 = vmul.f32 %v3479_v33, %v1011_v61  ;;  %v1147_v51 = vmul.f32 %v3492_v43, %v1111_v53  ;;  %v1012_v62 = vld [vmem:[#allocation2 + $0xc8] sm:$0xff] }
  0x70   : > { %v878_v39 = vadd.f32 %v846_v36, %v778_v15  ;;  %v679_v41 = vadd.f32 %v647_v22, %v579_v0  ;;  %v847_v23 = vmul.f32 %v1110_v63, %v3471_v31  ;;  %v448_v48 = vmul.f32 %v1009_v7, %v3451_v24  ;;  %v1112_v4 = vld [vmem:[#allocation2 + $0xc9] sm:$0xff] }
  0x71   : > { %v3759_v52 = vadd.f32 %v3568_v5, %v1277_v50  ;;  %v1178_v57 = vadd.f32 %v1146_v54, %v1078_v58  ;;  %v548_v2 = vmul.f32 %v1109_v34, %v3455_v25  ;;  %v947_v40 = vmul.f32 %v1210_v30, %v3475_v32 }
  0x72   : > { %v978_v42 = vadd.f32 %v946_v3, %v878_v39  ;;  %v779_v10 = vadd.f32 %v747_v56, %v679_v41  ;;  %v648_v36 = vmul.f32 %v1209_v38, %v3459_v26  ;;  %v1247_v59 = vmul.f32 %v3500_v44, %v1211_v6  ;;  %v1212_v39 = vld [vmem:[#allocation2 + $0xca] sm:$0xff]  ;;  %v1013_v41 = vld [vmem:[#allocation2 + $0xd8] sm:$0xff] }
  0x73   : > { %1391 = vperm.xlu0 %3232, %v3759_v52   ;;  %v1278_v13 = vadd.f32 %v1246_v1, %v1178_v57  ;;  %v580_v22 = vadd.f32 %v548_v2, %v448_v48  ;;  %v748_v54 = vmul.f32 %v1011_v61, %v3463_v27  ;;  %v1048_v34 = vmul.f32 %v3479_v33, %v1012_v62 }
  0x74   : > { %v1079_v7 = vadd.f32 %v1047_v47, %v978_v42  ;;  %v879_v15 = vadd.f32 %v847_v23, %v779_v10  ;;  %v1148_v3 = vmul.f32 %v3492_v43, %v1112_v4  ;;  %v848_v56 = vmul.f32 %v1111_v53, %v3471_v31 }
  0x75   : > { %v3771_v0 = vadd.f32 %v3568_v5, %v1278_v13  ;;  %v680_v38 = vadd.f32 %v648_v36, %v580_v22  ;;  %v449_v50 = vmul.f32 %v1010_v60, %v3451_v24  ;;  %v549_v57 = vmul.f32 %v1110_v63, %v3455_v25  ;;  %v1113_v60 = vld [vmem:[#allocation2 + $0xd9] sm:$0xff] }
  0x76   : > { %v1179_v58 = vadd.f32 %v1147_v51, %v1079_v7  ;;  %v979_v1 = vadd.f32 %v947_v40, %v879_v15  ;;  %v649_v47 = vmul.f32 %v1210_v30, %v3459_v26  ;;  %v1248_v23 = vmul.f32 %v3500_v44, %v1212_v39  ;;  %v1213_v15 = vld [vmem:[#allocation2 + $0xda] sm:$0xff] }
  0x77   : > { %1396 = vperm.xlu1 %3233, %v3771_v0   ;;  %v780_v48 = vadd.f32 %v748_v54, %v680_v38  ;;  %v948_v2 = vmul.f32 %v1211_v6, %v3475_v32  ;;  %v1049_v42 = vmul.f32 %v3479_v33, %v1013_v41  ;;  %v581_v51 = vadd.f32 %v549_v57, %v449_v50 }
  0x78   : > { %v1279_v10 = vadd.f32 %v1247_v59, %v1179_v58  ;;  %v1080_v36 = vadd.f32 %v1048_v34, %v979_v1  ;;  %v749_v40 = vmul.f32 %v1012_v62, %v3463_v27  ;;  %v1149_v63 = vmul.f32 %v3492_v43, %v1113_v60 }
  0x79   : > { %v880_v13 = vadd.f32 %v848_v56, %v780_v48  ;;  %v849_v30 = vmul.f32 %v1112_v4, %v3471_v31  ;;  %v450_v22 = vmul.f32 %v1011_v61, %v3451_v24  ;;  %v681_v38 = vadd.f32 %v649_v47, %v581_v51  ;;  %v1014_v61 = vld [vmem:[#allocation2 + $0xe0] sm:$0xff] }
  0x7a   : > { %v3786_v7 = vadd.f32 %v3568_v5, %v1279_v10  ;;  %v1180_v54 = vadd.f32 %v1148_v3, %v1080_v36  ;;  %v550_v59 = vmul.f32 %v1111_v53, %v3455_v25  ;;  %v1249_v50 = vmul.f32 %v3500_v44, %v1213_v15  ;;  %v1114_v48 = vld [vmem:[#allocation2 + $0xe1] sm:$0xff] }
  0x7b   : > { %v980_v34 = vadd.f32 %v948_v2, %v880_v13  ;;  %v949_v58 = vmul.f32 %v1212_v39, %v3475_v32  ;;  %v650_v56 = vmul.f32 %v1211_v6, %v3459_v26  ;;  %v781_v57 = vadd.f32 %v749_v40, %v681_v38  ;;  %v1214_v13 = vld [vmem:[#allocation2 + $0xe2] sm:$0xff] }
  0x7c   : > { %1401 = vperm.xlu0 %3232, %v3786_v7   ;;  %v1280_v1 = vadd.f32 %v1248_v23, %v1180_v54  ;;  %v582_v10 = vadd.f32 %v550_v59, %v450_v22  ;;  %v750_v3 = vmul.f32 %v1013_v41, %v3463_v27  ;;  %v1050_v47 = vmul.f32 %v3479_v33, %v1014_v61  ;;  %v1015_v54 = vld [vmem:[#allocation2 + $0xf0] sm:$0xff] }
  0x7d   : > { %v1081_v36 = vadd.f32 %v1049_v42, %v980_v34  ;;  %v1150_v53 = vmul.f32 %v3492_v43, %v1114_v48  ;;  %v850_v2 = vmul.f32 %v1113_v60, %v3471_v31  ;;  %v881_v6 = vadd.f32 %v849_v30, %v781_v57  ;;  %v1115_v57 = vld [vmem:[#allocation2 + $0xf1] sm:$0xff] }
  0x7e   : > { %v3798_v51 = vadd.f32 %v3568_v5, %v1280_v1  ;;  %v682_v21 = vadd.f32 %v650_v56, %v582_v10  ;;  %v451_v23 = vmul.f32 %v1012_v62, %v3451_v24  ;;  %v1250_v22 = vmul.f32 %v3500_v44, %v1214_v13 }
  0x7f   : > { %v1181_v40 = vadd.f32 %v1149_v63, %v1081_v36  ;;  %v551_v42 = vmul.f32 %v1112_v4, %v3455_v25  ;;  %v651_v38 = vmul.f32 %v1212_v39, %v3459_v26  ;;  %v981_v59 = vadd.f32 %v949_v58, %v881_v6 }
  0x80   : > { %5419 = vst [vmem:[#allocation9_spill] sm:$0xff] %v3798_v51  ;;  %1406 = vperm.xlu1 %3233, %v3798_v51   ;;  %v782_v34 = vadd.f32 %v750_v3, %v682_v21  ;;  %v950_v1 = vmul.f32 %v1213_v15, %v3475_v32  ;;  %v1051_v30 = vmul.f32 %v3479_v33, %v1015_v54  ;;  %v1215_v21 = vld [vmem:[#allocation2 + $0xf2] sm:$0xff] }
  0x81   : > { %v1281_v56 = vadd.f32 %v1249_v50, %v1181_v40  ;;  %v1151_v62 = vmul.f32 %v3492_v43, %v1115_v57  ;;  %v583_v63 = vadd.f32 %v551_v42, %v451_v23  ;;  %v751_v10 = vmul.f32 %v1014_v61, %v3463_v27 }
  0x82   : > { %v1082_v36 = vadd.f32 %v1050_v47, %v981_v59  ;;  %v882_v20 = vadd.f32 %v850_v2, %v782_v34  ;;  %v851_v4 = vmul.f32 %v1114_v48, %v3471_v31  ;;  %v452_v39 = vmul.f32 %v1013_v41, %v3451_v24  ;;  %v1016_v2 = vld [vmem:[#allocation2 + $0xf8] sm:$0xff] }
  0x83   : > { %v3812_v58 = vadd.f32 %v3568_v5, %v1281_v56  ;;  %v683_v3 = vadd.f32 %v651_v38, %v583_v63  ;;  %v552_v6 = vmul.f32 %v1113_v60, %v3455_v25  ;;  %v652_v50 = vmul.f32 %v1213_v15, %v3459_v26  ;;  %v1116_v59 = vld [vmem:[#allocation2 + $0xf9] sm:$0xff] }
  0x84   : > { %v1182_v40 = vadd.f32 %v1150_v53, %v1082_v36  ;;  %v982_v19 = vadd.f32 %v950_v1, %v882_v20  ;;  %v1251_v23 = vmul.f32 %v3500_v44, %v1215_v21  ;;  %v951_v47 = vmul.f32 %v1214_v13, %v3475_v32 }
  0x85   : > { %5420 = vst [vmem:[#allocation10_spill] sm:$0xff] %v3812_v58  ;;  %1411 = vperm.xlu0 %3232, %v3812_v58   ;;  %v783_v42 = vadd.f32 %v751_v10, %v683_v3  ;;  %v1052_v41 = vmul.f32 %v3479_v33, %v1016_v2  ;;  %v584_v34 = vadd.f32 %v552_v6, %v452_v39 }
  0x86   : > { %v752_v38 = vmul.f32 %v1015_v54, %v3463_v27  ;;  %v1282_v56 = vadd.f32 %v1250_v22, %v1182_v40  ;;  %v1083_v60 = vadd.f32 %v1051_v30, %v982_v19  ;;  %v1152_v15 = vmul.f32 %v3492_v43, %v1116_v59  ;;  %v1216_v19 = vld [vmem:[#allocation2 + $0xfa] sm:$0xff]  ;;  %v1017_v40 = vld [vmem:[#allocation2 + $0x108] sm:$0xff] }
  0x87   : > { %v852_v20 = vmul.f32 %v1115_v57, %v3471_v31  ;;  %v883_v53 = vadd.f32 %v851_v4, %v783_v42  ;;  %v684_v1 = vadd.f32 %v652_v50, %v584_v34  ;;  %v453_v63 = vmul.f32 %v1014_v61, %v3451_v24 }
  0x88   : > { %v553_v36 = vmul.f32 %v1114_v48, %v3455_v25  ;;  %v3826_v10 = vadd.f32 %v3568_v5, %v1282_v56  ;;  %v1183_v3 = vadd.f32 %v1151_v62, %v1083_v60  ;;  %v952_v39 = vmul.f32 %v1215_v21, %v3475_v32 }
  0x89   : > { %v653_v6 = vmul.f32 %v1214_v13, %v3459_v26  ;;  %v983_v22 = vadd.f32 %v951_v47, %v883_v53  ;;  %v784_v30 = vadd.f32 %v752_v38, %v684_v1  ;;  %v753_v4 = vmul.f32 %v1016_v2, %v3463_v27 }
  0x8a   : > { %5421 = vst [vmem:[#allocation11_spill] sm:$0xff] %v3826_v10  ;;  %v585_v17 = vadd.f32 %v553_v36, %v453_v63  ;;  %1416 = vperm.xlu1 %3233, %v3826_v10   ;;  %v1283_v61 = vadd.f32 %v1251_v23, %v1183_v3  ;;  %v1252_v48 = vmul.f32 %v3500_v44, %v1216_v19  ;;  %v1217_v63 = vld [vmem:[#allocation2 + $0x10a] sm:$0xff] }
  0x8b   : > { %v1053_v50 = vmul.f32 %v3479_v33, %v1017_v40  ;;  %v1153_v62 = vmul.f32 %v3492_v43, %v1117_v18  ;;  %v1084_v42 = vadd.f32 %v1052_v41, %v983_v22  ;;  %v884_v34 = vadd.f32 %v852_v20, %v784_v30  ;;  %v1018_v41 = vld [vmem:[#allocation2 + $0x110] sm:$0xff] }
  0x8c   : > { %v685_v13 = vadd.f32 %v653_v6, %v585_v17  ;;  %v853_v47 = vmul.f32 %v1116_v59, %v3471_v31  ;;  %v3837_v38 = vadd.f32 %v3568_v5, %v1283_v61  ;;  %v454_v56 = vmul.f32 %v1015_v54, %v3451_v24  ;;  %v1118_v6 = vld [vmem:[#allocation2 + $0x111] sm:$0xff] }
  0x8d   : > { %v554_v60 = vmul.f32 %v1115_v57, %v3455_v25  ;;  %v654_v23 = vmul.f32 %v1215_v21, %v3459_v26  ;;  %v1184_v53 = vadd.f32 %v1152_v15, %v1084_v42  ;;  %v984_v1 = vadd.f32 %v952_v39, %v884_v34 }
  0x8e   : > { %v785_v36 = vadd.f32 %v753_v4, %v685_v13  ;;  %v953_v3 = vmul.f32 %v1216_v19, %v3475_v32  ;;  %1421 = vperm.xlu0 %3232, %v3837_v38   ;;  %v1253_v17 = vmul.f32 %v3500_v44, %v1217_v63  ;;  %v1054_v20 = vmul.f32 %v3479_v33, %v1018_v41 }
  0x8f   : > { %v586_v22 = vadd.f32 %v554_v60, %v454_v56  ;;  %v754_v54 = vmul.f32 %v1017_v40, %v3463_v27  ;;  %v1284_v57 = vadd.f32 %v1252_v48, %v1184_v53  ;;  %v1085_v30 = vadd.f32 %v1053_v50, %v984_v1  ;;  %v1218_v60 = vld [vmem:[#allocation2 + $0x112] sm:$0xff] }
  0x90   : > { %v885_v21 = vadd.f32 %v853_v47, %v785_v36  ;;  %v1154_v15 = vmul.f32 %v3492_v43, %v1118_v6  ;;  %v854_v4 = vmul.f32 %v1117_v18, %v3471_v31  ;;  %v455_v61 = vmul.f32 %v1016_v2, %v3451_v24  ;;  %v1019_v47 = vld [vmem:[#allocation2 + $0x120] sm:$0xff] }
  0x91   : > { %v686_v39 = vadd.f32 %v654_v23, %v586_v22  ;;  %v555_v42 = vmul.f32 %v1116_v59, %v3455_v25  ;;  %v3852_v34 = vadd.f32 %v3568_v5, %v1284_v57  ;;  %v1185_v13 = vadd.f32 %v1153_v62, %v1085_v30  ;;  %v1119_v62 = vld [vmem:[#allocation2 + $0x121] sm:$0xff] }
  0x92   : > { %v985_v12 = vadd.f32 %v953_v3, %v885_v21  ;;  %v655_v56 = vmul.f32 %v1216_v19, %v3459_v26  ;;  %v954_v50 = vmul.f32 %v1217_v63, %v3475_v32  ;;  %v755_v23 = vmul.f32 %v1018_v41, %v3463_v27 }
  0x93   : > { %v786_v48 = vadd.f32 %v754_v54, %v686_v39  ;;  %v587_v53 = vadd.f32 %v555_v42, %v455_v61  ;;  %1426 = vperm.xlu1 %3233, %v3852_v34   ;;  %v1285_v2 = vadd.f32 %v1253_v17, %v1185_v13  ;;  %v1254_v59 = vmul.f32 %v3500_v44, %v1218_v60 }
  0x94   : > { %v1086_v1 = vadd.f32 %v1054_v20, %v985_v12  ;;  %v1055_v36 = vmul.f32 %v3479_v33, %v1019_v47  ;;  %v1155_v19 = vmul.f32 %v3492_v43, %v1119_v62  ;;  %v855_v54 = vmul.f32 %v1118_v6, %v3471_v31  ;;  %v1219_v20 = vld [vmem:[#allocation2 + $0x122] sm:$0xff] }
  0x95   : > { %v886_v3 = vadd.f32 %v854_v4, %v786_v48  ;;  %v687_v22 = vadd.f32 %v655_v56, %v587_v53  ;;  %v3863_v57 = vadd.f32 %v3568_v5, %v1285_v2  ;;  %v456_v21 = vmul.f32 %v1017_v40, %v3451_v24  ;;  %v1020_v56 = vld [vmem:[#allocation2 + $0x128] sm:$0xff] }
  0x96   : > { %v1186_v30 = vadd.f32 %v1154_v15, %v1086_v1  ;;  %v556_v17 = vmul.f32 %v1117_v18, %v3455_v25  ;;  %v955_v61 = vmul.f32 %v1218_v60, %v3475_v32  ;;  %v656_v4 = vmul.f32 %v1217_v63, %v3459_v26  ;;  %v1120_v48 = vld [vmem:[#allocation2 + $0x129] sm:$0xff] }
  0x97   : > { %5422 = vst [vmem:[#allocation12_spill] sm:$0xff] %v3863_v57  ;;  %v986_v12 = vadd.f32 %v954_v50, %v886_v3  ;;  %v787_v39 = vadd.f32 %v755_v23, %v687_v22  ;;  %1431 = vperm.xlu0 %3232, %v3863_v57   ;;  %v1255_v13 = vmul.f32 %v3500_v44, %v1219_v20  ;;  %v1220_v22 = vld [vmem:[#allocation2 + $0x12a] sm:$0xff] }
  0x98   : > { %v1286_v42 = vadd.f32 %v1254_v59, %v1186_v30  ;;  %v588_v53 = vadd.f32 %v556_v17, %v456_v21  ;;  %v756_v15 = vmul.f32 %v1019_v47, %v3463_v27  ;;  %v1056_v18 = vmul.f32 %v3479_v33, %v1020_v56  ;;  %v1021_v30 = vld [vmem:[#allocation2 + $0x138] sm:$0xff]  ;;  %v1125_v57 = vld [vmem:[#allocation2 + $0x169] sm:$0xff] }
  0x99   : > { %v1087_v40 = vadd.f32 %v1055_v36, %v986_v12  ;;  %v887_v2 = vadd.f32 %v855_v54, %v787_v39  ;;  %v1156_v50 = vmul.f32 %v3492_v43, %v1120_v48  ;;  %v856_v1 = vmul.f32 %v1119_v62, %v3471_v31  ;;  %v3885_v54 = vld [vmem:[%s5384_s1 + $0x8] ss:$0 sm:$0xff] }
  0x9a   : > { %v3875_v23 = vadd.f32 %v3568_v5, %v1286_v42  ;;  %v688_v63 = vadd.f32 %v656_v4, %v588_v53  ;;  %v457_v59 = vmul.f32 %v1018_v41, %v3451_v24  ;;  %v557_v21 = vmul.f32 %v1118_v6, %v3455_v25  ;;  %v1121_v4 = vld [vmem:[#allocation2 + $0x139] sm:$0xff] }
  0x9b   : > { %v1187_v44 = vadd.f32 %v1155_v19, %v1087_v40  ;;  %v987_v3 = vadd.f32 %v955_v61, %v887_v2  ;;  %v657_v36 = vmul.f32 %v1218_v60, %v3459_v26  ;;  %v1256_v17 = vmul.f32 %v3885_v54, %v1220_v22 }
  0x9c   : > { %1436 = vperm.xlu1 %3233, %v3875_v23   ;;  %v788_v12 = vadd.f32 %v756_v15, %v688_v63  ;;  %v956_v41 = vmul.f32 %v1219_v20, %v3475_v32  ;;  %v1057_v19 = vmul.f32 %v3479_v33, %v1021_v30  ;;  %v589_v6 = vadd.f32 %v557_v21, %v457_v59  ;;  %v1221_v63 = vld [vmem:[#allocation2 + $0x13a] sm:$0xff] }
  0x9d   : > { %v1287_v39 = vadd.f32 %v1255_v13, %v1187_v44  ;;  %v1088_v61 = vadd.f32 %v1056_v18, %v987_v3  ;;  %v757_v60 = vmul.f32 %v1020_v56, %v3463_v27  ;;  %v1157_v53 = vmul.f32 %v3492_v43, %v1121_v4 }
  0x9e   : > { %v888_v42 = vadd.f32 %v856_v1, %v788_v12  ;;  %v857_v40 = vmul.f32 %v1120_v48, %v3471_v31  ;;  %v458_v2 = vmul.f32 %v1019_v47, %v3451_v24  ;;  %v689_v14 = vadd.f32 %v657_v36, %v589_v6  ;;  %v1022_v47 = vld [vmem:[#allocation2 + $0x140] sm:$0xff] }
  0x9f   : > { %v3895_v16 = vadd.f32 %v3568_v5, %v1287_v39  ;;  %v1188_v15 = vadd.f32 %v1156_v50, %v1088_v61  ;;  %v558_v13 = vmul.f32 %v1119_v62, %v3455_v25  ;;  %v1257_v59 = vmul.f32 %v3885_v54, %v1221_v63  ;;  %v1122_v12 = vld [vmem:[#allocation2 + $0x141] sm:$0xff] }
  0xa0   : > { %v988_v18 = vadd.f32 %v956_v41, %v888_v42  ;;  %v957_v44 = vmul.f32 %v1220_v22, %v3475_v32  ;;  %v658_v1 = vmul.f32 %v1219_v20, %v3459_v26  ;;  %v789_v21 = vadd.f32 %v757_v60, %v689_v14  ;;  %v1222_v42 = vld [vmem:[#allocation2 + $0x142] sm:$0xff] }
  0xa1   : > { %5423 = vst [vmem:[#allocation13_spill] sm:$0xff] %v3895_v16  ;;  %1441 = vperm.xlu0 %3232, %v3895_v16   ;;  %v1288_v3 = vadd.f32 %v1256_v17, %v1188_v15  ;;  %v590_v39 = vadd.f32 %v558_v13, %v458_v2  ;;  %v758_v50 = vmul.f32 %v1021_v30, %v3463_v27  ;;  %v3911_v2 = vld [vmem:[#allocation2 + $0x150] sm:$0xff] }
  0xa2   : > { %v1089_v61 = vadd.f32 %v1057_v19, %v988_v18  ;;  %v1058_v36 = vmul.f32 %v3479_v33, %v1022_v47  ;;  %v1158_v62 = vmul.f32 %v3492_v43, %v1122_v12  ;;  %v858_v41 = vmul.f32 %v1121_v4, %v3471_v31 }
  0xa3   : > { %v3907_v6 = vadd.f32 %v3568_v5, %v1288_v3  ;;  %v889_v20 = vadd.f32 %v857_v40, %v789_v21  ;;  %v690_v8 = vadd.f32 %v658_v1, %v590_v39  ;;  %v459_v14 = vmul.f32 %v1020_v56, %v3451_v24  ;;  %v1123_v1 = vld [vmem:[#allocation2 + $0x151] sm:$0xff] }
  0xa4   : > { %v1189_v17 = vadd.f32 %v1157_v53, %v1089_v61  ;;  %v1258_v60 = vmul.f32 %v3885_v54, %v1222_v42  ;;  %v559_v19 = vmul.f32 %v1120_v48, %v3455_v25  ;;  %v659_v15 = vmul.f32 %v1220_v22, %v3459_v26 }
  0xa5   : > { %5424 = vst [vmem:[#allocation14_spill] sm:$0xff] %v3907_v6  ;;  %1446 = vperm.xlu1 %3233, %v3907_v6   ;;  %v989_v13 = vadd.f32 %v957_v44, %v889_v20  ;;  %v790_v18 = vadd.f32 %v758_v50, %v690_v8  ;;  %v958_v5 = vmul.f32 %v1221_v63, %v3475_v32  ;;  %v3926_v8 = vld [vmem:[%s5385_s2] ss:$0 sm:$0xff] }
  0xa6   : > { %v1059_v40 = vmul.f32 %v3479_v33, %v3911_v2  ;;  %v1289_v56 = vadd.f32 %v1257_v59, %v1189_v17  ;;  %v1159_v53 = vmul.f32 %v3492_v43, %v1123_v1  ;;  %v591_v3 = vadd.f32 %v559_v19, %v459_v14  ;;  %v1223_v59 = vld [vmem:[#allocation2 + $0x152] sm:$0xff] }
  0xa7   : > { %v759_v21 = vmul.f32 %v1022_v47, %v3463_v27  ;;  %v1090_v39 = vadd.f32 %v1058_v36, %v989_v13  ;;  %v890_v48 = vadd.f32 %v858_v41, %v790_v18  ;;  %v859_v22 = vmul.f32 %v1122_v12, %v3471_v31  ;;  %v1024_v19 = vld [vmem:[#allocation2 + $0x158] sm:$0xff] }
  0xa8   : > { %v460_v61 = vmul.f32 %v1021_v30, %v3451_v24  ;;  %v3929_v44 = vadd.f32 %v3926_v8, %v1289_v56  ;;  %v691_v50 = vadd.f32 %v659_v15, %v591_v3  ;;  %v560_v20 = vmul.f32 %v1121_v4, %v3455_v25  ;;  %v1124_v56 = vld [vmem:[#allocation2 + $0x159] sm:$0xff] }
  0xa9   : > { %v660_v14 = vmul.f32 %v1221_v63, %v3459_v26  ;;  %v1190_v36 = vadd.f32 %v1158_v62, %v1090_v39  ;;  %v990_v41 = vadd.f32 %v958_v5, %v890_v48  ;;  %v1259_v17 = vmul.f32 %v3885_v54, %v1223_v59 }
  0xaa   : > { %5425 = vst [vmem:[#allocation15_spill] sm:$0xff] %v3929_v44  ;;  %v959_v30 = vmul.f32 %v1222_v42, %v3475_v32  ;;  %1451 = vperm.xlu0 %3232, %v3929_v44   ;;  %v791_v13 = vadd.f32 %v759_v21, %v691_v50  ;;  %v1060_v18 = vmul.f32 %v3479_v33, %v1024_v19 }
  0xab   : > { %v592_v16 = vadd.f32 %v560_v20, %v460_v61  ;;  %v760_v15 = vmul.f32 %v3911_v2, %v3463_v27  ;;  %v1290_v4 = vadd.f32 %v1258_v60, %v1190_v36  ;;  %v1091_v3 = vadd.f32 %v1059_v40, %v990_v41  ;;  %v1224_v40 = vld [vmem:[#allocation2 + $0x15a] sm:$0xff]  ;;  %v1025_v41 = vld [vmem:[#allocation2 + $0x168] sm:$0xff] }
  0xac   : > { %v1160_v63 = vmul.f32 %v3492_v43, %v1124_v56  ;;  %v860_v62 = vmul.f32 %v1123_v1, %v3471_v31  ;;  %v891_v5 = vadd.f32 %v859_v22, %v791_v13  ;;  %v461_v48 = vmul.f32 %v1022_v47, %v3451_v24 }
  0xad   : > { %v692_v39 = vadd.f32 %v660_v14, %v592_v16  ;;  %v561_v44 = vmul.f32 %v1122_v12, %v3455_v25  ;;  %v3944_v21 = vadd.f32 %v3926_v8, %v1290_v4  ;;  %v1191_v50 = vadd.f32 %v1159_v53, %v1091_v3 }
  0xae   : > { %v960_v61 = vmul.f32 %v1223_v59, %v3475_v32  ;;  %v661_v20 = vmul.f32 %v1222_v42, %v3459_v26  ;;  %v991_v60 = vadd.f32 %v959_v30, %v891_v5  ;;  %v761_v16 = vmul.f32 %v1024_v19, %v3463_v27 }
  0xaf   : > { %v792_v36 = vadd.f32 %v760_v15, %v692_v39  ;;  %v593_v6 = vadd.f32 %v561_v44, %v461_v48  ;;  %1456 = vperm.xlu1 %3233, %v3944_v21   ;;  %v1291_v47 = vadd.f32 %v1259_v17, %v1191_v50  ;;  %v1260_v12 = vmul.f32 %v3885_v54, %v1224_v40  ;;  %v1225_v39 = vld [vmem:[#allocation2 + $0x16a] sm:$0xff] }
  0xb0   : > { %v1061_v22 = vmul.f32 %v3479_v33, %v1025_v41  ;;  %v1161_v53 = vmul.f32 %v3492_v43, %v1125_v57  ;;  %v1092_v14 = vadd.f32 %v1060_v18, %v991_v60  ;;  %v861_v30 = vmul.f32 %v1124_v56, %v3471_v31 }
  0xb1   : > { %v892_v13 = vadd.f32 %v860_v62, %v792_v36  ;;  %v693_v42 = vadd.f32 %v661_v20, %v593_v6  ;;  %v3955_v15 = vadd.f32 %v3926_v8, %v1291_v47  ;;  %v462_v44 = vmul.f32 %v3911_v2, %v3451_v24  ;;  %v1026_v62 = vld [vmem:[#allocation2 + $0x170] sm:$0xff] }
  0xb2   : > { %v562_v4 = vmul.f32 %v1123_v1, %v3455_v25  ;;  %v662_v17 = vmul.f32 %v1223_v59, %v3459_v26  ;;  %v1192_v3 = vadd.f32 %v1160_v63, %v1092_v14  ;;  %v961_v18 = vmul.f32 %v1224_v40, %v3475_v32  ;;  %v1126_v20 = vld [vmem:[#allocation2 + $0x171] sm:$0xff] }
  0xb3   : > { %5426 = vst [vmem:[#allocation16_spill] sm:$0xff] %v3955_v15  ;;  %v992_v5 = vadd.f32 %v960_v61, %v892_v13  ;;  %v793_v48 = vadd.f32 %v761_v16, %v693_v42  ;;  %1461 = vperm.xlu0 %3232, %v3955_v15   ;;  %v1261_v6 = vmul.f32 %v3885_v54, %v1225_v39 }
  0xb4   : > { %v1062_v50 = vmul.f32 %v3479_v33, %v1026_v62  ;;  %v594_v60 = vadd.f32 %v562_v4, %v462_v44  ;;  %v762_v2 = vmul.f32 %v1025_v41, %v3463_v27  ;;  %v1292_v1 = vadd.f32 %v1260_v12, %v1192_v3  ;;  %v1226_v4 = vld [vmem:[#allocation2 + $0x172] sm:$0xff] }
  0xb5   : > { %v1093_v36 = vadd.f32 %v1061_v22, %v992_v5  ;;  %v893_v59 = vadd.f32 %v861_v30, %v793_v48  ;;  %v1162_v63 = vmul.f32 %v3492_v43, %v1126_v20  ;;  %v862_v16 = vmul.f32 %v1125_v57, %v3471_v31  ;;  %v1027_v30 = vld [vmem:[#allocation2 + $0x180] sm:$0xff] }
  0xb6   : > { %v694_v61 = vadd.f32 %v662_v17, %v594_v60  ;;  %v463_v47 = vmul.f32 %v1024_v19, %v3451_v24  ;;  %v563_v14 = vmul.f32 %v1124_v56, %v3455_v25  ;;  %v3971_v13 = vadd.f32 %v3926_v8, %v1292_v1 }
  0xb7   : > { %v1193_v42 = vadd.f32 %v1161_v53, %v1093_v36  ;;  %v993_v15 = vadd.f32 %v961_v18, %v893_v59  ;;  %v663_v44 = vmul.f32 %v1224_v40, %v3459_v26  ;;  %v962_v22 = vmul.f32 %v1225_v39, %v3475_v32  ;;  %v1127_v53 = vld [vmem:[#allocation2 + $0x181] sm:$0xff] }
  0xb8   : > { %v794_v12 = vadd.f32 %v762_v2, %v694_v61  ;;  %v595_v3 = vadd.f32 %v563_v14, %v463_v47  ;;  %v763_v17 = vmul.f32 %v1026_v62, %v3463_v27  ;;  %1466 = vperm.xlu1 %3233, %v3971_v13   ;;  %v1262_v56 = vmul.f32 %v3885_v54, %v1226_v4 }
  0xb9   : > { %v1293_v19 = vadd.f32 %v1261_v6, %v1193_v42  ;;  %v1094_v5 = vadd.f32 %v1062_v50, %v993_v15  ;;  %v1063_v48 = vmul.f32 %v3479_v33, %v1027_v30  ;;  %v1163_v40 = vmul.f32 %v3492_v43, %v1127_v53  ;;  %v1227_v50 = vld [vmem:[#allocation2 + $0x182] sm:$0xff] }
  0xba   : > { %v894_v18 = vadd.f32 %v862_v16, %v794_v12  ;;  %v695_v60 = vadd.f32 %v663_v44, %v595_v3  ;;  %v863_v2 = vmul.f32 %v1126_v20, %v3471_v31  ;;  %v464_v59 = vmul.f32 %v1025_v41, %v3451_v24  ;;  %v1028_v44 = vld [vmem:[#allocation2 + $0x188] sm:$0xff] }
  0xbb   : > { %v3982_v1 = vadd.f32 %v3926_v8, %v1293_v19  ;;  %v1194_v36 = vadd.f32 %v1162_v63, %v1094_v5  ;;  %v564_v6 = vmul.f32 %v1125_v57, %v3455_v25  ;;  %v963_v47 = vmul.f32 %v1226_v4, %v3475_v32  ;;  %v1128_v12 = vld [vmem:[#allocation2 + $0x189] sm:$0xff] }
  0xbc   : > { %v994_v15 = vadd.f32 %v962_v22, %v894_v18  ;;  %v795_v61 = vadd.f32 %v763_v17, %v695_v60  ;;  %v664_v16 = vmul.f32 %v1225_v39, %v3459_v26  ;;  %v1263_v42 = vmul.f32 %v3885_v54, %v1227_v50 }
  0xbd   : > { %1471 = vperm.xlu0 %3232, %v3982_v1   ;;  %v1294_v14 = vadd.f32 %v1262_v56, %v1194_v36  ;;  %v596_v3 = vadd.f32 %v564_v6, %v464_v59  ;;  %v764_v63 = vmul.f32 %v1027_v30, %v3463_v27  ;;  %v1064_v57 = vmul.f32 %v3479_v33, %v1028_v44  ;;  %v1228_v36 = vld [vmem:[#allocation2 + $0x18a] sm:$0xff]  ;;  %v1029_v59 = vld [vmem:[#allocation2 + $0x198] sm:$0xff] }
  0xbe   : > { %v1095_v41 = vadd.f32 %v1063_v48, %v994_v15  ;;  %v895_v19 = vadd.f32 %v863_v2, %v795_v61  ;;  %v1164_v22 = vmul.f32 %v3492_v43, %v1128_v12  ;;  %v864_v5 = vmul.f32 %v1127_v53, %v3471_v31  ;;  %v1129_v53 = vld [vmem:[#allocation2 + $0x199] sm:$0xff] }
  0xbf   : > { %v3994_v17 = vadd.f32 %v3926_v8, %v1294_v14  ;;  %v696_v39 = vadd.f32 %v664_v16, %v596_v3  ;;  %v465_v56 = vmul.f32 %v1026_v62, %v3451_v24  ;;  %v565_v30 = vmul.f32 %v1126_v20, %v3455_v25  ;;  %v1229_v20 = vld [vmem:[#allocation2 + $0x19a] sm:$0xff] }
  0xc0   : > { %v1195_v18 = vadd.f32 %v1163_v40, %v1095_v41  ;;  %v995_v60 = vadd.f32 %v963_v47, %v895_v19  ;;  %v665_v48 = vmul.f32 %v1226_v4, %v3459_v26  ;;  %v1264_v2 = vmul.f32 %v3885_v54, %v1228_v36 }
  0xc1   : > { %1476 = vperm.xlu1 %3233, %v3994_v17   ;;  %v796_v6 = vadd.f32 %v764_v63, %v696_v39  ;;  %v964_v15 = vmul.f32 %v1227_v50, %v3475_v32  ;;  %v597_v14 = vadd.f32 %v565_v30, %v465_v56  ;;  %v765_v24 = vmul.f32 %v1028_v44, %v3463_v27 }
  0xc2   : > { %v1295_v61 = vadd.f32 %v1263_v42, %v1195_v18  ;;  %v1096_v16 = vadd.f32 %v1064_v57, %v995_v60  ;;  %v1065_v40 = vmul.f32 %v3479_v33, %v1029_v59  ;;  %v865_v47 = vmul.f32 %v1128_v12, %v3471_v31  ;;  %v1030_v42 = vld [vmem:[#allocation2 + $0x1a0] sm:$0xff] }
  0xc3   : > { %v896_v62 = vadd.f32 %v864_v5, %v796_v6  ;;  %v697_v4 = vadd.f32 %v665_v48, %v597_v14  ;;  %v1165_v50 = vmul.f32 %v3492_v43, %v1129_v53  ;;  %v965_v27 = vmul.f32 %v1228_v36, %v3475_v32  ;;  %v1130_v57 = vld [vmem:[#allocation2 + $0x1a1] sm:$0xff]  ;;  %v5432_v53 = vld [vmem:[#allocation13_spill] sm:$0xff] }
  0xc4   : > { %v4006_v25 = vadd.f32 %v3926_v8, %v1295_v61  ;;  %v1196_v26 = vadd.f32 %v1164_v22, %v1096_v16  ;;  %v1265_v19 = vmul.f32 %v3885_v54, %v1229_v20  ;;  %v1066_v31 = vmul.f32 %v3479_v33, %v1030_v42  ;;  %v1230_v5 = vld [vmem:[#allocation2 + $0x1a2] sm:$0xff] }
  0xc5   : > { %v996_v3 = vadd.f32 %v964_v15, %v896_v62  ;;  %v797_v41 = vadd.f32 %v765_v24, %v697_v4  ;;  %v1166_v18 = vmul.f32 %v3492_v43, %v1130_v57  ;;  %v1266_v32 = vmul.f32 %v3885_v54, %v1230_v5  ;;  %v5428_v6 = vld [vmem:[#allocation14_spill] sm:$0xff]  ;;  %v5429_v15 = vld [vmem:[#allocation12_spill] sm:$0xff]  ;;  %v5433_v14 = vld [vmem:[#allocation15_spill] sm:$0xff] }
  0xc6   : > { %1481 = vperm.xlu0 %3232, %v4006_v25   ;;  %v1296_v63 = vadd.f32 %v1264_v2, %v1196_v26  ;;  %v3296_v2 = vmov 1  }
  0xc7   : > { %v1097_v44 = vadd.f32 %v1065_v40, %v996_v3  ;;  %v897_v39 = vadd.f32 %v865_v47, %v797_v41  ;;  %v5435_v40 = vld [vmem:[#allocation16_spill] sm:$0xff]  ;;  %v3297_v3 = vmov 2  }
  0xc8   : > { %v4014_v22 = vadd.f32 %v3926_v8, %v1296_v63  ;;  %v4044_v43 = vpop.permute.xlu0 %1341 }
  0xc9   : > { %v1197_v12 = vadd.f32 %v1165_v50, %v1097_v44  ;;  %v997_v56 = vadd.f32 %v965_v27, %v897_v39 }
  0xca   : > { %1486 = vperm.xlu1 %3233, %v4014_v22  }
  0xcb   : > { %v1297_v60 = vadd.f32 %v1265_v19, %v1197_v12  ;;  %v1098_v59 = vadd.f32 %v1066_v31, %v997_v56 }
  0xcc   : > { %v4049_v54 = vpop.permute.xlu1 %1351 }
  0xcd   : > { %v4021_v36 = vadd.f32 %v3926_v8, %v1297_v60  ;;  %v1198_v30 = vadd.f32 %v1166_v18, %v1098_v59  ;;  %5427 = vst [vmem:[#allocation17_spill] sm:$0xff] %v4049_v54 }
  0xcf   : > { %1491 = vperm.xlu0 %3232, %v4021_v36   ;;  %v1298_v48 = vadd.f32 %v1266_v32, %v1198_v30 }
  0xd1   : > { %v4025_v33 = vadd.f32 %v3926_v8, %v1298_v48  ;;  %v4051_v8 = vpop.permute.xlu0 %1346  ;;  %v4055_v61 = vpop.permute.xlu1 %1356 }
  0xd2   : > { %5430 = vst [vmem:[#allocation14_spill] sm:$0xff] %v4055_v61 }
  0xd3   : > { %3234 = vset.pattern.permute.xlu0 %v3296_v2  ;;  %1496 = vperm.xlu1 %3233, %v4025_v33  }
  0xd4   : > { %1536 = vperm.xlu0 %3234, %v3617_v45  }
  0xd6   : > { %v4058_v16 = vpop.permute.xlu0 %1361 }
  0xd7   : > { %3235 = vset.pattern.permute.xlu1 %v3296_v2  ;;  %5431 = vst [vmem:[#allocation12_spill] sm:$0xff] %v4058_v16 }
  0xd8   : > { %1548 = vperm.xlu0 %3234, %v3663_v55   ;;  %1540 = vperm.xlu1 %3235, %v3650_v11  }
  0xdb   : > { %v4063_v24 = vpop.permute.xlu1 %1366 }
  0xdc   : > { %1556 = vperm.xlu0 %3234, %v3695_v29   ;;  %1544 = vperm.xlu1 %3235, %v3641_v37  }
  0xe0   : > { %1564 = vperm.xlu0 %3234, %v3722_v49   ;;  %1552 = vperm.xlu1 %3235, %v3679_v35  }
  0xe1   : > { %v4065_v62 = vpop.permute.xlu0 %1371 }
  0xe2   : > { %5434 = vst [vmem:[#allocation13_spill] sm:$0xff] %v4065_v62 }
  0xe4   : > { %1572 = vperm.xlu0 %3234, %v3748_v9   ;;  %1560 = vperm.xlu1 %3235, %v3711_v46   ;;  %v4069_v26 = vpop.permute.xlu1 %1376 }
  0xe8   : > { %1580 = vperm.xlu0 %3234, %v3771_v0   ;;  %1568 = vperm.xlu1 %3235, %v3733_v28  }
  0xe9   : > { %v4072_v20 = vpop.permute.xlu0 %1381 }
  0xec   : > { %1588 = vperm.xlu0 %3234, %v3798_v51   ;;  %1576 = vperm.xlu1 %3235, %v3759_v52  }
  0xee   : > { %v4077_v4 = vpop.permute.xlu1 %1386 }
  0xf0   : > { %1596 = vperm.xlu0 %3234, %v3826_v10   ;;  %1584 = vperm.xlu1 %3235, %v3786_v7  }
  0xf2   : > { %v4079_v47 = vpop.permute.xlu0 %1391 }
  0xf4   : > { %1604 = vperm.xlu0 %3234, %v3852_v34   ;;  %1592 = vperm.xlu1 %3235, %v3812_v58  }
  0xf6   : > { %v4083_v50 = vpop.permute.xlu1 %1396 }
  0xf8   : > { %1612 = vperm.xlu0 %3234, %v3875_v23   ;;  %1600 = vperm.xlu1 %3235, %v3837_v38  }
  0xfb   : > { %v4085_v42 = vpop.permute.xlu0 %1401 }
  0xfc   : > { %1620 = vperm.xlu0 %3234, %v5428_v6   ;;  %1608 = vperm.xlu1 %3235, %v5429_v15  }
  0xff   : > { %v4090_v63 = vpop.permute.xlu1 %1406 }
 0x100   : > { %1628 = vperm.xlu0 %3234, %v3944_v21   ;;  %1616 = vperm.xlu1 %3235, %v5432_v53  }
 0x104   : > { %1636 = vperm.xlu0 %3234, %v3971_v13   ;;  %1624 = vperm.xlu1 %3235, %v5433_v14   ;;  %v4093_v41 = vpop.permute.xlu0 %1411 }
 0x108   : > { %1644 = vperm.xlu0 %3234, %v3994_v17   ;;  %1632 = vperm.xlu1 %3235, %v5435_v40  }
 0x109   : > { %v4097_v27 = vpop.permute.xlu1 %1416 }
 0x10c   : > { %1652 = vperm.xlu0 %3234, %v4014_v22   ;;  %1640 = vperm.xlu1 %3235, %v3982_v1  }
 0x10d   : > { %v4099_v44 = vpop.permute.xlu0 %1421 }
 0x10e   : > { %5436 = vst [vmem:[#allocation15_spill] sm:$0xff] %v4099_v44 }
 0x110   : > { %1660 = vperm.xlu0 %3234, %v4025_v33   ;;  %1648 = vperm.xlu1 %3235, %v4006_v25  }
 0x112   : > { %v4104_v19 = vpop.permute.xlu1 %1426 }
 0x113   : > { %5437 = vst [vmem:[#allocation16_spill] sm:$0xff] %v4104_v19 }
 0x114   : > { %3237 = vset.pattern.permute.xlu0 %v3297_v3  ;;  %1656 = vperm.xlu1 %3235, %v4021_v36  }
 0x115   : > { %1736 = vperm.xlu0 %3237, %v3650_v11  }
 0x116   : > { %v4107_v57 = vpop.permute.xlu0 %1431 }
 0x118   : > { %3236 = vset.pattern.permute.xlu1 %v3297_v3  ;;  %v3298_v3 = vmov 3  }
 0x119   : > { %1748 = vperm.xlu0 %3237, %v3679_v35   ;;  %1732 = vperm.xlu1 %3236, %v3617_v45  }
 0x11b   : > { %v4111_v39 = vpop.permute.xlu1 %1436 }
 0x11c   : > { %5438 = vst [vmem:[#allocation18_spill] sm:$0xff] %v4111_v39 }
 0x11d   : > { %1756 = vperm.xlu0 %3237, %v3711_v46   ;;  %1740 = vperm.xlu1 %3236, %v3641_v37  }
 0x120   : > { %v4113_v31 = vpop.permute.xlu0 %1441 }
 0x121   : > { %1764 = vperm.xlu0 %3237, %v3733_v28   ;;  %1744 = vperm.xlu1 %3236, %v3663_v55  }
 0x124   : > { %v4118_v12 = vpop.permute.xlu1 %1446 }
 0x125   : > { %1772 = vperm.xlu0 %3237, %v3759_v52   ;;  %1752 = vperm.xlu1 %3236, %v3695_v29   ;;  %5439 = vst [vmem:[#allocation19_spill] sm:$0xff] %v4118_v12 }
 0x129   : > { %1780 = vperm.xlu0 %3237, %v3786_v7   ;;  %1760 = vperm.xlu1 %3236, %v3722_v49   ;;  %v4121_v5 = vpop.permute.xlu0 %1451 }
 0x12d   : > { %1788 = vperm.xlu0 %3237, %v3812_v58   ;;  %1768 = vperm.xlu1 %3236, %v3748_v9  }
 0x12e   : > { %v4125_v56 = vpop.permute.xlu1 %1456 }
 0x12f   : > { %5440 = vst [vmem:[#allocation20_spill] sm:$0xff] %v4125_v56 }
 0x131   : > { %1796 = vperm.xlu0 %3237, %v3837_v38   ;;  %1776 = vperm.xlu1 %3236, %v3771_v0  }
 0x132   : > { %v4127_v18 = vpop.permute.xlu0 %1461 }
 0x135   : > { %1804 = vperm.xlu0 %3237, %v5429_v15   ;;  %1784 = vperm.xlu1 %3236, %v3798_v51  }
 0x137   : > { %v4132_v60 = vpop.permute.xlu1 %1466 }
 0x138   : > { %5441 = vst [vmem:[#allocation21_spill] sm:$0xff] %v4132_v60 }
 0x139   : > { %1812 = vperm.xlu0 %3237, %v5432_v53   ;;  %1792 = vperm.xlu1 %3236, %v3826_v10  }
 0x13c   : > { %v4135_v59 = vpop.permute.xlu0 %1471 }
 0x13d   : > { %1820 = vperm.xlu0 %3237, %v5433_v14   ;;  %1800 = vperm.xlu1 %3236, %v3852_v34  }
 0x140   : > { %v4139_v32 = vpop.permute.xlu1 %1476 }
 0x141   : > { %1828 = vperm.xlu0 %3237, %v5435_v40   ;;  %1808 = vperm.xlu1 %3236, %v3875_v23   ;;  %5442 = vst [vmem:[#allocation22_spill] sm:$0xff] %v4139_v32 }
 0x145   : > { %1836 = vperm.xlu0 %3237, %v3982_v1   ;;  %1816 = vperm.xlu1 %3236, %v5428_v6   ;;  %v4141_v30 = vpop.permute.xlu0 %1481 }
 0x149   : > { %1844 = vperm.xlu0 %3237, %v4006_v25   ;;  %1824 = vperm.xlu1 %3236, %v3944_v21   ;;  %v4145_v48 = vpop.permute.xlu1 %1486 }
 0x14a   : > { %5443 = vst [vmem:[#allocation23_spill] sm:$0xff] %v4145_v48 }
 0x14d   : > { %1852 = vperm.xlu0 %3237, %v4021_v36   ;;  %1832 = vperm.xlu1 %3236, %v3971_v13  }
 0x14e   : > { %v4149_v2 = vpop.permute.xlu0 %1491 }
 0x14f   : > { %5444 = vst [vmem:[#allocation24_spill] sm:$0xff] %v4149_v2 }
 0x151   : > { %3238 = vset.pattern.permute.xlu0 %v3298_v3  ;;  %1840 = vperm.xlu1 %3236, %v3994_v17  }
 0x152   : > { %1928 = vperm.xlu0 %3238, %v3617_v45   ;;  %v4153_v32 = vpop.permute.xlu1 %1496 }
 0x153   : > { %5445 = vst [vmem:[#allocation25_spill] sm:$0xff] %v4153_v32  ;;  %v4155_v60 = vpop.permute.xlu0 %1536 }
 0x154   : > { %5446 = vst [vmem:[#allocation26_spill] sm:$0xff] %v4155_v60 }
 0x155   : > { %1848 = vperm.xlu1 %3236, %v4014_v22  }
 0x156   : > { %1940 = vperm.xlu0 %3238, %v3663_v55  }
 0x157   : > { %v4159_v56 = vpop.permute.xlu0 %1548  ;;  %v4161_v12 = vpop.permute.xlu1 %1540 }
 0x158   : > { %5447 = vst [vmem:[#allocation27_spill] sm:$0xff] %v4159_v56 }
 0x159   : > { %1856 = vperm.xlu1 %3236, %v4025_v33  }
 0x15a   : > { %1948 = vperm.xlu0 %3238, %v3695_v29  }
 0x15b   : > { %v4165_v62 = vpop.permute.xlu0 %1556  ;;  %v4167_v39 = vpop.permute.xlu1 %1544 }
 0x15c   : > { %5448 = vst [vmem:[#allocation28_spill] sm:$0xff] %v4165_v62  ;;  %5449 = vst [vmem:[#allocation29_spill] sm:$0xff] %v4167_v39 }
 0x15d   : > { %3239 = vset.pattern.permute.xlu1 %v3298_v3 }
 0x15e   : > { %1956 = vperm.xlu0 %3238, %v3722_v49   ;;  %1932 = vperm.xlu1 %3239, %v3650_v11  }
 0x15f   : > { %v4171_v19 = vpop.permute.xlu0 %1564  ;;  %v4173_v16 = vpop.permute.xlu1 %1552 }
 0x160   : > { %5450 = vst [vmem:[#allocation30_spill] sm:$0xff] %v4171_v19  ;;  %5451 = vst [vmem:[#allocation31_spill] sm:$0xff] %v4173_v16 }
 0x162   : > { %1964 = vperm.xlu0 %3238, %v3748_v9   ;;  %1936 = vperm.xlu1 %3239, %v3641_v37  }
 0x163   : > { %v4177_v61 = vpop.permute.xlu0 %1572  ;;  %v4179_v54 = vpop.permute.xlu1 %1560 }
 0x164   : > { %5452 = vst [vmem:[#allocation32_spill] sm:$0xff] %v4177_v61  ;;  %5453 = vst [vmem:[#allocation33_spill] sm:$0xff] %v4179_v54  ;;  %v3299_v61 = vmov 4  }
 0x166   : > { %1972 = vperm.xlu0 %3238, %v3771_v0   ;;  %1944 = vperm.xlu1 %3239, %v3679_v35  }
 0x167   : > { %v4183_v3 = vpop.permute.xlu0 %1580  ;;  %v4185_v39 = vpop.permute.xlu1 %1568 }
 0x168   : > { %5454 = vst [vmem:[#allocation34_spill] sm:$0xff] %v4183_v3 }
 0x16a   : > { %1980 = vperm.xlu0 %3238, %v3798_v51   ;;  %1952 = vperm.xlu1 %3239, %v3711_v46  }
 0x16b   : > { %v4189_v16 = vpop.permute.xlu0 %1588  ;;  %v4191_v56 = vpop.permute.xlu1 %1576 }
 0x16c   : > { %5455 = vst [vmem:[#allocation35_spill] sm:$0xff] %v4189_v16  ;;  %5456 = vst [vmem:[#allocation36_spill] sm:$0xff] %v4191_v56  ;;  %v3300_v56 = vmov 5  }
 0x16e   : > { %1988 = vperm.xlu0 %3238, %v3826_v10   ;;  %1960 = vperm.xlu1 %3239, %v3733_v28  }
 0x16f   : > { %v4195_v54 = vpop.permute.xlu0 %1596  ;;  %v4197_v32 = vpop.permute.xlu1 %1584 }
 0x170   : > { %5457 = vst [vmem:[#allocation37_spill] sm:$0xff] %v4195_v54  ;;  %5458 = vst [vmem:[#allocation38_spill] sm:$0xff] %v4197_v32 }
 0x172   : > { %1996 = vperm.xlu0 %3238, %v3852_v34   ;;  %1968 = vperm.xlu1 %3239, %v3759_v52  }
 0x173   : > { %v4201_v48 = vpop.permute.xlu0 %1604  ;;  %v4203_v44 = vpop.permute.xlu1 %1592 }
 0x174   : > { %5459 = vst [vmem:[#allocation39_spill] sm:$0xff] %v4201_v48  ;;  %5460 = vst [vmem:[#allocation40_spill] sm:$0xff] %v4203_v44 }
 0x176   : > { %2004 = vperm.xlu0 %3238, %v3875_v23   ;;  %1976 = vperm.xlu1 %3239, %v3786_v7  }
 0x177   : > { %v4207_v16 = vpop.permute.xlu0 %1612  ;;  %v4209_v3 = vpop.permute.xlu1 %1600 }
 0x178   : > { %5461 = vst [vmem:[#allocation41_spill] sm:$0xff] %v4207_v16  ;;  %5462 = vst [vmem:[#allocation42_spill] sm:$0xff] %v4209_v3 }
 0x17a   : > { %2012 = vperm.xlu0 %3238, %v5428_v6   ;;  %1984 = vperm.xlu1 %3239, %v3812_v58  }
 0x17b   : > { %v4213_v54 = vpop.permute.xlu0 %1620  ;;  %v4215_v32 = vpop.permute.xlu1 %1608 }
 0x17c   : > { %5463 = vst [vmem:[#allocation43_spill] sm:$0xff] %v4213_v54  ;;  %5464 = vst [vmem:[#allocation44_spill] sm:$0xff] %v4215_v32 }
 0x17e   : > { %2020 = vperm.xlu0 %3238, %v3944_v21   ;;  %1992 = vperm.xlu1 %3239, %v3837_v38  }
 0x17f   : > { %v4219_v48 = vpop.permute.xlu0 %1628  ;;  %v4221_v44 = vpop.permute.xlu1 %1616 }
 0x180   : > { %5465 = vst [vmem:[#allocation45_spill] sm:$0xff] %v4219_v48  ;;  %5466 = vst [vmem:[#allocation46_spill] sm:$0xff] %v4221_v44 }
 0x182   : > { %2028 = vperm.xlu0 %3238, %v3971_v13   ;;  %2000 = vperm.xlu1 %3239, %v5429_v15  }
 0x183   : > { %v4225_v16 = vpop.permute.xlu0 %1636  ;;  %v4227_v3 = vpop.permute.xlu1 %1624 }
 0x184   : > { %5467 = vst [vmem:[#allocation47_spill] sm:$0xff] %v4225_v16  ;;  %5468 = vst [vmem:[#allocation48_spill] sm:$0xff] %v4227_v3 }
 0x186   : > { %2036 = vperm.xlu0 %3238, %v3994_v17   ;;  %2008 = vperm.xlu1 %3239, %v5432_v53  }
 0x187   : > { %v4231_v54 = vpop.permute.xlu0 %1644  ;;  %v4233_v32 = vpop.permute.xlu1 %1632 }
 0x188   : > { %5469 = vst [vmem:[#allocation49_spill] sm:$0xff] %v4231_v54  ;;  %5470 = vst [vmem:[#allocation50_spill] sm:$0xff] %v4233_v32 }
 0x18a   : > { %2044 = vperm.xlu0 %3238, %v4014_v22   ;;  %2016 = vperm.xlu1 %3239, %v5433_v14  }
 0x18b   : > { %v4237_v48 = vpop.permute.xlu0 %1652  ;;  %v4239_v44 = vpop.permute.xlu1 %1640 }
 0x18c   : > { %5471 = vst [vmem:[#allocation51_spill] sm:$0xff] %v4237_v48  ;;  %5472 = vst [vmem:[#allocation52_spill] sm:$0xff] %v4239_v44 }
 0x18e   : > { %2052 = vperm.xlu0 %3238, %v4025_v33   ;;  %2024 = vperm.xlu1 %3239, %v5435_v40  }
 0x18f   : > { %v4243_v16 = vpop.permute.xlu0 %1660  ;;  %v4245_v3 = vpop.permute.xlu1 %1648 }
 0x190   : > { %5473 = vst [vmem:[#allocation53_spill] sm:$0xff] %v4243_v16 }
 0x192   : > { %3241 = vset.pattern.permute.xlu0 %v3299_v61  ;;  %2032 = vperm.xlu1 %3239, %v3982_v1  }
 0x193   : > { %2128 = vperm.xlu0 %3241, %v3650_v11   ;;  %v4249_v54 = vpop.permute.xlu1 %1656 }
 0x194   : > { %5474 = vst [vmem:[#allocation54_spill] sm:$0xff] %v4249_v54  ;;  %v4251_v32 = vpop.permute.xlu0 %1736 }
 0x196   : > { %2040 = vperm.xlu1 %3239, %v4006_v25  }
 0x197   : > { %2140 = vperm.xlu0 %3241, %v3679_v35  }
 0x198   : > { %v4255_v48 = vpop.permute.xlu0 %1748  ;;  %v4257_v44 = vpop.permute.xlu1 %1732 }
 0x199   : > { %5475 = vst [vmem:[#allocation55_spill] sm:$0xff] %v4255_v48  ;;  %5476 = vst [vmem:[#allocation56_spill] sm:$0xff] %v4257_v44 }
 0x19a   : > { %2048 = vperm.xlu1 %3239, %v4021_v36  }
 0x19b   : > { %2148 = vperm.xlu0 %3241, %v3711_v46  }
 0x19c   : > { %v4261_v16 = vpop.permute.xlu0 %1756  ;;  %v4263_v19 = vpop.permute.xlu1 %1740 }
 0x19d   : > { %5477 = vst [vmem:[#allocation57_spill] sm:$0xff] %v4261_v16  ;;  %5478 = vst [vmem:[#allocation58_spill] sm:$0xff] %v4263_v19 }
 0x19e   : > { %3240 = vset.pattern.permute.xlu1 %v3299_v61 }
 0x19f   : > { %2156 = vperm.xlu0 %3241, %v3733_v28   ;;  %2124 = vperm.xlu1 %3240, %v3617_v45  }
 0x1a0   : > { %v4267_v54 = vpop.permute.xlu0 %1764  ;;  %v4269_v62 = vpop.permute.xlu1 %1744 }
 0x1a1   : > { %5479 = vst [vmem:[#allocation59_spill] sm:$0xff] %v4269_v62 }
 0x1a3   : > { %2164 = vperm.xlu0 %3241, %v3759_v52   ;;  %2132 = vperm.xlu1 %3240, %v3641_v37  }
 0x1a4   : > { %v4273_v48 = vpop.permute.xlu0 %1772  ;;  %v4275_v44 = vpop.permute.xlu1 %1752 }
 0x1a5   : > { %5480 = vst [vmem:[#allocation60_spill] sm:$0xff] %v4273_v48  ;;  %5481 = vst [vmem:[#allocation61_spill] sm:$0xff] %v4275_v44 }
 0x1a7   : > { %2172 = vperm.xlu0 %3241, %v3786_v7   ;;  %2136 = vperm.xlu1 %3240, %v3663_v55  }
 0x1a8   : > { %v4279_v61 = vpop.permute.xlu0 %1780  ;;  %v4281_v16 = vpop.permute.xlu1 %1760 }
 0x1a9   : > { %5482 = vst [vmem:[#allocation62_spill] sm:$0xff] %v4279_v61  ;;  %5483 = vst [vmem:[#allocation63_spill] sm:$0xff] %v4281_v16 }
 0x1ab   : > { %2180 = vperm.xlu0 %3241, %v3812_v58   ;;  %2144 = vperm.xlu1 %3240, %v3695_v29  }
 0x1ac   : > { %v4285_v62 = vpop.permute.xlu0 %1788  ;;  %v4287_v19 = vpop.permute.xlu1 %1768 }
 0x1ad   : > { %5484 = vst [vmem:[#allocation64_spill] sm:$0xff] %v4285_v62  ;;  %5485 = vst [vmem:[#allocation65_spill] sm:$0xff] %v4287_v19 }
 0x1af   : > { %2188 = vperm.xlu0 %3241, %v3837_v38   ;;  %2152 = vperm.xlu1 %3240, %v3722_v49  }
 0x1b0   : > { %v4291_v44 = vpop.permute.xlu0 %1796  ;;  %v4293_v48 = vpop.permute.xlu1 %1776 }
 0x1b1   : > { %5486 = vst [vmem:[#allocation66_spill] sm:$0xff] %v4291_v44  ;;  %5487 = vst [vmem:[#allocation67_spill] sm:$0xff] %v4293_v48 }
 0x1b3   : > { %2196 = vperm.xlu0 %3241, %v5429_v15   ;;  %2160 = vperm.xlu1 %3240, %v3748_v9  }
 0x1b4   : > { %v4297_v16 = vpop.permute.xlu0 %1804  ;;  %v4299_v61 = vpop.permute.xlu1 %1784 }
 0x1b5   : > { %5488 = vst [vmem:[#allocation68_spill] sm:$0xff] %v4297_v16  ;;  %5489 = vst [vmem:[#allocation69_spill] sm:$0xff] %v4299_v61 }
 0x1b7   : > { %2204 = vperm.xlu0 %3241, %v5432_v53   ;;  %2168 = vperm.xlu1 %3240, %v3771_v0  }
 0x1b8   : > { %v4303_v19 = vpop.permute.xlu0 %1812  ;;  %v4305_v62 = vpop.permute.xlu1 %1792 }
 0x1b9   : > { %5490 = vst [vmem:[#allocation70_spill] sm:$0xff] %v4303_v19  ;;  %5491 = vst [vmem:[#allocation71_spill] sm:$0xff] %v4305_v62 }
 0x1bb   : > { %2212 = vperm.xlu0 %3241, %v5433_v14   ;;  %2176 = vperm.xlu1 %3240, %v3798_v51  }
 0x1bc   : > { %v4309_v44 = vpop.permute.xlu0 %1820  ;;  %v4311_v48 = vpop.permute.xlu1 %1800 }
 0x1bd   : > { %5492 = vst [vmem:[#allocation72_spill] sm:$0xff] %v4309_v44  ;;  %5493 = vst [vmem:[#allocation73_spill] sm:$0xff] %v4311_v48 }
 0x1bf   : > { %2220 = vperm.xlu0 %3241, %v5435_v40   ;;  %2184 = vperm.xlu1 %3240, %v3826_v10  }
 0x1c0   : > { %v4315_v61 = vpop.permute.xlu0 %1828  ;;  %v4317_v16 = vpop.permute.xlu1 %1808 }
 0x1c1   : > { %5494 = vst [vmem:[#allocation74_spill] sm:$0xff] %v4315_v61  ;;  %5495 = vst [vmem:[#allocation75_spill] sm:$0xff] %v4317_v16 }
 0x1c3   : > { %2228 = vperm.xlu0 %3241, %v3982_v1   ;;  %2192 = vperm.xlu1 %3240, %v3852_v34  }
 0x1c4   : > { %v4321_v62 = vpop.permute.xlu0 %1836  ;;  %v4323_v19 = vpop.permute.xlu1 %1816 }
 0x1c5   : > { %5496 = vst [vmem:[#allocation76_spill] sm:$0xff] %v4321_v62  ;;  %5497 = vst [vmem:[#allocation77_spill] sm:$0xff] %v4323_v19 }
 0x1c7   : > { %2236 = vperm.xlu0 %3241, %v4006_v25   ;;  %2200 = vperm.xlu1 %3240, %v3875_v23  }
 0x1c8   : > { %v4327_v48 = vpop.permute.xlu0 %1844  ;;  %v4329_v44 = vpop.permute.xlu1 %1824 }
 0x1c9   : > { %5498 = vst [vmem:[#allocation78_spill] sm:$0xff] %v4327_v48  ;;  %5499 = vst [vmem:[#allocation79_spill] sm:$0xff] %v4329_v44 }
 0x1cb   : > { %2244 = vperm.xlu0 %3241, %v4021_v36   ;;  %2208 = vperm.xlu1 %3240, %v5428_v6  }
 0x1cc   : > { %v4333_v16 = vpop.permute.xlu0 %1852  ;;  %v4335_v61 = vpop.permute.xlu1 %1832 }
 0x1cd   : > { %5500 = vst [vmem:[#allocation80_spill] sm:$0xff] %v4333_v16  ;;  %5501 = vst [vmem:[#allocation81_spill] sm:$0xff] %v4335_v61 }
 0x1cf   : > { %3242 = vset.pattern.permute.xlu0 %v3300_v56  ;;  %2216 = vperm.xlu1 %3240, %v3944_v21  }
 0x1d0   : > { %2320 = vperm.xlu0 %3242, %v3617_v45   ;;  %v4339_v19 = vpop.permute.xlu1 %1840 }
 0x1d1   : > { %5502 = vst [vmem:[#allocation82_spill] sm:$0xff] %v4339_v19  ;;  %v4341_v62 = vpop.permute.xlu0 %1928 }
 0x1d2   : > { %5503 = vst [vmem:[#allocation83_spill] sm:$0xff] %v4341_v62 }
 0x1d3   : > { %2224 = vperm.xlu1 %3240, %v3971_v13  }
 0x1d4   : > { %2332 = vperm.xlu0 %3242, %v3663_v55   ;;  %v4345_v44 = vpop.permute.xlu1 %1848 }
 0x1d5   : > { %5504 = vst [vmem:[#allocation84_spill] sm:$0xff] %v4345_v44  ;;  %v4347_v48 = vpop.permute.xlu0 %1940 }
 0x1d6   : > { %5505 = vst [vmem:[#allocation85_spill] sm:$0xff] %v4347_v48 }
 0x1d7   : > { %2232 = vperm.xlu1 %3240, %v3994_v17  }
 0x1d8   : > { %2340 = vperm.xlu0 %3242, %v3695_v29   ;;  %v4351_v61 = vpop.permute.xlu1 %1856 }
 0x1d9   : > { %5506 = vst [vmem:[#allocation86_spill] sm:$0xff] %v4351_v61  ;;  %v4353_v16 = vpop.permute.xlu0 %1948 }
 0x1da   : > { %5507 = vst [vmem:[#allocation87_spill] sm:$0xff] %v4353_v16 }
 0x1db   : > { %2240 = vperm.xlu1 %3240, %v4014_v22  }
 0x1dc   : > { %2348 = vperm.xlu0 %3242, %v3722_v49  }
 0x1dd   : > { %v4357_v19 = vpop.permute.xlu0 %1956  ;;  %v4359_v62 = vpop.permute.xlu1 %1932 }
 0x1de   : > { %5508 = vst [vmem:[#allocation88_spill] sm:$0xff] %v4357_v19 }
 0x1df   : > { %2248 = vperm.xlu1 %3240, %v4025_v33  }
 0x1e0   : > { %2356 = vperm.xlu0 %3242, %v3748_v9  }
 0x1e1   : > { %v4363_v48 = vpop.permute.xlu0 %1964  ;;  %v4365_v44 = vpop.permute.xlu1 %1936 }
 0x1e2   : > { %5509 = vst [vmem:[#allocation89_spill] sm:$0xff] %v4363_v48  ;;  %5510 = vst [vmem:[#allocation90_spill] sm:$0xff] %v4365_v44 }
 0x1e3   : > { %3243 = vset.pattern.permute.xlu1 %v3300_v56 }
 0x1e4   : > { %2364 = vperm.xlu0 %3242, %v3771_v0   ;;  %2324 = vperm.xlu1 %3243, %v3650_v11  }
 0x1e5   : > { %v4369_v61 = vpop.permute.xlu0 %1972  ;;  %v4371_v16 = vpop.permute.xlu1 %1944 }
 0x1e6   : > { %5511 = vst [vmem:[#allocation91_spill] sm:$0xff] %v4369_v61  ;;  %5512 = vst [vmem:[#allocation92_spill] sm:$0xff] %v4371_v16 }
 0x1e8   : > { %2372 = vperm.xlu0 %3242, %v3798_v51   ;;  %2328 = vperm.xlu1 %3243, %v3641_v37  }
 0x1e9   : > { %v4375_v19 = vpop.permute.xlu0 %1980  ;;  %v4377_v60 = vpop.permute.xlu1 %1952 }
 0x1ea   : > { %5513 = vst [vmem:[#allocation93_spill] sm:$0xff] %v4375_v19  ;;  %5514 = vst [vmem:[#allocation94_spill] sm:$0xff] %v4377_v60 }
 0x1ec   : > { %2380 = vperm.xlu0 %3242, %v3826_v10   ;;  %2336 = vperm.xlu1 %3243, %v3679_v35  }
 0x1ed   : > { %v4381_v56 = vpop.permute.xlu0 %1988  ;;  %v4383_v44 = vpop.permute.xlu1 %1960 }
 0x1ee   : > { %5515 = vst [vmem:[#allocation95_spill] sm:$0xff] %v4381_v56  ;;  %5516 = vst [vmem:[#allocation96_spill] sm:$0xff] %v4383_v44  ;;  %v3301_v44 = vmov 6  }
 0x1f0   : > { %2388 = vperm.xlu0 %3242, %v3852_v34   ;;  %2344 = vperm.xlu1 %3243, %v3711_v46  }
 0x1f1   : > { %v4387_v16 = vpop.permute.xlu0 %1996  ;;  %v4389_v61 = vpop.permute.xlu1 %1968 }
 0x1f2   : > { %5517 = vst [vmem:[#allocation97_spill] sm:$0xff] %v4387_v16  ;;  %5518 = vst [vmem:[#allocation98_spill] sm:$0xff] %v4389_v61 }
 0x1f4   : > { %2396 = vperm.xlu0 %3242, %v3875_v23   ;;  %2352 = vperm.xlu1 %3243, %v3733_v28  }
 0x1f5   : > { %v4393_v60 = vpop.permute.xlu0 %2004  ;;  %v4395_v19 = vpop.permute.xlu1 %1976 }
 0x1f6   : > { %5519 = vst [vmem:[#allocation99_spill] sm:$0xff] %v4393_v60  ;;  %5520 = vst [vmem:[#allocation100_spill] sm:$0xff] %v4395_v19 }
 0x1f8   : > { %2404 = vperm.xlu0 %3242, %v5428_v6   ;;  %2360 = vperm.xlu1 %3243, %v3759_v52  }
 0x1f9   : > { %v4399_v56 = vpop.permute.xlu0 %2012  ;;  %v4401_v48 = vpop.permute.xlu1 %1984 }
 0x1fa   : > { %5521 = vst [vmem:[#allocation101_spill] sm:$0xff] %v4399_v56  ;;  %5522 = vst [vmem:[#allocation102_spill] sm:$0xff] %v4401_v48 }
 0x1fc   : > { %2412 = vperm.xlu0 %3242, %v3944_v21   ;;  %2368 = vperm.xlu1 %3243, %v3786_v7  }
 0x1fd   : > { %v4405_v16 = vpop.permute.xlu0 %2020  ;;  %v4407_v61 = vpop.permute.xlu1 %1992 }
 0x1fe   : > { %5523 = vst [vmem:[#allocation103_spill] sm:$0xff] %v4405_v16  ;;  %5524 = vst [vmem:[#allocation104_spill] sm:$0xff] %v4407_v61 }
 0x200   : > { %2420 = vperm.xlu0 %3242, %v3971_v13   ;;  %2376 = vperm.xlu1 %3243, %v3812_v58  }
 0x201   : > { %v4411_v60 = vpop.permute.xlu0 %2028  ;;  %v4413_v19 = vpop.permute.xlu1 %2000 }
 0x202   : > { %5525 = vst [vmem:[#allocation105_spill] sm:$0xff] %v4411_v60  ;;  %5526 = vst [vmem:[#allocation106_spill] sm:$0xff] %v4413_v19 }
 0x204   : > { %2428 = vperm.xlu0 %3242, %v3994_v17   ;;  %2384 = vperm.xlu1 %3243, %v3837_v38  }
 0x205   : > { %v4417_v56 = vpop.permute.xlu0 %2036  ;;  %v4419_v48 = vpop.permute.xlu1 %2008 }
 0x206   : > { %5527 = vst [vmem:[#allocation107_spill] sm:$0xff] %v4417_v56  ;;  %5528 = vst [vmem:[#allocation108_spill] sm:$0xff] %v4419_v48 }
 0x208   : > { %2436 = vperm.xlu0 %3242, %v4014_v22   ;;  %2392 = vperm.xlu1 %3243, %v5429_v15  }
 0x209   : > { %v4423_v16 = vpop.permute.xlu0 %2044  ;;  %v4425_v61 = vpop.permute.xlu1 %2016 }
 0x20a   : > { %5529 = vst [vmem:[#allocation109_spill] sm:$0xff] %v4423_v16  ;;  %5530 = vst [vmem:[#allocation110_spill] sm:$0xff] %v4425_v61 }
 0x20c   : > { %2444 = vperm.xlu0 %3242, %v4025_v33   ;;  %2400 = vperm.xlu1 %3243, %v5432_v53  }
 0x20d   : > { %v4429_v60 = vpop.permute.xlu0 %2052  ;;  %v4431_v19 = vpop.permute.xlu1 %2024 }
 0x20e   : > { %5531 = vst [vmem:[#allocation111_spill] sm:$0xff] %v4429_v60  ;;  %5532 = vst [vmem:[#allocation112_spill] sm:$0xff] %v4431_v19 }
 0x210   : > { %3245 = vset.pattern.permute.xlu0 %v3301_v44  ;;  %2408 = vperm.xlu1 %3243, %v5433_v14  }
 0x211   : > { %2520 = vperm.xlu0 %3245, %v3650_v11   ;;  %v4435_v56 = vpop.permute.xlu1 %2032 }
 0x212   : > { %5533 = vst [vmem:[#allocation113_spill] sm:$0xff] %v4435_v56  ;;  %v4437_v48 = vpop.permute.xlu0 %2128 }
 0x214   : > { %2416 = vperm.xlu1 %3243, %v5435_v40  }
 0x215   : > { %2532 = vperm.xlu0 %3245, %v3679_v35   ;;  %v4441_v16 = vpop.permute.xlu1 %2040 }
 0x216   : > { %5534 = vst [vmem:[#allocation114_spill] sm:$0xff] %v4441_v16  ;;  %v4443_v61 = vpop.permute.xlu0 %2140 }
 0x217   : > { %5535 = vst [vmem:[#allocation115_spill] sm:$0xff] %v4443_v61 }
 0x218   : > { %2424 = vperm.xlu1 %3243, %v3982_v1  }
 0x219   : > { %2540 = vperm.xlu0 %3245, %v3711_v46   ;;  %v4447_v60 = vpop.permute.xlu1 %2048 }
 0x21a   : > { %5536 = vst [vmem:[#allocation116_spill] sm:$0xff] %v4447_v60  ;;  %v4449_v19 = vpop.permute.xlu0 %2148 }
 0x21b   : > { %5537 = vst [vmem:[#allocation117_spill] sm:$0xff] %v4449_v19 }
 0x21c   : > { %2432 = vperm.xlu1 %3243, %v4006_v25  }
 0x21d   : > { %2548 = vperm.xlu0 %3245, %v3733_v28  }
 0x21e   : > { %v4453_v56 = vpop.permute.xlu0 %2156  ;;  %v4455_v2 = vpop.permute.xlu1 %2124 }
 0x21f   : > { %5538 = vst [vmem:[#allocation118_spill] sm:$0xff] %v4453_v56  ;;  %5539 = vst [vmem:[#allocation119_spill] sm:$0xff] %v4455_v2 }
 0x220   : > { %2440 = vperm.xlu1 %3243, %v4021_v36  }
 0x221   : > { %2556 = vperm.xlu0 %3245, %v3759_v52  }
 0x222   : > { %v4459_v61 = vpop.permute.xlu0 %2164  ;;  %v4461_v16 = vpop.permute.xlu1 %2132 }
 0x223   : > { %5540 = vst [vmem:[#allocation120_spill] sm:$0xff] %v4461_v16 }
 0x224   : > { %3244 = vset.pattern.permute.xlu1 %v3301_v44 }
 0x225   : > { %2564 = vperm.xlu0 %3245, %v3786_v7   ;;  %2516 = vperm.xlu1 %3244, %v3617_v45  }
 0x226   : > { %v4465_v19 = vpop.permute.xlu0 %2172  ;;  %v4467_v60 = vpop.permute.xlu1 %2136 }
 0x227   : > { %5541 = vst [vmem:[#allocation121_spill] sm:$0xff] %v4467_v60 }
 0x229   : > { %2572 = vperm.xlu0 %3245, %v3812_v58   ;;  %2524 = vperm.xlu1 %3244, %v3641_v37  }
 0x22a   : > { %v4471_v2 = vpop.permute.xlu0 %2180  ;;  %v4473_v56 = vpop.permute.xlu1 %2144 }
 0x22b   : > { %5542 = vst [vmem:[#allocation122_spill] sm:$0xff] %v4471_v2  ;;  %5543 = vst [vmem:[#allocation123_spill] sm:$0xff] %v4473_v56 }
 0x22d   : > { %2580 = vperm.xlu0 %3245, %v3837_v38   ;;  %2528 = vperm.xlu1 %3244, %v3663_v55  }
 0x22e   : > { %v4477_v44 = vpop.permute.xlu0 %2188  ;;  %v4479_v16 = vpop.permute.xlu1 %2152 }
 0x22f   : > { %5544 = vst [vmem:[#allocation124_spill] sm:$0xff] %v4477_v44  ;;  %5545 = vst [vmem:[#allocation125_spill] sm:$0xff] %v4479_v16 }
 0x231   : > { %2588 = vperm.xlu0 %3245, %v5429_v15   ;;  %2536 = vperm.xlu1 %3244, %v3695_v29  }
 0x232   : > { %v4483_v60 = vpop.permute.xlu0 %2196  ;;  %v4485_v58 = vpop.permute.xlu1 %2160 }
 0x233   : > { %5546 = vst [vmem:[#allocation126_spill] sm:$0xff] %v4483_v60  ;;  %5547 = vst [vmem:[#allocation127_spill] sm:$0xff] %v4485_v58 }
 0x235   : > { %2596 = vperm.xlu0 %3245, %v5432_v53   ;;  %2544 = vperm.xlu1 %3244, %v3722_v49  }
 0x236   : > { %v4489_v56 = vpop.permute.xlu0 %2204  ;;  %v4491_v2 = vpop.permute.xlu1 %2168 }
 0x237   : > { %5548 = vst [vmem:[#allocation128_spill] sm:$0xff] %v4489_v56  ;;  %5549 = vst [vmem:[#allocation129_spill] sm:$0xff] %v4491_v2 }
 0x239   : > { %2604 = vperm.xlu0 %3245, %v5433_v14   ;;  %2552 = vperm.xlu1 %3244, %v3748_v9  }
 0x23a   : > { %v4495_v44 = vpop.permute.xlu0 %2212  ;;  %v4497_v16 = vpop.permute.xlu1 %2176 }
 0x23b   : > { %5550 = vst [vmem:[#allocation130_spill] sm:$0xff] %v4495_v44  ;;  %5551 = vst [vmem:[#allocation131_spill] sm:$0xff] %v4497_v16 }
 0x23d   : > { %2612 = vperm.xlu0 %3245, %v5435_v40   ;;  %2560 = vperm.xlu1 %3244, %v3771_v0  }
 0x23e   : > { %v4501_v58 = vpop.permute.xlu0 %2220  ;;  %v4503_v60 = vpop.permute.xlu1 %2184 }
 0x23f   : > { %5552 = vst [vmem:[#allocation132_spill] sm:$0xff] %v4501_v58  ;;  %5553 = vst [vmem:[#allocation133_spill] sm:$0xff] %v4503_v60 }
 0x241   : > { %2620 = vperm.xlu0 %3245, %v3982_v1   ;;  %2568 = vperm.xlu1 %3244, %v3798_v51   ;;  %v3302_v51 = vmov 7  }
 0x242   : > { %v4507_v2 = vpop.permute.xlu0 %2228  ;;  %v4509_v56 = vpop.permute.xlu1 %2192 }
 0x243   : > { %5554 = vst [vmem:[#allocation134_spill] sm:$0xff] %v4507_v2  ;;  %5555 = vst [vmem:[#allocation135_spill] sm:$0xff] %v4509_v56 }
 0x245   : > { %2628 = vperm.xlu0 %3245, %v4006_v25   ;;  %2576 = vperm.xlu1 %3244, %v3826_v10  }
 0x246   : > { %v4513_v16 = vpop.permute.xlu0 %2236  ;;  %v4515_v44 = vpop.permute.xlu1 %2200 }
 0x247   : > { %5556 = vst [vmem:[#allocation136_spill] sm:$0xff] %v4515_v44 }
 0x249   : > { %2636 = vperm.xlu0 %3245, %v4021_v36   ;;  %2584 = vperm.xlu1 %3244, %v3852_v34  }
 0x24a   : > { %v4519_v60 = vpop.permute.xlu0 %2244  ;;  %v4521_v58 = vpop.permute.xlu1 %2208 }
 0x24b   : > { %5557 = vst [vmem:[#allocation137_spill] sm:$0xff] %v4519_v60  ;;  %5558 = vst [vmem:[#allocation138_spill] sm:$0xff] %v4521_v58 }
 0x24d   : > { %3246 = vset.pattern.permute.xlu0 %v3302_v51  ;;  %2592 = vperm.xlu1 %3244, %v3875_v23  }
 0x24e   : > { %2712 = vperm.xlu0 %3246, %v3617_v45   ;;  %v4525_v56 = vpop.permute.xlu1 %2216 }
 0x24f   : > { %5559 = vst [vmem:[#allocation139_spill] sm:$0xff] %v4525_v56  ;;  %v4527_v2 = vpop.permute.xlu0 %2320 }
 0x250   : > { %5560 = vst [vmem:[#allocation140_spill] sm:$0xff] %v4527_v2  ;;  %v5603_v2 = vld [vmem:[#allocation34_spill] sm:$0xff] }
 0x251   : > { %2600 = vperm.xlu1 %3244, %v5428_v6  }
 0x252   : > { %2724 = vperm.xlu0 %3246, %v3663_v55   ;;  %v4531_v44 = vpop.permute.xlu1 %2224 }
 0x253   : > { %5561 = vst [vmem:[#allocation141_spill] sm:$0xff] %v4531_v44  ;;  %v4533_v10 = vpop.permute.xlu0 %2332 }
 0x254   : > { %5562 = vst [vmem:[#allocation142_spill] sm:$0xff] %v4533_v10 }
 0x255   : > { %2608 = vperm.xlu1 %3244, %v3944_v21  }
 0x256   : > { %2776 = vperm.xlu0 %3246, %v3837_v38   ;;  %v4537_v58 = vpop.permute.xlu1 %2232 }
 0x257   : > { %5563 = vst [vmem:[#allocation143_spill] sm:$0xff] %v4537_v58  ;;  %v4539_v60 = vpop.permute.xlu0 %2340 }
 0x259   : > { %2616 = vperm.xlu1 %3244, %v3971_v13  }
 0x25a   : > { %2784 = vperm.xlu0 %3246, %v5429_v15   ;;  %v4543_v45 = vpop.permute.xlu1 %2240 }
 0x25b   : > { %5564 = vst [vmem:[#allocation144_spill] sm:$0xff] %v4543_v45  ;;  %v4545_v56 = vpop.permute.xlu0 %2348  ;;  %v5599_v45 = vld [vmem:[#allocation96_spill] sm:$0xff] }
 0x25d   : > { %2624 = vperm.xlu1 %3244, %v3994_v17  }
 0x25e   : > { %2792 = vperm.xlu0 %3246, %v5432_v53   ;;  %v4549_v55 = vpop.permute.xlu1 %2248 }
 0x25f   : > { %5565 = vst [vmem:[#allocation145_spill] sm:$0xff] %v4549_v55  ;;  %v4551_v44 = vpop.permute.xlu0 %2356 }
 0x261   : > { %2632 = vperm.xlu1 %3244, %v4014_v22  }
 0x262   : > { %2796 = vperm.xlu0 %3246, %v5428_v6  }
 0x263   : > { %v4555_v38 = vpop.permute.xlu0 %2364  ;;  %v2325_v58 = vpop.permute.xlu1 %2324 }
 0x265   : > { %2640 = vperm.xlu1 %3244, %v4025_v33  }
 0x266   : > { %2800 = vperm.xlu0 %3246, %v5433_v14  }
 0x267   : > { %v4559_v15 = vpop.permute.xlu0 %2372  ;;  %v4561_v10 = vpop.permute.xlu1 %2328 }
 0x268   : > { %5566 = vst [vmem:[#allocation146_spill] sm:$0xff] %v4561_v10 }
 0x269   : > { %3247 = vset.pattern.permute.xlu1 %v3302_v51 }
 0x26a   : > { %2804 = vperm.xlu0 %3246, %v3944_v21   ;;  %2716 = vperm.xlu1 %3247, %v3650_v11  }
 0x26b   : > { %v4565_v53 = vpop.permute.xlu0 %2380  ;;  %v4567_v55 = vpop.permute.xlu1 %2336 }
 0x26c   : > { %5567 = vst [vmem:[#allocation147_spill] sm:$0xff] %v4565_v53  ;;  %5568 = vst [vmem:[#allocation148_spill] sm:$0xff] %v4567_v55 }
 0x26e   : > { %2808 = vperm.xlu0 %3246, %v5435_v40   ;;  %2720 = vperm.xlu1 %3247, %v3641_v37  }
 0x26f   : > { %v4571_v6 = vpop.permute.xlu0 %2388  ;;  %v4573_v14 = vpop.permute.xlu1 %2344 }
 0x270   : > { %5569 = vst [vmem:[#allocation149_spill] sm:$0xff] %v4571_v6  ;;  %5570 = vst [vmem:[#allocation150_spill] sm:$0xff] %v4573_v14 }
 0x272   : > { %2812 = vperm.xlu0 %3246, %v3971_v13   ;;  %2728 = vperm.xlu1 %3247, %v3679_v35  }
 0x273   : > { %v4577_v51 = vpop.permute.xlu0 %2396  ;;  %v4579_v21 = vpop.permute.xlu1 %2352 }
 0x274   : > { %5571 = vst [vmem:[#allocation151_spill] sm:$0xff] %v4577_v51 }
 0x276   : > { %2816 = vperm.xlu0 %3246, %v3982_v1   ;;  %2780 = vperm.xlu1 %3247, %v3852_v34   ;;  %v4600_v34 = vld [vmem:[%s5386_s3] sm:$0xff] }
 0x277   : > { %v4583_v11 = vpop.permute.xlu0 %2404  ;;  %v4585_v40 = vpop.permute.xlu1 %2360  ;;  %5575 = vst [vmem:[#allocation155_spill] sm:$0xff] %v4600_v34 }
 0x278   : > { %5572 = vst [vmem:[#allocation152_spill] sm:$0xff] %v4583_v11 }
 0x27a   : > { %2820 = vperm.xlu0 %3246, %v3994_v17   ;;  %2788 = vperm.xlu1 %3247, %v3875_v23   ;;  %v5576_v17 = vld [vmem:[#allocation8_spill] sm:$0xff] }
 0x27b   : > { %v4589_v37 = vpop.permute.xlu0 %2412  ;;  %v4591_v13 = vpop.permute.xlu1 %2368  ;;  %v5577_v11 = vsub.s32 1, %v5576_v17  ;;  %v5581_v14 = vsub.s32 0, %v5576_v17  ;;  %v5584_v6 = vsub.s32 4, %v5576_v17  ;;  %v5586_v10 = vsub.s32 5, %v5576_v17 }
 0x27c   : > { %5573 = vst [vmem:[#allocation153_spill] sm:$0xff] %v4589_v37 }
 0x27d   : > { %v4607_v23 = vrot.slane %v4600_v34, %v5577_v11  ;;  %v4623_v51 = vrot.slane %v4600_v34, %v5581_v14  ;;  %v4640_v14 = vrot.slane %v4600_v34, %v5584_v6  ;;  %v4655_v6 = vrot.slane %v4600_v34, %v5586_v10 }
 0x27e   : > { %2824 = vperm.xlu0 %3246, %v4006_v25   ;;  %2732 = vperm.xlu1 %3247, %v3695_v29   ;;  %v5578_v25 = vsub.s32 2, %v5576_v17 }
 0x27f   : > { %v4595_v35 = vpop.permute.xlu0 %2420  ;;  %v4602_v1 = vpop.permute.xlu1 %2376  ;;  %5582 = vst [vmem:[#allocation158_spill] sm:$0xff] %v4623_v51  ;;  %v1668_v11 = vmul.f32 %v4607_v23, %v4161_v12  ;;  %v1508_v10 = vmul.f32 %v4623_v51, %v4063_v24  ;;  %v1515_v24 = vmul.f32 %v4623_v51, %v4085_v42  ;;  %v1675_v42 = vmul.f32 %v4607_v23, %v4185_v39 }
 0x280   : > { %5574 = vst [vmem:[#allocation154_spill] sm:$0xff] %v4595_v35  ;;  %v4613_v29 = vrot.slane %v4600_v34, %v5578_v25  ;;  %v5583_v25 = vsub.s32 3, %v5576_v17  ;;  %v4724_v39 = vmul.f32 %v4623_v51, %v4135_v59  ;;  %v5594_v59 = vld [vmem:[#allocation36_spill] sm:$0xff] }
 0x282   : > { %2828 = vperm.xlu0 %3246, %v4014_v22   ;;  %2736 = vperm.xlu1 %3247, %v3711_v46   ;;  %v1504_v22 = vmul.f32 %v4623_v51, %v4051_v8  ;;  %v1864_v46 = vmul.f32 %v4613_v29, %v4251_v32 }
 0x283   : > { %v4616_v35 = vpop.permute.xlu0 %2428  ;;  %v4618_v37 = vpop.permute.xlu1 %2384 }
 0x284   : > { %5579 = vst [vmem:[#allocation156_spill] sm:$0xff] %v4616_v35  ;;  %5580 = vst [vmem:[#allocation157_spill] sm:$0xff] %v4618_v37  ;;  %v4635_v35 = vrot.slane %v4600_v34, %v5583_v25  ;;  %v1700_v8 = vadd.f32 %v1668_v11, %v1504_v22  ;;  %v2256_v25 = vmul.f32 %v4640_v14, %v4437_v48  ;;  %v5600_v37 = vld [vmem:[#allocation32_spill] sm:$0xff] }
 0x285   : > { %v4670_v48 = vmul.f32 %v4623_v51, %v4044_v43 }
 0x286   : > { %2832 = vperm.xlu0 %3246, %v4021_v36   ;;  %2740 = vperm.xlu1 %3247, %v3722_v49   ;;  %v2060_v32 = vmul.f32 %v4635_v35, %v4359_v62  ;;  %v1896_v55 = vadd.f32 %v1864_v46, %v1700_v8  ;;  %v2452_v62 = vmul.f32 %v4655_v6, %v2325_v58 }
 0x287   : > { %v4643_v12 = vpop.permute.xlu0 %2436  ;;  %v4645_v36 = vpop.permute.xlu1 %2392  ;;  %5589 = vst [vmem:[#allocation161_spill] sm:$0xff] %v4670_v48  ;;  %v1512_v58 = vmul.f32 %v4623_v51, %v4077_v4  ;;  %v1513_v46 = vmul.f32 %v4623_v51, %v4079_v47  ;;  %v1514_v8 = vmul.f32 %v4623_v51, %v4083_v50  ;;  %v4697_v4 = vmul.f32 %v4623_v51, %v4097_v27 }
 0x288   : > { %5585 = vst [vmem:[#allocation159_spill] sm:$0xff] %v4643_v12  ;;  %v2092_v11 = vadd.f32 %v2060_v32, %v1896_v55  ;;  %v1511_v55 = vmul.f32 %v4623_v51, %v4072_v20  ;;  %v4693_v20 = vmul.f32 %v4623_v51, %v4093_v41  ;;  %v4710_v41 = vmul.f32 %v4623_v51, %v4113_v31 }
 0x289   : > { %v4714_v27 = vmul.f32 %v4623_v51, %v4121_v5  ;;  %v1871_v31 = vmul.f32 %v4613_v29, %v4267_v54 }
 0x28a   : > { %2836 = vperm.xlu0 %3246, %v4025_v33   ;;  %2744 = vperm.xlu1 %3247, %v3733_v28   ;;  %v5588_v33 = vsub.s32 6, %v5576_v17  ;;  %v1510_v28 = vmul.f32 %v4623_v51, %v4069_v26  ;;  %v2288_v43 = vadd.f32 %v2256_v25, %v2092_v11  ;;  %v4689_v26 = vmul.f32 %v4623_v51, %v4090_v63  ;;  %v5601_v17 = vld [vmem:[#allocation60_spill] sm:$0xff] }
 0x28b   : > { %v4658_v49 = vpop.permute.xlu0 %2444  ;;  %v4660_v12 = vpop.permute.xlu1 %2400  ;;  %v4718_v25 = vmul.f32 %v4623_v51, %v4127_v18  ;;  %v1531_v11 = vmul.f32 %v4623_v51, %v4141_v30 }
 0x28c   : > { %5587 = vst [vmem:[#allocation160_spill] sm:$0xff] %v4658_v49  ;;  %v4666_v22 = vrot.slane %v4600_v34, %v5588_v33  ;;  %v2484_v63 = vadd.f32 %v2452_v62, %v2288_v43  ;;  %v5591_v62 = vld [vmem:[#allocation24_spill] sm:$0xff]  ;;  %v5592_v33 = vld [vmem:[#allocation26_spill] sm:$0xff]  ;;  %v1677_v43 = vmul.f32 %v4607_v23, %v5594_v59  ;;  %v1676_v59 = vmul.f32 %v4607_v23, %v5600_v37 }
 0x28d   : > { %v4735_v18 = vmul.f32 %v4623_v51, %v5591_v62 }
 0x28e   : > { %2748 = vperm.xlu1 %3247, %v3748_v9   ;;  %v4703_v9 = vmul.f32 %v4623_v51, %v4107_v57  ;;  %v1695_v57 = vmul.f32 %v4607_v23, %v4245_v3  ;;  %v4739_v3 = vmul.f32 %v4607_v23, %v5592_v33  ;;  %v2067_v33 = vmul.f32 %v4635_v35, %v5599_v45  ;;  %v5602_v51 = vld [vmem:[#allocation114_spill] sm:$0xff] }
 0x28f   : > { %v4699_v47 = vpop.permute.xlu1 %2408  ;;  %v1709_v37 = vadd.f32 %v1677_v43, %v1513_v46  ;;  %v4782_v46 = vadd.f32 %v1676_v59, %v1512_v58  ;;  %v5609_v58 = vld [vmem:[#allocation100_spill] sm:$0xff] }
 0x290   : > { %v2521_v50 = vpop.permute.xlu0 %2520  ;;  %5593 = vst [vmem:[#allocation24_spill] sm:$0xff] %v4739_v3  ;;  %v1727_v34 = vadd.f32 %v1695_v57, %v1531_v11  ;;  %v5604_v3 = vld [vmem:[#allocation38_spill] sm:$0xff] }
 0x291   : > { %v2648_v32 = vmul.f32 %v4666_v22, %v2521_v50  ;;  %v5595_v50 = vld [vmem:[#allocation78_spill] sm:$0xff] }
 0x292   : > { %2752 = vperm.xlu1 %3247, %v3759_v52   ;;  %v1891_v30 = vmul.f32 %v4613_v29, %v5595_v50  ;;  %v5597_v52 = vld [vmem:[#allocation28_spill] sm:$0xff]  ;;  %v1873_v50 = vmul.f32 %v4613_v29, %v5601_v17  ;;  %v5606_v11 = vld [vmem:[#allocation98_spill] sm:$0xff] }
 0x293   : > { %v4731_v5 = vadd.f32 %v2648_v32, %v2484_v63  ;;  %v4745_v49 = vpop.permute.xlu1 %2416  ;;  %v1672_v63 = vmul.f32 %v4607_v23, %v5597_v52  ;;  %v5598_v32 = vld [vmem:[#allocation30_spill] sm:$0xff]  ;;  %v1678_v52 = vmul.f32 %v4607_v23, %v5603_v2  ;;  %v2069_v17 = vmul.f32 %v4635_v35, %v5606_v11 }
 0x294   : > { %v4747_v54 = vpop.permute.xlu0 %2532  ;;  %v1674_v62 = vmul.f32 %v4607_v23, %v5598_v32  ;;  %v1679_v32 = vmul.f32 %v4607_v23, %v5604_v3  ;;  %v1923_v57 = vadd.f32 %v1891_v30, %v1727_v34  ;;  %v1905_v34 = vadd.f32 %v1873_v50, %v1709_v37  ;;  %v5607_v3 = vld [vmem:[#allocation62_spill] sm:$0xff]  ;;  %v5612_v37 = vld [vmem:[#allocation64_spill] sm:$0xff] }
 0x295   : > { %5590 = vst [vmem:[#allocation162_spill] sm:$0xff] %v4731_v5  ;;  %5596 = vst [vmem:[#allocation26_spill] sm:$0xff] %v4747_v54  ;;  %v1707_v5 = vadd.f32 %v1675_v42, %v1511_v55  ;;  %v2087_v54 = vmul.f32 %v4635_v35, %v5602_v51  ;;  %v5605_v42 = vld [vmem:[#allocation118_spill] sm:$0xff]  ;;  %v2283_v51 = vmul.f32 %v4640_v14, %v4513_v16 }
 0x296   : > { %v2263_v45 = vmul.f32 %v4640_v14, %v5605_v42  ;;  %2756 = vperm.xlu1 %3247, %v3771_v0   ;;  %v4776_v53 = vadd.f32 %v1672_v63, %v1508_v10  ;;  %v2459_v0 = vmul.f32 %v4655_v6, %v4579_v21  ;;  %v1875_v43 = vmul.f32 %v4613_v29, %v5607_v3  ;;  %v5614_v3 = vld [vmem:[#allocation44_spill] sm:$0xff] }
 0x297   : > { %v1903_v55 = vadd.f32 %v1871_v31, %v1707_v5  ;;  %v4772_v48 = vpop.permute.xlu1 %2424  ;;  %v4778_v31 = vadd.f32 %v1674_v62, %v1510_v28  ;;  %v2119_v30 = vadd.f32 %v2087_v54, %v1923_v57  ;;  %v4786_v16 = vadd.f32 %v1678_v52, %v1514_v8  ;;  %v5608_v28 = vld [vmem:[#allocation40_spill] sm:$0xff]  ;;  %v5610_v52 = vld [vmem:[#allocation35_spill] sm:$0xff] }
 0x298   : > { %v4774_v2 = vpop.permute.xlu0 %2540  ;;  %v1711_v42 = vadd.f32 %v1679_v32, %v1515_v24  ;;  %v2265_v10 = vmul.f32 %v4640_v14, %v4459_v61  ;;  %v1681_v63 = vmul.f32 %v4607_v23, %v5608_v28  ;;  %v2101_v21 = vadd.f32 %v2069_v17, %v1905_v34  ;;  %v5611_v32 = vld [vmem:[#allocation37_spill] sm:$0xff] }
 0x299   : > { %v2099_v5 = vadd.f32 %v2067_v33, %v1903_v55  ;;  %v2071_v62 = vmul.f32 %v4635_v35, %v5609_v58  ;;  %v2315_v33 = vadd.f32 %v2283_v51, %v2119_v30  ;;  %v2461_v8 = vmul.f32 %v4655_v6, %v4585_v40  ;;  %v5613_v40 = vld [vmem:[#allocation9_spill] sm:$0xff] }
 0x29a   : > { %2760 = vperm.xlu1 %3247, %v3786_v7   ;;  %v1680_v7 = vmul.f32 %v4607_v23, %v5610_v52  ;;  %v1682_v55 = vmul.f32 %v4607_v23, %v5611_v32  ;;  %v1877_v57 = vmul.f32 %v4613_v29, %v5612_v37  ;;  %v2297_v17 = vadd.f32 %v2265_v10, %v2101_v21  ;;  %v5616_v21 = vld [vmem:[#allocation102_spill] sm:$0xff] }
 0x29b   : > { %v2295_v11 = vadd.f32 %v2263_v45, %v2099_v5  ;;  %v2433_v59 = vpop.permute.xlu1 %2432  ;;  %v1907_v45 = vadd.f32 %v1875_v43, %v1711_v42  ;;  %v2267_v51 = vmul.f32 %v4640_v14, %v4465_v19  ;;  %v1713_v34 = vadd.f32 %v1681_v63, %v4693_v20  ;;  %v5617_v63 = vld [vmem:[#allocation48_spill] sm:$0xff]  ;;  %v5621_v37 = vld [vmem:[#allocation10_spill] sm:$0xff] }
 0x29c   : > { %v2549_v50 = vpop.permute.xlu0 %2548  ;;  %v2479_v24 = vmul.f32 %v4655_v6, %v2433_v59  ;;  %v1685_v30 = vmul.f32 %v4607_v23, %v5614_v3  ;;  %v2073_v19 = vmul.f32 %v4635_v35, %v5616_v21  ;;  %v2493_v58 = vadd.f32 %v2461_v8, %v2297_v17 }
 0x29d   : > { %v2491_v54 = vadd.f32 %v2459_v0, %v2295_v11  ;;  %v2655_v61 = vmul.f32 %v4666_v22, %v2549_v50  ;;  %v5615_v11 = vld [vmem:[#allocation46_spill] sm:$0xff]  ;;  %v2103_v42 = vadd.f32 %v2071_v62, %v1907_v45  ;;  %v1712_v20 = vadd.f32 %v1680_v7, %v4689_v26 }
 0x29e   : > { %v4807_v5 = vadd.f32 %v2479_v24, %v2315_v33  ;;  %2764 = vperm.xlu1 %3247, %v5613_v40   ;;  %v1687_v43 = vmul.f32 %v4607_v23, %v5615_v11  ;;  %v2463_v33 = vmul.f32 %v4655_v6, %v4591_v13  ;;  %v1689_v50 = vmul.f32 %v4607_v23, %v5617_v63  ;;  %v5619_v24 = vld [vmem:[#allocation52_spill] sm:$0xff]  ;;  %v5620_v45 = vld [vmem:[#allocation122_spill] sm:$0xff]  ;;  %v5622_v40 = vld [vmem:[#allocation61_spill] sm:$0xff] }
 0x29f   : > { %v4810_v0 = vadd.f32 %v2655_v61, %v2491_v54  ;;  %v4817_v28 = vpop.permute.xlu1 %2440  ;;  %v5618_v54 = vld [vmem:[#allocation50_spill] sm:$0xff]  ;;  %v1693_v61 = vmul.f32 %v4607_v23, %v5619_v24  ;;  %v1909_v52 = vadd.f32 %v1877_v57, %v1713_v34  ;;  %v2299_v32 = vadd.f32 %v2267_v51, %v2103_v42 }
 0x2a0   : > { %v2557_v10 = vpop.permute.xlu0 %2556  ;;  %v1691_v62 = vmul.f32 %v4607_v23, %v5618_v54  ;;  %v2269_v8 = vmul.f32 %v4640_v14, %v5620_v45  ;;  %v4837_v26 = vadd.f32 %v1682_v55, %v4697_v4  ;;  %v1717_v7 = vadd.f32 %v1685_v30, %v4703_v9  ;;  %v5623_v9 = vld [vmem:[#allocation63_spill] sm:$0xff]  ;;  %v5624_v30 = vld [vmem:[#allocation65_spill] sm:$0xff] }
 0x2a1   : > { %v2657_v59 = vmul.f32 %v4666_v22, %v2557_v10  ;;  %v1719_v17 = vadd.f32 %v1687_v43, %v4710_v41  ;;  %v1868_v3 = vmul.f32 %v4613_v29, %v5622_v40  ;;  %v2105_v57 = vadd.f32 %v2073_v19, %v1909_v52  ;;  %v5625_v19 = vld [vmem:[#allocation68_spill] sm:$0xff] }
 0x2a2   : > { %2768 = vperm.xlu1 %3247, %v5621_v37   ;;  %v2495_v51 = vadd.f32 %v2463_v33, %v2299_v32  ;;  %v2465_v34 = vmul.f32 %v4655_v6, %v4602_v1  ;;  %v1721_v4 = vadd.f32 %v1689_v50, %v4714_v27  ;;  %v1723_v55 = vadd.f32 %v1691_v62, %v4718_v25  ;;  %v5626_v33 = vld [vmem:[#allocation11_spill] sm:$0xff]  ;;  %v5627_v27 = vld [vmem:[#allocation54_spill] sm:$0xff]  ;;  %v5629_v62 = vld [vmem:[#allocation69_spill] sm:$0xff] }
 0x2a3   : > { %v4834_v13 = vadd.f32 %v2657_v59, %v2493_v58  ;;  %v1870_v41 = vmul.f32 %v4613_v29, %v5623_v9  ;;  %v1872_v43 = vmul.f32 %v4613_v29, %v5624_v30  ;;  %v4855_v21 = vadd.f32 %v1693_v61, %v4724_v39  ;;  %v5628_v50 = vld [vmem:[#allocation67_spill] sm:$0xff]  ;;  %v5630_v61 = vld [vmem:[#allocation70_spill] sm:$0xff] }
 0x2a4   : > { %v2565_v11 = vpop.permute.xlu0 %2564  ;;  %v4845_v42 = vpop.permute.xlu1 %2516  ;;  %v1881_v1 = vmul.f32 %v4613_v29, %v5625_v19  ;;  %v2301_v58 = vadd.f32 %v2269_v8, %v2105_v57  ;;  %v4864_v25 = vmul.f32 %v4607_v23, %v5627_v27  ;;  %v1900_v63 = vadd.f32 %v1868_v3, %v4776_v53  ;;  %v5631_v32 = vld [vmem:[#allocation106_spill] sm:$0xff] }
 0x2a5   : > { %v2659_v10 = vmul.f32 %v4666_v22, %v2565_v11  ;;  %v1874_v54 = vmul.f32 %v4613_v29, %v5628_v50  ;;  %v1876_v39 = vmul.f32 %v4613_v29, %v5629_v62  ;;  %v1883_v52 = vmul.f32 %v4613_v29, %v5630_v61  ;;  %v5632_v11 = vld [vmem:[#allocation72_spill] sm:$0xff]  ;;  %v5634_v30 = vld [vmem:[#allocation74_spill] sm:$0xff] }
 0x2a6   : > { %2772 = vperm.xlu1 %3247, %v5626_v33   ;;  %v2077_v45 = vmul.f32 %v4635_v35, %v5631_v32  ;;  %v2497_v8 = vadd.f32 %v2465_v34, %v2301_v58  ;;  %v1902_v53 = vadd.f32 %v1870_v41, %v4778_v31  ;;  %v1904_v3 = vadd.f32 %v1872_v43, %v4782_v46  ;;  %v5635_v33 = vld [vmem:[#allocation126_spill] sm:$0xff]  ;;  %v5637_v46 = vld [vmem:[#allocation108_spill] sm:$0xff]  ;;  %v5638_v43 = vld [vmem:[#allocation123_spill] sm:$0xff] }
 0x2a7   : > { %v4860_v59 = vadd.f32 %v2659_v10, %v2495_v51  ;;  %v1885_v57 = vmul.f32 %v4613_v29, %v5632_v11  ;;  %v5633_v51 = vld [vmem:[#allocation87_spill] sm:$0xff]  ;;  %v1913_v9 = vadd.f32 %v1881_v1, %v1717_v7  ;;  %v1887_v19 = vmul.f32 %v4613_v29, %v5634_v30  ;;  %v5640_v32 = vld [vmem:[#allocation88_spill] sm:$0xff] }
 0x2a8   : > { %v2573_v24 = vpop.permute.xlu0 %2572  ;;  %v4875_v37 = vpop.permute.xlu1 %2524  ;;  %v2064_v10 = vmul.f32 %v4635_v35, %v5633_v51  ;;  %v2273_v34 = vmul.f32 %v4640_v14, %v5635_v33  ;;  %v4891_v27 = vadd.f32 %v1874_v54, %v4786_v16  ;;  %v4893_v31 = vadd.f32 %v1876_v39, %v1712_v20  ;;  %v5639_v1 = vld [vmem:[#allocation71_spill] sm:$0xff]  ;;  %v5641_v51 = vld [vmem:[#allocation89_spill] sm:$0xff] }
 0x2a9   : > { %v2661_v40 = vmul.f32 %v4666_v22, %v2573_v24  ;;  %v2079_v41 = vmul.f32 %v4635_v35, %v5637_v46  ;;  %v2260_v50 = vmul.f32 %v4640_v14, %v5638_v43  ;;  %v4903_v62 = vmul.f32 %v4613_v29, %v5639_v1  ;;  %v5645_v46 = vld [vmem:[#allocation110_spill] sm:$0xff] }
 0x2aa   : > { %v1915_v24 = vadd.f32 %v1883_v52, %v1719_v17  ;;  %v2109_v61 = vadd.f32 %v2077_v45, %v1913_v9  ;;  %v2469_v16 = vmul.f32 %v4655_v6, %v4645_v36  ;;  %v1917_v20 = vadd.f32 %v1885_v57, %v1721_v4  ;;  %v5642_v17 = vld [vmem:[#allocation128_spill] sm:$0xff] }
 0x2ab   : > { %v4888_v58 = vadd.f32 %v2661_v40, %v2497_v8  ;;  %v2096_v39 = vadd.f32 %v2064_v10, %v1900_v63  ;;  %v2066_v8 = vmul.f32 %v4635_v35, %v5640_v32  ;;  %v2456_v40 = vmul.f32 %v4655_v6, %v4539_v60  ;;  %v5643_v45 = vld [vmem:[#allocation76_spill] sm:$0xff]  ;;  %v5644_v63 = vld [vmem:[#allocation125_spill] sm:$0xff]  ;;  %v5646_v32 = vld [vmem:[#allocation130_spill] sm:$0xff] }
 0x2ac   : > { %v4899_v7 = vpop.permute.xlu0 %2580  ;;  %v4907_v54 = vpop.permute.xlu1 %2528  ;;  %v1919_v11 = vadd.f32 %v1887_v19, %v1723_v55  ;;  %v2068_v30 = vmul.f32 %v4635_v35, %v5641_v51  ;;  %v2305_v33 = vadd.f32 %v2273_v34, %v2109_v61  ;;  %v2275_v52 = vmul.f32 %v4640_v14, %v5642_v17 }
 0x2ad   : > { %5636 = vst [vmem:[#allocation36_spill] sm:$0xff] %v4888_v58  ;;  %v1889_v36 = vmul.f32 %v4613_v29, %v5643_v45  ;;  %v2111_v9 = vadd.f32 %v2079_v41, %v1915_v24  ;;  %v2292_v4 = vadd.f32 %v2260_v50, %v2096_v39  ;;  %v2262_v57 = vmul.f32 %v4640_v14, %v5644_v63  ;;  %v5648_v45 = vld [vmem:[#allocation127_spill] sm:$0xff] }
 0x2ae   : > { %v2081_v60 = vmul.f32 %v4635_v35, %v5645_v46  ;;  %v2501_v55 = vadd.f32 %v2469_v16, %v2305_v33  ;;  %v2471_v19 = vmul.f32 %v4655_v6, %v4660_v12  ;;  %v2098_v1 = vadd.f32 %v2066_v8, %v1902_v53  ;;  %v5647_v16 = vld [vmem:[#allocation112_spill] sm:$0xff] }
 0x2af   : > { %v2488_v61 = vadd.f32 %v2456_v40, %v2292_v4  ;;  %v2458_v41 = vmul.f32 %v4655_v6, %v4545_v56  ;;  %v2100_v24 = vadd.f32 %v2068_v30, %v1904_v3  ;;  %v2307_v39 = vadd.f32 %v2275_v52, %v2111_v9  ;;  %v5649_v9 = vld [vmem:[#allocation91_spill] sm:$0xff] }
 0x2b0   : > { %v2589_v10 = vpop.permute.xlu0 %2588  ;;  %v2537_v34 = vpop.permute.xlu1 %2536  ;;  %v2277_v51 = vmul.f32 %v4640_v14, %v5646_v32  ;;  %v2083_v12 = vmul.f32 %v4635_v35, %v5647_v16  ;;  %v2294_v33 = vadd.f32 %v2262_v57, %v2098_v1  ;;  %v2264_v53 = vmul.f32 %v4640_v14, %v5648_v45 }
 0x2b1   : > { %v2665_v43 = vmul.f32 %v4666_v22, %v2589_v10  ;;  %v2652_v50 = vmul.f32 %v4666_v22, %v2537_v34  ;;  %v2113_v56 = vadd.f32 %v2081_v60, %v1917_v20  ;;  %v2503_v4 = vadd.f32 %v2471_v19, %v2307_v39  ;;  %v5651_v60 = vld [vmem:[#allocation132_spill] sm:$0xff] }
 0x2b2   : > { %v2473_v3 = vmul.f32 %v4655_v6, %v4699_v47  ;;  %v2070_v63 = vmul.f32 %v4635_v35, %v5649_v9  ;;  %v2490_v10 = vadd.f32 %v2458_v41, %v2294_v33  ;;  %v2460_v57 = vmul.f32 %v4655_v6, %v4551_v44  ;;  %v5653_v44 = vld [vmem:[#allocation113_spill] sm:$0xff]  ;;  %v5655_v9 = vld [vmem:[#allocation131_spill] sm:$0xff] }
 0x2b3   : > { %v4931_v17 = vadd.f32 %v2665_v43, %v2501_v55  ;;  %v4937_v8 = vadd.f32 %v2652_v50, %v2488_v61  ;;  %v5650_v55 = vld [vmem:[#allocation93_spill] sm:$0xff]  ;;  %v2309_v20 = vadd.f32 %v2277_v51, %v2113_v56  ;;  %v2279_v19 = vmul.f32 %v4640_v14, %v5651_v60 }
 0x2b4   : > { %v2597_v40 = vpop.permute.xlu0 %2596  ;;  %v2545_v30 = vpop.permute.xlu1 %2544  ;;  %v2072_v34 = vmul.f32 %v4635_v35, %v5650_v55  ;;  %v2115_v43 = vadd.f32 %v2083_v12, %v1919_v11  ;;  %v2296_v1 = vadd.f32 %v2264_v53, %v2100_v24  ;;  %v5652_v61 = vld [vmem:[#allocation129_spill] sm:$0xff]  ;;  %v2085_v32 = vmul.f32 %v4635_v35, %v5653_v44  ;;  %v5656_v55 = vld [vmem:[#allocation95_spill] sm:$0xff] }
 0x2b5   : > { %v2667_v52 = vmul.f32 %v4666_v22, %v2597_v40  ;;  %v2654_v46 = vmul.f32 %v4666_v22, %v2545_v30  ;;  %v2266_v50 = vmul.f32 %v4640_v14, %v5652_v61  ;;  %v2505_v16 = vadd.f32 %v2473_v3, %v2309_v20  ;;  %v5658_v44 = vld [vmem:[#allocation133_spill] sm:$0xff] }
 0x2b6   : > { %v2475_v51 = vmul.f32 %v4655_v6, %v4745_v49  ;;  %v2102_v40 = vadd.f32 %v2070_v63, %v4891_v27  ;;  %v2492_v11 = vadd.f32 %v2460_v57, %v2296_v1  ;;  %v2462_v24 = vmul.f32 %v4655_v6, %v4555_v38 }
 0x2b7   : > { %v4951_v47 = vadd.f32 %v2667_v52, %v2503_v4  ;;  %v4955_v41 = vadd.f32 %v2654_v46, %v2490_v10  ;;  %v1921_v53 = vadd.f32 %v1889_v36, %v4855_v21  ;;  %v2311_v56 = vadd.f32 %v2279_v19, %v2115_v43  ;;  %v5654_v4 = vld [vmem:[#allocation134_spill] sm:$0xff]  ;;  %v5657_v43 = vld [vmem:[#allocation80_spill] sm:$0xff] }
 0x2b8   : > { %v2605_v39 = vpop.permute.xlu0 %2604  ;;  %v2553_v33 = vpop.permute.xlu1 %2552  ;;  %v2281_v3 = vmul.f32 %v4640_v14, %v5654_v4  ;;  %v2104_v49 = vadd.f32 %v2072_v34, %v4893_v31  ;;  %v2298_v52 = vadd.f32 %v2266_v50, %v2102_v40  ;;  %v2268_v27 = vmul.f32 %v4640_v14, %v5655_v9  ;;  %v5662_v4 = vld [vmem:[#allocation137_spill] sm:$0xff]  ;;  %v5664_v9 = vld [vmem:[#allocation24_spill] sm:$0xff] }
 0x2b9   : > { %v2669_v45 = vmul.f32 %v4666_v22, %v2605_v39  ;;  %v2656_v12 = vmul.f32 %v4666_v22, %v2553_v33  ;;  %v2117_v38 = vadd.f32 %v2085_v32, %v1921_v53  ;;  %v2507_v57 = vadd.f32 %v2475_v51, %v2311_v56  ;;  %v5659_v51 = vld [vmem:[#allocation56_spill] sm:$0xff] }
 0x2ba   : > { %v2477_v21 = vmul.f32 %v4655_v6, %v4772_v48  ;;  %v2074_v20 = vmul.f32 %v4635_v35, %v5656_v55  ;;  %v2494_v60 = vadd.f32 %v2462_v24, %v2298_v52  ;;  %v2464_v31 = vmul.f32 %v4655_v6, %v4559_v15  ;;  %v5663_v52 = vld [vmem:[#allocation161_spill] sm:$0xff] }
 0x2bb   : > { %v4969_v30 = vadd.f32 %v2669_v45, %v2505_v16  ;;  %v4974_v63 = vadd.f32 %v2656_v12, %v2492_v11  ;;  %v1729_v19 = vadd.f32 %v4864_v25, %v4735_v18  ;;  %v1893_v1 = vmul.f32 %v4613_v29, %v5657_v43  ;;  %v5660_v18 = vld [vmem:[#allocation116_spill] sm:$0xff] }
 0x2bc   : > { %v2613_v10 = vpop.permute.xlu0 %2612  ;;  %v2561_v36 = vpop.permute.xlu1 %2560  ;;  %v2313_v61 = vadd.f32 %v2281_v3, %v2117_v38  ;;  %v1910_v50 = vadd.f32 %v4903_v62, %v4837_v26  ;;  %v2300_v39 = vadd.f32 %v2268_v27, %v2104_v49  ;;  %v2270_v32 = vmul.f32 %v4640_v14, %v5658_v44  ;;  %v5661_v26 = vld [vmem:[#allocation147_spill] sm:$0xff] }
 0x2bd   : > { %v2671_v46 = vmul.f32 %v4666_v22, %v2613_v10  ;;  %v2658_v34 = vmul.f32 %v4666_v22, %v2561_v36  ;;  %v1863_v33 = vmul.f32 %v4613_v29, %v5659_v51  ;;  %v2089_v25 = vmul.f32 %v4635_v35, %v5660_v18  ;;  %v5665_v10 = vld [vmem:[#allocation83_spill] sm:$0xff] }
 0x2be   : > { %v2509_v45 = vadd.f32 %v2477_v21, %v2313_v61  ;;  %v2106_v24 = vadd.f32 %v2074_v20, %v1910_v50  ;;  %v2496_v12 = vadd.f32 %v2464_v31, %v2300_v39  ;;  %v2466_v62 = vmul.f32 %v4655_v6, %v5661_v26  ;;  %v5667_v39 = vld [vmem:[#allocation42_spill] sm:$0xff]  ;;  %v5670_v18 = vld [vmem:[#allocation15_spill] sm:$0xff] }
 0x2bf   : > { %v4988_v48 = vadd.f32 %v2671_v46, %v2507_v57  ;;  %v4994_v16 = vadd.f32 %v2658_v34, %v2494_v60  ;;  %v1925_v56 = vadd.f32 %v1893_v1, %v1729_v19  ;;  %v2285_v3 = vmul.f32 %v4640_v14, %v5662_v4  ;;  %v5666_v34 = vld [vmem:[#allocation119_spill] sm:$0xff] }
 0x2c0   : > { %v2621_v15 = vpop.permute.xlu0 %2620  ;;  %v2569_v40 = vpop.permute.xlu1 %2568  ;;  %v1699_v27 = vadd.f32 %v5664_v9, %v5663_v52  ;;  %v2059_v38 = vmul.f32 %v4635_v35, %v5665_v10  ;;  %v2302_v57 = vadd.f32 %v2270_v32, %v2106_v24  ;;  %v2481_v55 = vmul.f32 %v4655_v6, %v4817_v28  ;;  %v5675_v4 = vld [vmem:[#allocation155_spill] sm:$0xff] }
 0x2c1   : > { %v2673_v11 = vmul.f32 %v4666_v22, %v2621_v15  ;;  %v2660_v53 = vmul.f32 %v4666_v22, %v2569_v40  ;;  %v2121_v46 = vadd.f32 %v2089_v25, %v1925_v56  ;;  %v2255_v19 = vmul.f32 %v4640_v14, %v5666_v34  ;;  %v5668_v15 = vld [vmem:[#allocation140_spill] sm:$0xff]  ;;  %v5671_v25 = vld [vmem:[#allocation158_spill] sm:$0xff] }
 0x2c2   : > { %v1895_v31 = vadd.f32 %v1863_v33, %v1699_v27  ;;  %v2498_v43 = vadd.f32 %v2466_v62, %v2302_v57  ;;  %v1683_v44 = vmul.f32 %v4607_v23, %v5667_v39  ;;  %v2451_v28 = vmul.f32 %v4655_v6, %v5668_v15  ;;  %v5677_v27 = vld [vmem:[#allocation104_spill] sm:$0xff] }
 0x2c3   : > { %v5006_v49 = vadd.f32 %v2673_v11, %v2509_v45  ;;  %v5012_v21 = vadd.f32 %v2660_v53, %v2496_v12  ;;  %v2317_v61 = vadd.f32 %v2285_v3, %v2121_v46  ;;  %v1519_v45 = vmul.f32 %v5671_v25, %v5670_v18  ;;  %v5673_v53 = vld [vmem:[#allocation8_spill] sm:$0xff] }
 0x2c4   : > { %v2629_v36 = vpop.permute.xlu0 %2628  ;;  %v2577_v20 = vpop.permute.xlu1 %2576  ;;  %v2091_v32 = vadd.f32 %v2059_v38, %v1895_v31  ;;  %v2647_v62 = vmul.f32 %v4666_v22, %v4845_v42  ;;  %v5674_v56 = vsub.s32 7, %v5673_v53  ;;  %v2075_v10 = vmul.f32 %v4635_v35, %v5677_v27  ;;  %v5055_v31 = vld [vmem:[%s5387_s4] ss:$0 sm:$0xff] }
 0x2c5   : > { %v2675_v60 = vmul.f32 %v4666_v22, %v2629_v36  ;;  %v2662_v1 = vmul.f32 %v4666_v22, %v2577_v20  ;;  %v2513_v40 = vadd.f32 %v2481_v55, %v2317_v61  ;;  %v1715_v9 = vadd.f32 %v1683_v44, %v1519_v45  ;;  %v5678_v55 = vld [vmem:[#allocation124_spill] sm:$0xff]  ;;  %v5680_v45 = vld [vmem:[#allocation51_spill] sm:$0xff] }
 0x2c6   : > { %v2287_v26 = vadd.f32 %v2255_v19, %v2091_v32  ;;  %v5041_v3 = vrot.slane %v5675_v4, %v5674_v56  ;;  %v2271_v20 = vmul.f32 %v4640_v14, %v5678_v55  ;;  %v5679_v19 = vld [vmem:[#allocation157_spill] sm:$0xff]  ;;  %v2663_v32 = vmul.f32 %v4666_v22, %v4899_v7 }
 0x2c7   : > { %v5021_v50 = vadd.f32 %v2675_v60, %v4807_v5  ;;  %v5027_v51 = vadd.f32 %v2662_v1, %v2498_v43  ;;  %v5672_v5 = vld [vmem:[#allocation66_spill] sm:$0xff]  ;;  %v2467_v43 = vmul.f32 %v4655_v6, %v5679_v19 }
 0x2c8   : > { %v2637_v33 = vpop.permute.xlu0 %2636  ;;  %v5031_v11 = vpop.permute.xlu1 %2584  ;;  %v1879_v12 = vmul.f32 %v4613_v29, %v5672_v5  ;;  %v2483_v38 = vadd.f32 %v2451_v28, %v2287_v26 }
 0x2c9   : > { %5669 = vst [vmem:[#allocation78_spill] sm:$0xff] %v5027_v51  ;;  %v2677_v24 = vmul.f32 %v4666_v22, %v2637_v33 }
 0x2ca   : > { %v1911_v46 = vadd.f32 %v1879_v12, %v1715_v9  ;;  %v2679_v42 = vadd.f32 %v2647_v62, %v2483_v38  ;;  %v5681_v12 = vld [vmem:[#allocation23_spill] sm:$0xff]  ;;  %v5682_v62 = vld [vmem:[#allocation84_spill] sm:$0xff]  ;;  %v5683_v9 = vld [vmem:[#allocation53_spill] sm:$0xff] }
 0x2cb   : > { %v5043_v52 = vadd.f32 %v2677_v24, %v2513_v40  ;;  %v1696_v40 = vmul.f32 %v4607_v23, %v5680_v45  ;;  %v1532_v26 = vmul.f32 %v5671_v25, %v5681_v12  ;;  %v1892_v53 = vmul.f32 %v4613_v29, %v5682_v62 }
 0x2cc   : > { %v5047_v57 = vpop.permute.xlu1 %2592  ;;  %v2107_v34 = vadd.f32 %v2075_v10, %v1911_v46  ;;  %v1698_v27 = vmul.f32 %v4607_v23, %v5683_v9  ;;  %v5684_v10 = vld [vmem:[#allocation109_spill] sm:$0xff] }
 0x2cd   : > { %5676 = vst [vmem:[#allocation28_spill] sm:$0xff] %v5043_v52  ;;  %v2713_v36 = vpop.permute.xlu0 %2712  ;;  %v1728_v4 = vadd.f32 %v1696_v40, %v1532_v26  ;;  %v2088_v38 = vmul.f32 %v4635_v35, %v5684_v10  ;;  %v5685_v46 = vld [vmem:[#allocation25_spill] sm:$0xff]  ;;  %v5691_v26 = vld [vmem:[#allocation27_spill] sm:$0xff]  ;;  %v5693_v10 = vld [vmem:[#allocation160_spill] sm:$0xff] }
 0x2ce   : > { %v2843_v60 = vmul.f32 %v5041_v3, %v2713_v36  ;;  %v2303_v44 = vadd.f32 %v2271_v20, %v2107_v34  ;;  %v1534_v55 = vmul.f32 %v5671_v25, %v5685_v46  ;;  %v5687_v34 = vld [vmem:[#allocation144_spill] sm:$0xff]  ;;  %v1670_v62 = vmul.f32 %v4607_v23, %v5691_v26  ;;  %v5694_v46 = vld [vmem:[#allocation17_spill] sm:$0xff]  ;;  %v5701_v26 = vld [vmem:[#allocation90_spill] sm:$0xff] }
 0x2cf   : > { %v1924_v20 = vadd.f32 %v1892_v53, %v1728_v4  ;;  %v2284_v19 = vmul.f32 %v4640_v14, %v5687_v34  ;;  %v5692_v53 = vld [vmem:[#allocation29_spill] sm:$0xff] }
 0x2d0   : > { %v2875_v1 = vadd.f32 %v2843_v60, %v2679_v42  ;;  %v5059_v61 = vpop.permute.xlu1 %2600  ;;  %v2499_v28 = vadd.f32 %v2467_v43, %v2303_v44  ;;  %v5686_v42 = vld [vmem:[#allocation86_spill] sm:$0xff] }
 0x2d1   : > { %v5061_v39 = vpop.permute.xlu0 %2724  ;;  %v1894_v60 = vmul.f32 %v4613_v29, %v5686_v42  ;;  %v2120_v44 = vadd.f32 %v2088_v38, %v1924_v20  ;;  %v2482_v38 = vmul.f32 %v4655_v6, %v5693_v10  ;;  %v5695_v20 = vld [vmem:[#allocation14_spill] sm:$0xff]  ;;  %v5702_v10 = vld [vmem:[#allocation39_spill] sm:$0xff] }
 0x2d2   : > { %v2914_v15 = vadd.f32 %v5055_v31, %v2875_v1  ;;  %v2695_v24 = vadd.f32 %v2663_v32, %v2499_v28  ;;  %v1730_v1 = vadd.f32 %v1698_v27, %v1534_v55  ;;  %v5688_v32 = vld [vmem:[#allocation111_spill] sm:$0xff]  ;;  %v1505_v55 = vmul.f32 %v5671_v25, %v5694_v46 }
 0x2d3   : > { %v5689_v28 = vld [vmem:[#allocation159_spill] sm:$0xff]  ;;  %v2316_v40 = vadd.f32 %v2284_v19, %v2120_v44  ;;  %v1506_v42 = vmul.f32 %v5671_v25, %v5695_v20  ;;  %v5697_v19 = vld [vmem:[#allocation12_spill] sm:$0xff]  ;;  %v1684_v46 = vmul.f32 %v4607_v23, %v5702_v10  ;;  %v5703_v20 = vld [vmem:[#allocation85_spill] sm:$0xff] }
 0x2d4   : > { %2946 = vxpose.xlu1.b32.start [1/16] (narrow) %v2914_v15, 16  ;;  %v5066_v33 = vpop.permute.xlu1 %2608  ;;  %v2090_v15 = vmul.f32 %v4635_v35, %v5688_v32  ;;  %v1926_v45 = vadd.f32 %v1894_v60, %v1730_v1  ;;  %v5696_v60 = vld [vmem:[#allocation58_spill] sm:$0xff]  ;;  %v1507_v1 = vmul.f32 %v5671_v25, %v5697_v19  ;;  %v5698_v44 = vld [vmem:[#allocation59_spill] sm:$0xff] }
 0x2d5   : > { %v2777_v18 = vpop.permute.xlu0 %2776  ;;  %v1865_v34 = vmul.f32 %v4613_v29, %v5696_v60  ;;  %v1866_v32 = vmul.f32 %v4613_v29, %v5698_v44  ;;  %v2062_v60 = vmul.f32 %v4635_v35, %v5703_v20  ;;  %v5708_v20 = vld [vmem:[#allocation121_spill] sm:$0xff] }
 0x2d6   : > { %v2859_v5 = vmul.f32 %v5041_v3, %v2777_v18  ;;  %v2480_v18 = vmul.f32 %v4655_v6, %v5689_v28  ;;  %v2122_v9 = vadd.f32 %v2090_v15, %v1926_v45 }
 0x2d8   : > { %v2891_v7 = vadd.f32 %v2859_v5, %v2695_v24  ;;  %v5075_v56 = vpop.permute.xlu1 %2616  ;;  %v5690_v24 = vld [vmem:[#allocation145_spill] sm:$0xff]  ;;  %v2512_v27 = vadd.f32 %v2480_v18, %v2316_v40  ;;  %v1702_v18 = vadd.f32 %v1670_v62, %v1506_v42  ;;  %v5700_v40 = vld [vmem:[#allocation31_spill] sm:$0xff]  ;;  %v5704_v62 = vld [vmem:[#allocation16_spill] sm:$0xff] }
 0x2d9   : > { %v2286_v5 = vmul.f32 %v4640_v14, %v5690_v24  ;;  %v5096_v12 = vpop.permute.xlu0 %2784  ;;  %v1671_v24 = vmul.f32 %v4607_v23, %v5700_v40 }
 0x2da   : > { %v2930_v36 = vadd.f32 %v5055_v31, %v2891_v7  ;;  %v1669_v7 = vmul.f32 %v4607_v23, %v5692_v53  ;;  %v2061_v53 = vmul.f32 %v4635_v35, %v5701_v26  ;;  %v1898_v40 = vadd.f32 %v1866_v32, %v1702_v18  ;;  %v5707_v26 = vld [vmem:[#allocation73_spill] sm:$0xff]  ;;  %v5712_v18 = vld [vmem:[#allocation142_spill] sm:$0xff] }
 0x2db   : > { %v2318_v15 = vadd.f32 %v2286_v5, %v2122_v9  ;;  %v5705_v9 = vld [vmem:[#allocation55_spill] sm:$0xff]  ;;  %v1880_v10 = vmul.f32 %v4613_v29, %v5707_v26  ;;  %v2454_v26 = vmul.f32 %v4655_v6, %v5712_v18 }
 0x2dc   : > { %2978 = vxpose.xlu0.b32.start [1/16] (narrow) %v2930_v36, 16  ;;  %v5088_v43 = vpop.permute.xlu1 %2624  ;;  %v1701_v45 = vadd.f32 %v1669_v7, %v1505_v55  ;;  %v1520_v7 = vmul.f32 %v5671_v25, %v5704_v62  ;;  %v5706_v55 = vld [vmem:[#allocation120_spill] sm:$0xff]  ;;  %v1703_v62 = vadd.f32 %v1671_v24, %v1507_v1  ;;  %v2649_v1 = vmul.f32 %v4666_v22, %v4875_v37 }
 0x2dd   : > { %v2514_v19 = vadd.f32 %v2482_v38, %v2318_v15  ;;  %v5125_v44 = vpop.permute.xlu0 %2792  ;;  %v2257_v42 = vmul.f32 %v4640_v14, %v5706_v55  ;;  %v2258_v38 = vmul.f32 %v4640_v14, %v5708_v20  ;;  %v5711_v55 = vld [vmem:[#allocation92_spill] sm:$0xff]  ;;  %v5713_v20 = vld [vmem:[#allocation41_spill] sm:$0xff] }
 0x2de   : > { %v2063_v32 = vmul.f32 %v4635_v35, %v5711_v55 }
 0x2e0   : > { %v2633_v4 = vpop.permute.xlu1 %2632 }
 0x2e1   : > { %v2676_v36 = vmul.f32 %v4666_v22, %v2633_v4 }
 0x2e3   : > { %v5115_v28 = vadd.f32 %v2676_v36, %v2512_v27  ;;  %v1867_v27 = vmul.f32 %v4613_v29, %v5705_v9  ;;  %v1897_v36 = vadd.f32 %v1865_v34, %v1701_v45  ;;  %v1716_v45 = vadd.f32 %v1684_v46, %v1520_v7  ;;  %v5714_v46 = vld [vmem:[#allocation97_spill] sm:$0xff] }
 0x2e4   : > { %v2641_v4 = vpop.permute.xlu1 %2640  ;;  %v2094_v9 = vadd.f32 %v2062_v60, %v1898_v40  ;;  %v2076_v60 = vmul.f32 %v4635_v35, %v5714_v46  ;;  %v5715_v40 = vld [vmem:[#allocation115_spill] sm:$0xff] }
 0x2e5   : > { %5699 = vst [vmem:[#allocation30_spill] sm:$0xff] %v5115_v28  ;;  %v2678_v5 = vmul.f32 %v4666_v22, %v2641_v4  ;;  %v5709_v4 = vld [vmem:[#allocation18_spill] sm:$0xff]  ;;  %v2093_v51 = vadd.f32 %v2061_v53, %v1897_v36  ;;  %v1899_v53 = vadd.f32 %v1867_v27, %v1703_v62  ;;  %v5155_v36 = vpop.permute.xlu0 %2796 }
 0x2e6   : > { %v1522_v52 = vmul.f32 %v5671_v25, %v5709_v4  ;;  %v5710_v28 = vld [vmem:[#allocation146_spill] sm:$0xff]  ;;  %v2290_v7 = vadd.f32 %v2258_v38, %v2094_v9  ;;  %v2259_v4 = vmul.f32 %v4640_v14, %v5715_v40  ;;  %v2846_v9 = vmul.f32 %v5041_v3, %v5061_v39 }
 0x2e7   : > { %v5138_v15 = vadd.f32 %v2678_v5, %v2514_v19  ;;  %v2453_v34 = vmul.f32 %v4655_v6, %v5710_v28  ;;  %v1686_v19 = vmul.f32 %v4607_v23, %v5713_v20  ;;  %v2289_v5 = vadd.f32 %v2257_v42, %v2093_v51  ;;  %v5716_v42 = vld [vmem:[#allocation162_spill] sm:$0xff]  ;;  %v5717_v20 = vld [vmem:[#allocation135_spill] sm:$0xff] }
 0x2e8   : > { %v1912_v28 = vadd.f32 %v1880_v10, %v1716_v45  ;;  %v2650_v51 = vmul.f32 %v4666_v22, %v4907_v54  ;;  %v2095_v37 = vadd.f32 %v2063_v32, %v1899_v53  ;;  %v2486_v27 = vadd.f32 %v2454_v26, %v2290_v7  ;;  %v5718_v10 = vld [vmem:[#allocation148_spill] sm:$0xff]  ;;  %v5719_v54 = vld [vmem:[#allocation33_spill] sm:$0xff]  ;;  %v5720_v32 = vld [vmem:[#allocation75_spill] sm:$0xff] }
 0x2e9   : > { %v2717_v58 = vpop.permute.xlu1 %2716  ;;  %v2485_v55 = vadd.f32 %v2453_v34, %v2289_v5  ;;  %v2455_v62 = vmul.f32 %v4655_v6, %v5718_v10  ;;  %v1882_v53 = vmul.f32 %v4613_v29, %v5720_v32  ;;  %v5721_v26 = vld [vmem:[#allocation149_spill] sm:$0xff]  ;;  %v5182_v32 = vpop.permute.xlu0 %2800 }
 0x2ea   : > { %v2844_v24 = vmul.f32 %v5041_v3, %v2717_v58  ;;  %v2272_v58 = vmul.f32 %v4640_v14, %v5717_v20  ;;  %v2108_v46 = vadd.f32 %v2076_v60, %v1912_v28  ;;  %v2468_v7 = vmul.f32 %v4655_v6, %v5721_v26  ;;  %v5723_v20 = vld [vmem:[#allocation99_spill] sm:$0xff] }
 0x2eb   : > { %v2681_v45 = vadd.f32 %v2649_v1, %v2485_v55  ;;  %v2291_v40 = vadd.f32 %v2259_v4, %v2095_v37  ;;  %v2682_v55 = vadd.f32 %v2650_v51, %v2486_v27  ;;  %v2078_v10 = vmul.f32 %v4635_v35, %v5723_v20  ;;  %v5724_v51 = vld [vmem:[#allocation43_spill] sm:$0xff] }
 0x2ec   : > { %v2876_v18 = vadd.f32 %v2844_v24, %v5716_v42  ;;  %v1673_v24 = vmul.f32 %v4607_v23, %v5719_v54  ;;  %v5722_v42 = vld [vmem:[#allocation26_spill] sm:$0xff]  ;;  %v2664_v54 = vmul.f32 %v4666_v22, %v5031_v11  ;;  %v1688_v27 = vmul.f32 %v4607_v23, %v5724_v51 }
 0x2ed   : > { %v2721_v38 = vpop.permute.xlu1 %2720  ;;  %v2651_v1 = vmul.f32 %v4666_v22, %v5722_v42  ;;  %v2487_v60 = vadd.f32 %v2455_v62, %v2291_v40  ;;  %v2878_v26 = vadd.f32 %v2846_v9, %v2682_v55  ;;  %v5728_v62 = vld [vmem:[#allocation57_spill] sm:$0xff] }
 0x2ee   : > { %v2915_v34 = vadd.f32 %v5055_v31, %v2876_v18  ;;  %v2845_v5 = vmul.f32 %v5041_v3, %v2721_v38  ;;  %v1718_v18 = vadd.f32 %v1686_v19, %v1522_v52  ;;  %v2304_v38 = vadd.f32 %v2272_v58, %v2108_v46  ;;  %v5725_v19 = vld [vmem:[#allocation136_spill] sm:$0xff]  ;;  %v5729_v42 = vld [vmem:[#allocation77_spill] sm:$0xff] }
 0x2ef   : > { %v1869_v9 = vmul.f32 %v4613_v29, %v5728_v62  ;;  %v2683_v40 = vadd.f32 %v2651_v1, %v2487_v60  ;;  %v1884_v55 = vmul.f32 %v4613_v29, %v5729_v42  ;;  %v5731_v60 = vld [vmem:[#allocation94_spill] sm:$0xff]  ;;  %v5733_v62 = vld [vmem:[#allocation117_spill] sm:$0xff] }
 0x2f0   : > { %v2877_v39 = vadd.f32 %v2845_v5, %v2681_v45  ;;  %2947 = vxpose.xlu1.b32.cont [2/16] (narrow) %v2915_v34, 16  ;;  %v1914_v52 = vadd.f32 %v1882_v53, %v1718_v18  ;;  %v2274_v45 = vmul.f32 %v4640_v14, %v5725_v19  ;;  %v2500_v58 = vadd.f32 %v2468_v7, %v2304_v38  ;;  %v5726_v34 = vld [vmem:[#allocation13_spill] sm:$0xff]  ;;  %v5727_v5 = vld [vmem:[#allocation19_spill] sm:$0xff] }
 0x2f1   : > { %v2729_v28 = vpop.permute.xlu1 %2728  ;;  %v1509_v11 = vmul.f32 %v5671_v25, %v5726_v34  ;;  %v1524_v46 = vmul.f32 %v5671_v25, %v5727_v5  ;;  %v5730_v53 = vld [vmem:[#allocation151_spill] sm:$0xff]  ;;  %v2917_v38 = vadd.f32 %v5055_v31, %v2878_v26  ;;  %v2666_v26 = vmul.f32 %v4666_v22, %v5047_v57 }
 0x2f2   : > { %v2916_v4 = vadd.f32 %v5055_v31, %v2877_v39  ;;  %v2847_v37 = vmul.f32 %v5041_v3, %v2729_v28  ;;  %v2110_v39 = vadd.f32 %v2078_v10, %v1914_v52  ;;  %v2470_v18 = vmul.f32 %v4655_v6, %v5730_v53  ;;  %v5206_v10 = vpop.permute.xlu0 %2804  ;;  %v5732_v52 = vld [vmem:[#allocation101_spill] sm:$0xff]  ;;  %v5734_v53 = vld [vmem:[#allocation138_spill] sm:$0xff] }
 0x2f3   : > { %v2696_v20 = vadd.f32 %v2664_v54, %v2500_v58  ;;  %v2861_v28 = vmul.f32 %v5041_v3, %v5096_v12  ;;  %v1705_v34 = vadd.f32 %v1673_v24, %v1509_v11  ;;  %v1720_v1 = vadd.f32 %v1688_v27, %v1524_v46 }
 0x2f4   : > { %2948 = vxpose.xlu1.b32.cont [3/16] (narrow) %v2916_v4, 16  ;;  %v2879_v51 = vadd.f32 %v2847_v37, %v2683_v40  ;;  %v2065_v4 = vmul.f32 %v4635_v35, %v5731_v60  ;;  %v2306_v5 = vadd.f32 %v2274_v45, %v2110_v39  ;;  %v2080_v54 = vmul.f32 %v4635_v35, %v5732_v52 }
 0x2f5   : > { %v2781_v7 = vpop.permute.xlu1 %2780  ;;  %v1901_v12 = vadd.f32 %v1869_v9, %v1705_v34  ;;  %v1916_v37 = vadd.f32 %v1884_v55, %v1720_v1  ;;  %v2261_v24 = vmul.f32 %v4640_v14, %v5733_v62  ;;  %v2893_v46 = vadd.f32 %v2861_v28, %v4931_v17  ;;  %v5736_v55 = vld [vmem:[#allocation45_spill] sm:$0xff]  ;;  %v5737_v28 = vld [vmem:[#allocation152_spill] sm:$0xff] }
 0x2f6   : > { %v2860_v19 = vmul.f32 %v5041_v3, %v2781_v7  ;;  %v2502_v27 = vadd.f32 %v2470_v18, %v2306_v5  ;;  %v2918_v45 = vadd.f32 %v5055_v31, %v2879_v51  ;;  %v2276_v57 = vmul.f32 %v4640_v14, %v5734_v53  ;;  %v5230_v1 = vpop.permute.xlu0 %2808 }
 0x2f7   : > { %v2097_v39 = vadd.f32 %v2065_v4, %v1901_v12  ;;  %v1690_v7 = vmul.f32 %v4607_v23, %v5736_v55  ;;  %v2112_v18 = vadd.f32 %v2080_v54, %v1916_v37  ;;  %v2472_v51 = vmul.f32 %v4655_v6, %v5737_v28  ;;  %v5738_v4 = vld [vmem:[#allocation20_spill] sm:$0xff] }
 0x2f8   : > { %v2892_v58 = vadd.f32 %v2860_v19, %v2696_v20  ;;  %2949 = vxpose.xlu1.b32.cont [4/16] (narrow) %v2917_v38, 16  ;;  %v5735_v20 = vld [vmem:[#allocation150_spill] sm:$0xff]  ;;  %v2698_v38 = vadd.f32 %v2666_v26, %v2502_v27  ;;  %v2653_v19 = vmul.f32 %v4666_v22, %v4774_v2  ;;  %v2863_v34 = vmul.f32 %v5041_v3, %v5125_v44  ;;  %v5740_v27 = vld [vmem:[#allocation103_spill] sm:$0xff] }
 0x2f9   : > { %v2789_v11 = vpop.permute.xlu1 %2788  ;;  %v2457_v9 = vmul.f32 %v4655_v6, %v5735_v20  ;;  %v2293_v17 = vadd.f32 %v2261_v24, %v2097_v39  ;;  %v1526_v5 = vmul.f32 %v5671_v25, %v5738_v4  ;;  %v2932_v52 = vadd.f32 %v5055_v31, %v2893_v46 }
 0x2fa   : > { %v2931_v40 = vadd.f32 %v5055_v31, %v2892_v58  ;;  %v2862_v42 = vmul.f32 %v5041_v3, %v2789_v11  ;;  %v5739_v58 = vld [vmem:[#allocation79_spill] sm:$0xff]  ;;  %v2308_v37 = vadd.f32 %v2276_v57, %v2112_v18  ;;  %v2668_v44 = vmul.f32 %v4666_v22, %v5059_v61  ;;  %v2813_v55 = vpop.permute.xlu0 %2812 }
 0x2fb   : > { %v1886_v12 = vmul.f32 %v4613_v29, %v5739_v58  ;;  %v2489_v62 = vadd.f32 %v2457_v9, %v2293_v17  ;;  %v1722_v2 = vadd.f32 %v1690_v7, %v1526_v5  ;;  %v2082_v11 = vmul.f32 %v4635_v35, %v5740_v27 }
 0x2fc   : > { %2950 = vxpose.xlu1.b32.cont [5/16] (narrow) %v2918_v45, 16  ;;  %2979 = vxpose.xlu0.b32.cont [2/16] (narrow) %v2931_v40, 16  ;;  %v2894_v54 = vadd.f32 %v2862_v42, %v2698_v38  ;;  %v2504_v45 = vadd.f32 %v2472_v51, %v2308_v37  ;;  %v2895_v40 = vadd.f32 %v2863_v34, %v4951_v47  ;;  %v5742_v47 = vld [vmem:[#allocation47_spill] sm:$0xff] }
 0x2fd   : > { %v2733_v60 = vpop.permute.xlu1 %2732  ;;  %v2685_v46 = vadd.f32 %v2653_v19, %v2489_v62  ;;  %v2864_v39 = vmul.f32 %v5041_v3, %v5155_v36  ;;  %v1918_v20 = vadd.f32 %v1886_v12, %v1722_v2  ;;  %v1692_v38 = vmul.f32 %v4607_v23, %v5742_v47  ;;  %v5743_v36 = vld [vmem:[#allocation153_spill] sm:$0xff] }
 0x2fe   : > { %v2848_v26 = vmul.f32 %v5041_v3, %v2733_v60  ;;  %v2933_v53 = vadd.f32 %v5055_v31, %v2894_v54  ;;  %v2700_v7 = vadd.f32 %v2668_v44, %v2504_v45  ;;  %v2474_v28 = vmul.f32 %v4655_v6, %v5743_v36  ;;  %v5746_v2 = vld [vmem:[#allocation105_spill] sm:$0xff]  ;;  %v5750_v36 = vld [vmem:[#allocation22_spill] sm:$0xff] }
 0x2ff   : > { %v2114_v17 = vadd.f32 %v2082_v11, %v1918_v20  ;;  %v2865_v51 = vmul.f32 %v5041_v3, %v5182_v32  ;;  %v2934_v34 = vadd.f32 %v5055_v31, %v2895_v40  ;;  %v2670_v37 = vmul.f32 %v4666_v22, %v5066_v33  ;;  %v2817_v11 = vpop.permute.xlu0 %2816 }
 0x300   : > { %v2880_v24 = vadd.f32 %v2848_v26, %v4937_v8  ;;  %2980 = vxpose.xlu0.b32.cont [3/16] (narrow) %v2932_v52, 16  ;;  %v5741_v8 = vld [vmem:[#allocation139_spill] sm:$0xff]  ;;  %v2896_v60 = vadd.f32 %v2864_v39, %v2700_v7  ;;  %v5744_v52 = vld [vmem:[#allocation21_spill] sm:$0xff]  ;;  %v2084_v44 = vmul.f32 %v4635_v35, %v5746_v2  ;;  %v2866_v40 = vmul.f32 %v5041_v3, %v5206_v10 }
 0x301   : > { %v2737_v42 = vpop.permute.xlu1 %2736  ;;  %v2278_v9 = vmul.f32 %v4640_v14, %v5741_v8  ;;  %v1528_v54 = vmul.f32 %v5671_v25, %v5744_v52  ;;  %v5745_v26 = vld [vmem:[#allocation81_spill] sm:$0xff]  ;;  %v2897_v27 = vadd.f32 %v2865_v51, %v4969_v30  ;;  %v5751_v51 = vld [vmem:[#allocation82_spill] sm:$0xff] }
 0x302   : > { %v2919_v57 = vadd.f32 %v5055_v31, %v2880_v24  ;;  %v2849_v61 = vmul.f32 %v5041_v3, %v2737_v42  ;;  %v1888_v58 = vmul.f32 %v4613_v29, %v5745_v26  ;;  %v5747_v39 = vld [vmem:[#allocation141_spill] sm:$0xff]  ;;  %v2868_v26 = vmul.f32 %v5041_v3, %v2813_v55  ;;  %v5754_v55 = vld [vmem:[#allocation156_spill] sm:$0xff] }
 0x303   : > { %v2310_v12 = vadd.f32 %v2278_v9, %v2114_v17  ;;  %v1724_v62 = vadd.f32 %v1692_v38, %v1528_v54  ;;  %v5748_v30 = vld [vmem:[#allocation49_spill] sm:$0xff]  ;;  %v5749_v9 = vld [vmem:[#allocation154_spill] sm:$0xff]  ;;  %v2936_v7 = vadd.f32 %v5055_v31, %v2897_v27  ;;  %v2867_v38 = vmul.f32 %v5041_v3, %v5230_v1 }
 0x304   : > { %v2881_v18 = vadd.f32 %v2849_v61, %v2685_v46  ;;  %2981 = vxpose.xlu0.b32.cont [4/16] (narrow) %v2933_v53, 16  ;;  %2951 = vxpose.xlu1.b32.cont [6/16] (narrow) %v2919_v57, 16  ;;  %v2935_v46 = vadd.f32 %v5055_v31, %v2896_v60  ;;  %v2280_v53 = vmul.f32 %v4640_v14, %v5747_v39  ;;  %v2821_v60 = vpop.permute.xlu0 %2820 }
 0x305   : > { %v2741_v19 = vpop.permute.xlu1 %2740  ;;  %v2506_v24 = vadd.f32 %v2474_v28, %v2310_v12  ;;  %v1920_v42 = vadd.f32 %v1888_v58, %v1724_v62  ;;  %v1694_v20 = vmul.f32 %v4607_v23, %v5748_v30  ;;  %v2476_v10 = vmul.f32 %v4655_v6, %v5749_v9 }
 0x306   : > { %v2920_v4 = vadd.f32 %v5055_v31, %v2881_v18  ;;  %v2850_v5 = vmul.f32 %v5041_v3, %v2741_v19  ;;  %v1530_v28 = vmul.f32 %v5671_v25, %v5750_v36  ;;  %v1890_v23 = vmul.f32 %v4613_v29, %v5751_v51 }
 0x307   : > { %v2702_v57 = vadd.f32 %v2670_v37, %v2506_v24  ;;  %v2116_v8 = vadd.f32 %v2084_v44, %v1920_v42  ;;  %v2899_v29 = vadd.f32 %v2867_v38, %v4988_v48  ;;  %v2478_v44 = vmul.f32 %v4655_v6, %v5754_v55 }
 0x308   : > { %v2882_v32 = vadd.f32 %v2850_v5, %v4955_v41  ;;  %2982 = vxpose.xlu0.b32.cont [5/16] (narrow) %v2934_v34, 16  ;;  %2952 = vxpose.xlu1.b32.cont [7/16] (narrow) %v2920_v4, 16  ;;  %v2672_v34 = vmul.f32 %v4666_v22, %v5075_v56  ;;  %v1726_v1 = vadd.f32 %v1694_v20, %v1530_v28  ;;  %v5752_v5 = vld [vmem:[#allocation107_spill] sm:$0xff]  ;;  %v2825_v27 = vpop.permute.xlu0 %2824  ;;  %v5755_v28 = vld [vmem:[#allocation36_spill] sm:$0xff] }
 0x309   : > { %v2745_v45 = vpop.permute.xlu1 %2744  ;;  %v2898_v47 = vadd.f32 %v2866_v40, %v2702_v57  ;;  %v2312_v19 = vadd.f32 %v2280_v53, %v2116_v8  ;;  %v2086_v52 = vmul.f32 %v4635_v35, %v5752_v5  ;;  %v5757_v5 = vld [vmem:[#allocation78_spill] sm:$0xff] }
 0x30a   : > { %v2921_v33 = vadd.f32 %v5055_v31, %v2882_v32  ;;  %v2851_v41 = vmul.f32 %v5041_v3, %v2745_v45  ;;  %v1922_v37 = vadd.f32 %v1890_v23, %v1726_v1  ;;  %v2938_v45 = vadd.f32 %v5055_v31, %v2899_v29 }
 0x30b   : > { %v2508_v54 = vadd.f32 %v2476_v10, %v2312_v19  ;;  %v2937_v58 = vadd.f32 %v5055_v31, %v2898_v47  ;;  %v5756_v19 = vld [vmem:[#allocation30_spill] sm:$0xff] }
 0x30c   : > { %v2883_v61 = vadd.f32 %v2851_v41, %v4810_v0  ;;  %2983 = vxpose.xlu0.b32.cont [6/16] (narrow) %v2935_v46, 16  ;;  %2953 = vxpose.xlu1.b32.cont [8/16] (narrow) %v2921_v33, 16  ;;  %v2118_v35 = vadd.f32 %v2086_v52, %v1922_v37  ;;  %v2869_v46 = vmul.f32 %v5041_v3, %v2817_v11  ;;  %v2829_v30 = vpop.permute.xlu0 %2828 }
 0x30d   : > { %v2749_v18 = vpop.permute.xlu1 %2748  ;;  %v2704_v62 = vadd.f32 %v2672_v34, %v2508_v54  ;;  %v2870_v11 = vmul.f32 %v5041_v3, %v2821_v60 }
 0x30e   : > { %v2922_v17 = vadd.f32 %v5055_v31, %v2883_v61  ;;  %v2852_v0 = vmul.f32 %v5041_v3, %v2749_v18  ;;  %v2901_v53 = vadd.f32 %v2869_v46, %v5006_v49 }
 0x30f   : > { %v2900_v24 = vadd.f32 %v2868_v26, %v2704_v62  ;;  %v5758_v26 = vld [vmem:[#allocation28_spill] sm:$0xff] }
 0x310   : > { %v2884_v4 = vadd.f32 %v2852_v0, %v4974_v63  ;;  %2984 = vxpose.xlu0.b32.cont [7/16] (narrow) %v2936_v7, 16  ;;  %2954 = vxpose.xlu1.b32.cont [9/16] (narrow) %v2922_v17, 16  ;;  %v5753_v63 = vld [vmem:[#allocation143_spill] sm:$0xff]  ;;  %v2940_v8 = vadd.f32 %v5055_v31, %v2901_v53  ;;  %v2833_v47 = vpop.permute.xlu0 %2832  ;;  %v2872_v17 = vmul.f32 %v5041_v3, %v2829_v30 }
 0x311   : > { %v2753_v25 = vpop.permute.xlu1 %2752  ;;  %v2282_v32 = vmul.f32 %v4640_v14, %v5753_v63  ;;  %v2939_v42 = vadd.f32 %v5055_v31, %v2900_v24 }
 0x312   : > { %v2923_v12 = vadd.f32 %v5055_v31, %v2884_v4  ;;  %v2853_v56 = vmul.f32 %v5041_v3, %v2753_v25  ;;  %v2904_v34 = vadd.f32 %v2872_v17, %v5756_v19 }
 0x313   : > { %v2314_v33 = vadd.f32 %v2282_v32, %v2118_v35 }
 0x314   : > { %v2885_v2 = vadd.f32 %v2853_v56, %v4834_v13  ;;  %2985 = vxpose.xlu0.b32.cont [8/16] (narrow) %v2937_v58, 16  ;;  %2955 = vxpose.xlu1.b32.cont [10/16] (narrow) %v2923_v12, 16  ;;  %v2674_v13 = vmul.f32 %v4666_v22, %v5088_v43  ;;  %v2837_v1 = vpop.permute.xlu0 %2836  ;;  %v2943_v54 = vadd.f32 %v5055_v31, %v2904_v34 }
 0x315   : > { %v2757_v48 = vpop.permute.xlu1 %2756  ;;  %v2510_v6 = vadd.f32 %v2478_v44, %v2314_v33  ;;  %v2874_v58 = vmul.f32 %v5041_v3, %v2837_v1 }
 0x316   : > { %v2924_v40 = vadd.f32 %v5055_v31, %v2885_v2  ;;  %v2854_v14 = vmul.f32 %v5041_v3, %v2757_v48  ;;  %v3017_v48 = vld [vmem:[#allocation3] sm:$0xff] }
 0x317   : > { %v2706_v20 = vadd.f32 %v2674_v13, %v2510_v6  ;;  %v2906_v56 = vadd.f32 %v2874_v58, %v5138_v15 }
 0x318   : > { %v2886_v41 = vadd.f32 %v2854_v14, %v4994_v16  ;;  %2986 = vxpose.xlu0.b32.cont [9/16] (narrow) %v2938_v45, 16  ;;  %2956 = vxpose.xlu1.b32.cont [11/16] (narrow) %v2924_v40, 16  ;;  %v2871_v16 = vmul.f32 %v5041_v3, %v2825_v27  ;;  %v3030_v40 = vld [vmem:[#allocation4] sm:$0xff]  ;;  %v3018_v14 = vld [vmem:[#allocation3 + $0x8] sm:$0xff] }
 0x319   : > { %v2761_v39 = vpop.permute.xlu1 %2760  ;;  %v2902_v9 = vadd.f32 %v2870_v11, %v2706_v20  ;;  %v2945_v37 = vadd.f32 %v5055_v31, %v2906_v56 }
 0x31a   : > { %v2925_v57 = vadd.f32 %v5055_v31, %v2886_v41  ;;  %v2855_v61 = vmul.f32 %v5041_v3, %v2761_v39  ;;  %v2903_v18 = vadd.f32 %v2871_v16, %v5021_v50  ;;  %v2873_v50 = vmul.f32 %v5041_v3, %v2833_v47 }
 0x31b   : > { %v2941_v38 = vadd.f32 %v5055_v31, %v2902_v9 }
 0x31c   : > { %v2887_v22 = vadd.f32 %v2855_v61, %v4860_v59  ;;  %2987 = vxpose.xlu0.b32.cont [10/16] (narrow) %v2939_v42, 16  ;;  %2957 = vxpose.xlu1.b32.cont [12/16] (narrow) %v2925_v57, 16  ;;  %v2905_v25 = vadd.f32 %v2873_v50, %v5758_v26  ;;  %v3031_v42 = vld [vmem:[#allocation4 + $0x8] sm:$0xff]  ;;  %v3303_v61 = vmov (!%p3198_p5), 0  }
 0x31d   : > { %v2765_v43 = vpop.permute.xlu1 %2764 }
 0x31e   : > { %v2926_v49 = vadd.f32 %v5055_v31, %v2887_v22  ;;  %v2856_v10 = vmul.f32 %v5041_v3, %v2765_v43  ;;  %v2944_v12 = vadd.f32 %v5055_v31, %v2905_v25 }
 0x320   : > { %v2888_v7 = vadd.f32 %v2856_v10, %v5012_v21  ;;  %2988 = vxpose.xlu0.b32.cont [11/16] (narrow) %v2940_v8, 16  ;;  %2958 = vxpose.xlu1.b32.cont [13/16] (narrow) %v2926_v49, 16  ;;  %v2942_v21 = vadd.f32 %v5055_v31, %v2903_v18 }
 0x321   : > { %v2769_v59 = vpop.permute.xlu1 %2768 }
 0x322   : > { %v2927_v0 = vadd.f32 %v5055_v31, %v2888_v7  ;;  %v2857_v36 = vmul.f32 %v5041_v3, %v2769_v59  ;;  %v3062_v59 = vld [vmem:[%s5388_s5] sm:$0xff] (!%p3198_p5) }
 0x324   : > { %v2889_v51 = vadd.f32 %v2857_v36, %v5755_v28  ;;  %2989 = vxpose.xlu0.b32.cont [12/16] (narrow) %v2941_v38, 16  ;;  %2959 = vxpose.xlu1.b32.cont [14/16] (narrow) %v2927_v0, 16  ;;  %v3063_v38 = vld [vmem:[%s5388_s5 + $0x8] sm:$0xff] (!%p3198_p5) }
 0x325   : > { %v2773_v23 = vpop.permute.xlu1 %2772 }
 0x326   : > { %v2928_v60 = vadd.f32 %v5055_v31, %v2889_v51  ;;  %v2858_v4 = vmul.f32 %v5041_v3, %v2773_v23  ;;  %v3070_v51 = vld [vmem:[%s5389_s6] sm:$0xff] (!%p3198_p5)  ;;  %v3071_v23 = vld [vmem:[%s5389_s6 + $0x8] sm:$0xff] (!%p3198_p5) }
 0x328   : > { %v2890_v52 = vadd.f32 %v2858_v4, %v5757_v5  ;;  %2990 = vxpose.xlu0.b32.cont [13/16] (narrow) %v2942_v21, 16  ;;  %2960 = vxpose.xlu1.b32.cont [15/16] (narrow) %v2928_v60, 16 }
 0x32a   : > { %v2929_v29 = vadd.f32 %v5055_v31, %v2890_v52 }
 0x32c   : > { %2991 = vxpose.xlu0.b32.cont [14/16] (narrow) %v2943_v54, 16  ;;  %2961 = vxpose.xlu1.b32.end [16/16] (narrow) %v2929_v29, 16 }
 0x330   : > { %2992 = vxpose.xlu0.b32.cont [15/16] (narrow) %v2944_v12, 16 }
 0x334   : > { %2993 = vxpose.xlu0.b32.end [16/16] (narrow) %v2945_v37, 16 }
 0x34a   : > { %3251 = vset.pattern.permute.xlu1 (!%p3198_p5), %v3303_v61 }
 0x35d   : > { %3250 = vset.pattern.permute.xlu0 (!%p3198_p5), %v3303_v61 }
 0x370   : > { %v2962_v63 = vpop.trf.xlu1 }
 0x371   : > { %3013 = vst [vmem:[%s3012_s23] sm:$0xff] %v2962_v63  ;;  %v3032_v35 = vmul.f32 %v2962_v63, %v2962_v63 }
 0x374   : > { %v2963_v32 = vpop.trf.xlu1 }
 0x375   : > { %3015 = vst [vmem:[%s3012_s23 + $0x10] sm:$0xff] %v2963_v32  ;;  %v3034_v24 = vmul.f32 %v2963_v32, %v2963_v32 }
 0x378   : > { %v2994_v62 = vpop.trf.xlu0 }
 0x379   : > { %3014 = vst [vmem:[%s3012_s23 + $0x8] sm:$0xff] %v2994_v62  ;;  %v3033_v3 = vmul.f32 %v2994_v62, %v2994_v62  ;;  %v3019_v2 = vadd.f32 %v2994_v62, %v2962_v63 }
 0x37b   : > { %3020 = vadd.xlane.f32.xlu0 %v3019_v2  ;;  %v3036_v27 = vadd.f32 %v3033_v3, %v3032_v35 }
 0x37c   : > { %v2995_v55 = vpop.trf.xlu0 }
 0x37d   : > { %3016 = vst [vmem:[%s3012_s23 + $0x18] sm:$0xff] %v2995_v55  ;;  %v3035_v44 = vmul.f32 %v2995_v55, %v2995_v55  ;;  %v3022_v15 = vadd.f32 %v2995_v55, %v2963_v32 }
 0x37f   : > { %3037 = vadd.xlane.f32.xlu0 %v3036_v27  ;;  %3023 = vadd.xlane.f32.xlu1 %v3022_v15  ;;  %v3039_v31 = vadd.f32 %v3035_v44, %v3034_v24 }
 0x383   : > { %3040 = vadd.xlane.f32.xlu1 %v3039_v31 }
 0x384   : > { %v3076_v60 = vld [vmem:[#allocation5] sm:$0xff] (!%p3198_p5)  ;;  %v3077_v4 = vld [vmem:[#allocation5 + $0x8] sm:$0xff] (!%p3198_p5)  ;;  %v3078_v29 = vld [vmem:[#allocation5 + $0x10] sm:$0xff] (!%p3198_p5) }
 0x385   : > { %v3080_v1 = vld [vmem:[#allocation5 + $0x20] sm:$0xff] (!%p3198_p5)  ;;  %v3081_v5 = vld [vmem:[#allocation5 + $0x28] sm:$0xff] (!%p3198_p5)  ;;  %v3079_v12 = vld [vmem:[#allocation5 + $0x18] sm:$0xff] (!%p3198_p5) }
 0x386   : > { %v3082_v56 = vld [vmem:[#allocation5 + $0x30] sm:$0xff] (!%p3198_p5)  ;;  %v3083_v37 = vld [vmem:[#allocation5 + $0x38] sm:$0xff] (!%p3198_p5) }
 0x408   : > { %v3021_v45 = vpop.xlane.xlu0 %3020 }
 0x409   : > { %v3025_v46 = vadd.f32 %v3021_v45, %v3017_v48 }
 0x40b   : > { %3028 = vst.msk [vmem:[#allocation3] sm:$0xff] %vm3027_vm4, %v3025_v46 }
 0x40c   : > { %v3038_v33 = vpop.xlane.xlu0 %3037  ;;  %v3024_v13 = vpop.xlane.xlu1 %3023 }
 0x40d   : > { %v3042_v41 = vadd.f32 %v3038_v33, %v3030_v40  ;;  %v3026_v6 = vadd.f32 %v3024_v13, %v3018_v14  ;;  %3049 = sbr.rel (%p3198_p5) target bundleno = 1208 (0x4b8), region = 56 }
 0x40f   : > { %3044 = vst.msk [vmem:[#allocation4] sm:$0xff] %vm3027_vm4, %v3042_v41  ;;  %3029 = vst.msk [vmem:[#allocation3 + $0x8] sm:$0xff] %vm3027_vm4, %v3026_v6 }
 0x410   : > { %v3041_v39 = vpop.xlane.xlu1 %3040 }
 0x411   : > { %v3043_v53 = vadd.f32 %v3041_v39, %v3031_v42 }
 0x412   : > { %v3050_v11 = vld [vmem:[#allocation3] sm:$0xff] (!%p3198_p5) }
 0x413   : > { %3045 = vst.msk [vmem:[#allocation4 + $0x8] sm:$0xff] %vm3027_vm4, %v3043_v53  ;;  %v3052_v30 = vmul.f32 (!%p3198_p5), 0.001953125, %v3050_v11 }
 0x415   : > { %v3058_v9 = vmul.f32 %v3052_v30, %v3052_v30 }
 0x416   : > { %v3054_v57 = vld [vmem:[#allocation4] sm:$0xff]  ;;  %v3051_v22 = vld [vmem:[#allocation3 + $0x8] sm:$0xff] }
 0x417   : > { %v3056_v20 = vmul.f32 0.001953125, %v3054_v57  ;;  %v3053_v43 = vmul.f32 0.001953125, %v3051_v22 }
 0x419   : > { %v3059_v49 = vmul.f32 %v3053_v43, %v3053_v43  ;;  %v3060_v10 = vsub.f32 %v3056_v20, %v3058_v9 }
 0x41a   : > { %v3055_v16 = vld [vmem:[#allocation4 + $0x8] sm:$0xff] }
 0x41b   : > { %v3057_v8 = vmul.f32 0.001953125, %v3055_v16  ;;  %v3064_v18 = vadd.f32 1e-05, %v3060_v10 }
 0x41d   : > { %v3061_v7 = vsub.f32 %v3057_v8, %v3059_v49  ;;  %3252 = vrsqrt.f32 %v3064_v18 }
 0x41f   : > { %v3065_v47 = vadd.f32 1e-05, %v3061_v7 }
 0x421   : > { %3254 = vrsqrt.f32 %v3065_v47 }
 0x427   : > { %v3253_v17 = vpop.eup %3252 }
 0x428   : > { %v3068_v36 = vmul.f32 %v3253_v17, %v3062_v59 }
 0x42a   : > { %3086 = vperm.xlu0 %3250, %v3068_v36   ;;  %v3072_v21 = vmul.f32 %v3068_v36, %v3052_v30 }
 0x42b   : > { %v3255_v0 = vpop.eup %3254 }
 0x42c   : > { %v3069_v28 = vmul.f32 %v3255_v0, %v3063_v38  ;;  %v3074_v34 = vsub.f32 %v3070_v51, %v3072_v21 }
 0x42e   : > { %v3073_v19 = vmul.f32 %v3069_v28, %v3053_v43  ;;  %3091 = vperm.xlu0 %3250, %v3069_v28   ;;  %3104 = vperm.xlu1 %3251, %v3074_v34  }
 0x430   : > { %v3075_v50 = vsub.f32 %v3071_v23, %v3073_v19 }
 0x432   : > { %3109 = vperm.xlu1 %3251, %v3075_v50  }
 0x4a9   : > { %v3087_v52 = vpop.permute.xlu0 %3086 }
 0x4aa   : > { %v3094_v54 = vmul.f32 %v3087_v52, %v3076_v60  ;;  %v3095_v26 = vmul.f32 %v3087_v52, %v3077_v4  ;;  %v3098_v25 = vmul.f32 %v3087_v52, %v3080_v1  ;;  %v3099_v58 = vmul.f32 %v3087_v52, %v3081_v5 }
 0x4ad   : > { %v3092_v63 = vpop.permute.xlu0 %3091  ;;  %v3105_v32 = vpop.permute.xlu1 %3104 }
 0x4ae   : > { %v3112_v62 = vadd.f32 %v3105_v32, %v3094_v54  ;;  %v3113_v3 = vadd.f32 %v3105_v32, %v3095_v26  ;;  %v3116_v2 = vadd.f32 %v3105_v32, %v3098_v25  ;;  %v3117_v35 = vadd.f32 %v3105_v32, %v3099_v58 }
 0x4af   : > { %v3096_v55 = vmul.f32 %v3092_v63, %v3078_v29  ;;  %v3097_v44 = vmul.f32 %v3092_v63, %v3079_v12  ;;  %v3100_v15 = vmul.f32 %v3092_v63, %v3082_v56  ;;  %v3101_v24 = vmul.f32 %v3092_v63, %v3083_v37 }
 0x4b0   : > { %v3120_v27 = vmax.f32 %v3112_v62, 0.0  ;;  %v3121_v31 = vmax.f32 %v3113_v3, 0.0  ;;  %v3124_v48 = vmax.f32 %v3116_v2, 0.0  ;;  %v3125_v45 = vmax.f32 %v3117_v35, 0.0 }
 0x4b1   : > { %v3110_v46 = vpop.permute.xlu1 %3109 }
 0x4b2   : > { %v3114_v40 = vadd.f32 %v3110_v46, %v3096_v55  ;;  %v3115_v14 = vadd.f32 %v3110_v46, %v3097_v44  ;;  %v3118_v33 = vadd.f32 %v3110_v46, %v3100_v15  ;;  %v3119_v13 = vadd.f32 %v3110_v46, %v3101_v24  ;;  %3128 = vst [vmem:[#allocation5] sm:$0xff] %v3120_v27 }
 0x4b3   : > { %3129 = vst [vmem:[#allocation5 + $0x8] sm:$0xff] %v3121_v31  ;;  %3132 = vst [vmem:[#allocation5 + $0x20] sm:$0xff] %v3124_v48 }
 0x4b4   : > { %3133 = vst [vmem:[#allocation5 + $0x28] sm:$0xff] %v3125_v45  ;;  %v3122_v41 = vmax.f32 %v3114_v40, 0.0  ;;  %v3123_v6 = vmax.f32 %v3115_v14, 0.0  ;;  %v3126_v42 = vmax.f32 %v3118_v33, 0.0  ;;  %v3127_v39 = vmax.f32 %v3119_v13, 0.0 }
 0x4b6   : > { %3130 = vst [vmem:[#allocation5 + $0x10] sm:$0xff] %v3122_v41  ;;  %3131 = vst [vmem:[#allocation5 + $0x18] sm:$0xff] %v3123_v6 }
 0x4b7   : > { %3134 = vst [vmem:[#allocation5 + $0x30] sm:$0xff] %v3126_v42  ;;  %3135 = vst [vmem:[#allocation5 + $0x38] sm:$0xff] %v3127_v39 }
 0x4b8 PF: > { %p3209_p6 = scmp.eq.s32.totalorder %s3353_s25, 1  ;;  %s3304_s11 = smov [#allocation5]  }
 0x4b9   : > { %s3142_s12 = sshll.u32 %s3304_s11, 4  ;;  %s3143_s12 = int_to_ptr.vmem [resolvable:$true] %s3142_s12 }
 0x4ba   : > { %s3256_s13 = scalar_lea.vmem %s3143_s12, 1024  ;;  %p3263_p10 = scmp.lt.s32.totalorder %s3143_s12, %s3143_s12 }
 0x4bb   : > { %p3257_p7 = scmp.ne.s32.totalorder %s3143_s12, %s3256_s13  ;;  %p3264_p11 = scmp.lt.s32.totalorder %s3256_s13, %s3256_s13 }
 0x4bd   : > { %p3258_p8 = pnand %p3257_p7, %p3209_p6  ;;  %p3265_p12 = por %p3264_p11, %p3263_p10 }
 0x4bf   : > { %p3259_p9 = pneg %p3258_p8 }
 0x4c1   : > { %p3266_p13 = pnand %p3265_p12, %p3259_p9 }
 0x4c3   : > { %3269 = shalt.err (!%p3266_p13)
}
 0x4c4   : > { %s3270_s16 = scalar_lea.hbm %s5390_s7, 1024 }
 0x4c5   : > { %p3271_p0 = scmp.ne.s32.totalorder %s5390_s7, %s3270_s16  ;;  %p3276_p3 = scmp.lt.u32.totalorder %s3270_s16, %s5390_s7 }
 0x4c7   : > { %p3272_p1 = pnand %p3271_p0, %p3209_p6 }
 0x4c9   : > { %p3273_p2 = pneg %p3272_p1 }
 0x4cb   : > { %p3278_p4 = pnand %p3276_p3, %p3273_p2 }
 0x4cd   : > { %3281 = shalt.err (!%p3278_p4)
}
 0x4ce   : > { %s3305_s21 = smov 256   ;;  %s3306_s22 = smov 16  }
 0x4cf   : > { %3206 = dma.vmem_to_hbm [thread:$0]  (%p3209_p6), %s3143_s12, 1024, %s5390_s7, [#allocation6], %s3305_s21, %s3305_s21, %s3306_s22  }
 0x4d0   : > { %3287 = dma.done.wait (%p3209_p6), [#allocation6], 1024  }
 0x4d1   : > { %3289 = vsyncadd (%p3209_p6), [#allocation6], 4294966272 }
 0x4d2 PF: > { %s18_s24 = sadd.s32 1, %s3292_s24  }
 0x4d3   : > { %p15_p5 = scmp.ge.s32.totalorder %s18_s24, 4  }
 0x4d5   :  { %17 = sbr.rel (!%p15_p5) target bundleno = 1 (0x1), region = 86 }
 0x4dc   :  { %3158 = vsyncpa [#allocation6], 1 }
 0x4dd   :  { %3160 = vsyncpa [#allocation6 + $0x1], 1 }

</bundles_post_ra>
